<compile_context>
chip_gen: v6e
topology: v6e:2x2x1
jax: 0.10.0
libtpu: 0.0.40
codegen_flags: <defaults>
</compile_context>

<pallas_src>
import jax
import jax.numpy as jnp
from jax import lax
from jax.experimental import pallas as pl
from jax.experimental.pallas import tpu as pltpu


VMEM_PARAM_KEYS = [
    "gn_w", "gn_b",
    "wih", "b_ih",
    "whh_f", "whh_b",
    "fc1w_f", "fc1w_b", "fc1_b",
    "fc2_w", "fc2_b",
    "glu_w", "glu_b",
    "m1_w", "m1_b", "m2_w", "m2_b",
    "cg_w", "cg_b", "tr_w", "tr_b",
]
SMEM_PARAM_KEYS = ["sam_w", "sam_b"]


def _rnn_module_kernel(
    x_ref,
    gnw_ref, gnb_ref,
    wih_ref, bih_ref,
    whhf_ref, whhb_ref,
    fc1wf_ref, fc1wb_ref, fc1b_ref,
    fc2w_ref, fc2b_ref,
    gluw_ref, glub_ref,
    m1w_ref, m1b_ref, m2w_ref, m2b_ref,
    cgw_ref, cgb_ref, trw_ref, trb_ref,
    samw_ref, samb_ref,
    o_ref,
    xn_s, gxf_s, gxb_s, fwd_s, bwd_s, hf_s, cf_s, hb_s, cb_s,
):
    T, RB, N = x_ref.shape
    H = whhf_ref.shape[0]
    G4 = 4 * H
    eps = 1e-5
    f32 = jnp.float32
    bf16 = jnp.bfloat16

    # ---------------- GroupNorm(num_groups=N, num_channels=N) -----------------
    # Equivalent to normalizing each feature channel over the scanned axis (f32).
    x = x_ref[...].astype(f32)                                # (T, RB, N)
    mean = jnp.mean(x, axis=0, keepdims=True)
    var = jnp.mean(jnp.square(x - mean), axis=0, keepdims=True)   # biased var
    xn = (x - mean) * lax.rsqrt(var + eps)
    xn = xn * gnw_ref[...].reshape(1, 1, N) + gnb_ref[...].reshape(1, 1, N)
    xn_s[...] = xn.astype(bf16)
    # `x` is NOT kept live past this point; the residual re-reads x_ref.

    # ------- BiLSTM input projection hoisted out of the recurrence (one matmul) -------
    xn2 = xn_s[...].reshape(T * RB, N)                        # bf16
    g_all = (jnp.dot(xn2, wih_ref[...], preferred_element_type=f32)
             + bih_ref[...])                                  # (T*RB, 8H) f32
    gxf_s[...] = g_all[:, :G4].reshape(T, RB, G4)
    gxb_s[...] = g_all[:, G4:].reshape(T, RB, G4)

    # ------- Interleaved bidirectional LSTM recurrence (gate order i, f, g, o) -------
    whh_f = whhf_ref[...]                                     # (H, 4H) bf16
    whh_b = whhb_ref[...]
    hf_s[...] = jnp.zeros((RB, H), f32)
    cf_s[...] = jnp.zeros((RB, H), f32)
    hb_s[...] = jnp.zeros((RB, H), f32)
    cb_s[...] = jnp.zeros((RB, H), f32)

    def cell(gx, h, c, whh):
        # gx already contains xn @ wih + (b_ih + b_hh).
        gates = gx + jnp.dot(h.astype(bf16), whh, preferred_element_type=f32)
        # NOTE: with realistic H (multiple of 128) these slices are lane-aligned.
        i_g = jax.nn.sigmoid(gates[:, 0:H])
        f_g = jax.nn.sigmoid(gates[:, H:2 * H])
        g_g = jnp.tanh(gates[:, 2 * H:3 * H])
        o_g = jax.nn.sigmoid(gates[:, 3 * H:4 * H])
        c_new = f_g * c + i_g * g_g
        h_new = o_g * jnp.tanh(c_new)
        return h_new, c_new

    @pl.loop(0, T)
    def _(t):
        tb = T - 1 - t
        h_f, c_f = cell(gxf_s[t], hf_s[...], cf_s[...], whh_f)
        h_b, c_b = cell(gxb_s[tb], hb_s[...], cb_s[...], whh_b)
        hf_s[...] = h_f
        cf_s[...] = c_f
        hb_s[...] = h_b
        cb_s[...] = c_b
        fwd_s[t] = h_f.astype(bf16)
        bwd_s[tb] = h_b.astype(bf16)

    # ---------------- fc = MLP(2H -> H -> N, tanh) + GLU(N, sigmoid) ----------------
    # The 2H concat is avoided by splitting fc1 into fwd/bwd halves.
    fwd2 = fwd_s[...].reshape(T * RB, H)                      # bf16
    bwd2 = bwd_s[...].reshape(T * RB, H)
    h1 = jnp.tanh(jnp.dot(fwd2, fc1wf_ref[...], preferred_element_type=f32)
                  + jnp.dot(bwd2, fc1wb_ref[...], preferred_element_type=f32)
                  + fc1b_ref[...])
    h2 = jnp.dot(h1.astype(bf16), fc2w_ref[...], preferred_element_type=f32) + fc2b_ref[...]
    g = jnp.dot(h2.astype(bf16), gluw_ref[...], preferred_element_type=f32) + glub_ref[...]
    y = g[:, :N] * jax.nn.sigmoid(g[:, N:])                   # (T*RB, N) f32
    y3 = y.reshape(T, RB, N)

    # ---------------- CBAM: CAM (channel attention, pool over scanned axis) ---------
    avg_p = jnp.mean(y3, axis=0)                              # AdaptiveAvgPool1d(1)
    max_p = jnp.max(y3, axis=0)                               # AdaptiveMaxPool1d(1)

    def cam_mlp(p):
        a = jnp.dot(p.astype(bf16), m1w_ref[...], preferred_element_type=f32) + m1b_ref[...]
        a = jnp.maximum(a, 0.0)                               # act_cbam = relu
        return jnp.dot(a.astype(bf16), m2w_ref[...], preferred_element_type=f32) + m2b_ref[...]

    feats = cam_mlp(avg_p) + cam_mlp(max_p)                   # (RB, N)
    gg = jnp.dot(feats.astype(bf16), cgw_ref[...], preferred_element_type=f32) + cgb_ref[...]
    feats = gg[:, :N] * jax.nn.sigmoid(gg[:, N:])             # GLU gate
    tr = jnp.dot(y.astype(bf16), trw_ref[...], preferred_element_type=f32) + trb_ref[...]
    refined = tr.reshape(T, RB, N) * feats[None, :, :]        # Conv1d(k=1) * feats

    # ---------- CBAM: SAM (spatial attention, Conv1d(2->1, k=7, pad=3)) ----------
    ch_mean = jnp.mean(refined, axis=2)                       # (T, RB)
    ch_max = jnp.max(refined, axis=2)                         # (T, RB)
    zpad = jnp.zeros((3, RB), f32)
    mp = jnp.concatenate([zpad, ch_mean, zpad], axis=0)       # (T+6, RB)
    xp = jnp.concatenate([zpad, ch_max, zpad], axis=0)
    conv = jnp.zeros((T, RB), f32) + samb_ref[0, 0]           # SMEM scalar bias
    for k in range(7):                                        # static taps, SMEM scalars
        w0 = samw_ref[0, k]
        w1 = samw_ref[1, k]
        conv = conv + w0 * mp[k:k + T, :] + w1 * xp[k:k + T, :]
    sam_gate = jax.nn.sigmoid(conv)                           # (T, RB)

    # ---------------- residual (x re-read from the resident input block) ------------
    # TODO(synk): present a lane-dense (>=128) feature slab for the output store when
    # N is small; at N=16 the final store runs on 16/128 lanes.
    o_ref[...] = (refined * sam_gate[:, :, None] + x_ref[...].astype(f32)).astype(o_ref.dtype)


# ----------------------------------------------------------------------------------
# Wrapper
# ----------------------------------------------------------------------------------
def _round_up(v, m):
    return ((v + m - 1) // m) * m


def _vmem_capacity_bytes():
    try:
        return int(pltpu.get_tpu_info().vmem_capacity_bytes)
    except Exception:
        return 64 * 1024 * 1024    # conservative (v7x-class) fallback


def _choose_row_block(rows, T, N, H, vmem_limit_bytes, param_bytes):
    """Largest row block that fits the per-generation VMEM budget (multiple of 8)."""
    per_row = (
        2 * 2 * T * N * 4        # input + output blocks, double-buffered, f32
        + T * N * 2              # xn scratch (bf16)
        + 2 * T * 4 * H * 4      # precomputed fwd/bwd input-proj gates (f32)
        + 2 * T * H * 2          # fwd/bwd hidden outputs (bf16)
        + 4 * H * 4              # h/c recurrent state (f32)
    )
    per_row = int(per_row * 1.5)                       # slack for compiler temporaries
    budget = vmem_limit_bytes - 2 * param_bytes - (4 << 20)
    cap = max(8, min(256, (budget // max(per_row, 1)) // 8 * 8))
    rb = min(cap, _round_up(rows, 8))
    if rows >= 16 and _round_up(rows, 8) <= cap:
        # Keep at least 2 grid steps so the 'parallel' axis can shard across both
        # TensorCores on v7x-class parts (one step per core would idle a core).
        rb = max(8, _round_up((rows + 1) // 2, 8))
    return rb


def rnn_module_apply(x, kp):
    """One RNNModule forward.  x: (B, D1, D2, N)  ->  (B, D2, D1, N)."""
    B, D1, D2, N = x.shape
    rows = B * D1
    T = D2
    H = kp["whh_f"].shape[0]
    M = kp["m1_w"].shape[1]

    # TODO(synk): fold this HBM transpose (and the trailing permute) into the
    # BlockSpec index_map by scanning the time axis from row-major blocks.
    x_tm = x.reshape(rows, T, N).transpose(1, 0, 2)            # (T, rows, N)

    vmem_cap = _vmem_capacity_bytes()
    vmem_limit = max(32 << 20, min(int(vmem_cap * 3 // 4), 96 << 20))

    vmem_params = [kp[k] for k in VMEM_PARAM_KEYS]
    smem_params = [kp[k] for k in SMEM_PARAM_KEYS]
    param_bytes = sum(int(p.size) * p.dtype.itemsize for p in vmem_params)

    RB = _choose_row_block(rows, T, N, H, vmem_limit, param_bytes)
    rows_p = _round_up(rows, RB)
    if rows_p != rows:
        x_tm = jnp.pad(x_tm, ((0, 0), (0, rows_p - rows), (0, 0)))
    grid = (rows_p // RB,)

    xio_spec = pl.BlockSpec((T, RB, N), lambda i: (0, i, 0))

    def full_spec(arr):
        return pl.BlockSpec(arr.shape, lambda i, _r=arr.ndim: (0,) * _r)

    smem_spec = pl.BlockSpec(memory_space=pltpu.MemorySpace.SMEM)
    in_specs = ([xio_spec]
                + [full_spec(p) for p in vmem_params]
                + [smem_spec for _ in smem_params])

    # Advisory cost estimate (matmul flops dominate; transcendentals from gates/GLU).
    flops = 2 * rows_p * T * (8 * N * H      # hoisted input projection
                              + 8 * H * H    # recurrence, both directions
                              + 2 * H * H    # fc1 (split fwd/bwd)
                              + H * N        # fc2
                              + 2 * N * N    # GLU
                              + N * N)       # CAM transform (Conv1d k=1)
    flops += 2 * rows_p * (2 * (N * M + M * N) + 2 * N * N)
    transcendentals = rows_p * T * (10 * H + 3 * N) + rows_p * 2 * N
    bytes_accessed = 2 * rows_p * T * N * 4 + param_bytes
    cost = pl.CostEstimate(flops=int(flops),
                           transcendentals=int(transcendentals),
                           bytes_accessed=int(bytes_accessed))

    out_tm = pl.pallas_call(
        _rnn_module_kernel,
        out_shape=jax.ShapeDtypeStruct((T, rows_p, N), jnp.float32),
        grid=grid,
        in_specs=in_specs,
        out_specs=xio_spec,
        scratch_shapes=[
            pltpu.VMEM((T, RB, N), jnp.bfloat16),        # normalized input
            pltpu.VMEM((T, RB, 4 * H), jnp.float32),     # fwd input-proj gates
            pltpu.VMEM((T, RB, 4 * H), jnp.float32),     # bwd input-proj gates
            pltpu.VMEM((T, RB, H), jnp.bfloat16),        # fwd hidden outputs
            pltpu.VMEM((T, RB, H), jnp.bfloat16),        # bwd hidden outputs
            pltpu.VMEM((RB, H), jnp.float32),            # h fwd
            pltpu.VMEM((RB, H), jnp.float32),            # c fwd
            pltpu.VMEM((RB, H), jnp.float32),            # h bwd
            pltpu.VMEM((RB, H), jnp.float32),            # c bwd
        ],
        compiler_params=pltpu.CompilerParams(
            dimension_semantics=("parallel",),
            vmem_limit_bytes=int(vmem_limit)),
        cost_estimate=cost,
    )(x_tm, *vmem_params, *smem_params)

    out_tm = out_tm[:, :rows, :]                               # drop row padding
    # (D2, B*D1, N) -> (B, D2, D1, N): residual already added in-kernel, this is
    # exactly the module's trailing permute(0, 2, 1, 3).
    return out_tm.reshape(T, B, D1, N).transpose(1, 0, 2, 3)


def band_sequence_model(x, layers_params):
    """BandSequenceModelModule forward. x: (B, K, T, N) -> (B, K, T, N)."""
    for kp_t, kp_k in layers_params:
        x = rnn_module_apply(x, kp_t)   # RNN across T  -> (B, T, K, N)
        x = rnn_module_apply(x, kp_k)   # RNN across K  -> (B, K, T, N)
    return x


# ----------------------------------------------------------------------------------
# Parameters: natural (PyTorch-like) init + packing into the kernel layout
# ----------------------------------------------------------------------------------
def init_rnn_module_params(key, n_feat, hidden, mlp_dim):
    N, H, M = n_feat, hidden, mlp_dim
    ks = jax.random.split(key, 22)

    def w(k, shape, scale=0.1):
        return jax.random.normal(k, shape, jnp.float32) * scale

    return {
        "gn_w": jnp.ones((1, N), jnp.float32),
        "gn_b": jnp.zeros((1, N), jnp.float32),
        # BiLSTM (weights pre-transposed to (in, out); bias = b_ih + b_hh)
        "wih_f": w(ks[0], (N, 4 * H)), "whh_f": w(ks[1], (H, 4 * H)), "b_f": w(ks[2], (1, 4 * H)),
        "wih_b": w(ks[3], (N, 4 * H)), "whh_b": w(ks[4], (H, 4 * H)), "b_b": w(ks[5], (1, 4 * H)),
        # fc = MLP(2H, H, N) + GLU(N)
        "fc1_w": w(ks[6], (2 * H, H)), "fc1_b": w(ks[7], (1, H)),
        "fc2_w": w(ks[8], (H, N)), "fc2_b": w(ks[9], (1, N)),
        "glu_w": w(ks[10], (N, 2 * N)), "glu_b": w(ks[11], (1, 2 * N)),
        # CAM
        "m1_w": w(ks[12], (N, M)), "m1_b": w(ks[13], (1, M)),
        "m2_w": w(ks[14], (M, N)), "m2_b": w(ks[15], (1, N)),
        "cg_w": w(ks[16], (N, 2 * N)), "cg_b": w(ks[17], (1, 2 * N)),
        "tr_w": w(ks[18], (N, N)), "tr_b": w(ks[19], (1, N)),
        # SAM Conv1d(2, 1, 7, padding=3)
        "sam_w": w(ks[20], (2, 7)), "sam_b": w(ks[21], (1, 1)),
    }


def pack_rnn_module_params(p):
    """Convert natural params to the kernel layout: bf16 matmul weights (f32 acc),
    concatenated fwd/bwd input projection, split fc1, f32 biases/GN/SAM."""
    bf16 = jnp.bfloat16
    f32 = jnp.float32
    H = p["whh_f"].shape[0]
    return {
        "gn_w": p["gn_w"].astype(f32), "gn_b": p["gn_b"].astype(f32),
        "wih": jnp.concatenate([p["wih_f"], p["wih_b"]], axis=1).astype(bf16),   # (N, 8H)
        "b_ih": jnp.concatenate([p["b_f"], p["b_b"]], axis=1).astype(f32),       # (1, 8H)
        "whh_f": p["whh_f"].astype(bf16), "whh_b": p["whh_b"].astype(bf16),
        "fc1w_f": p["fc1_w"][:H].astype(bf16), "fc1w_b": p["fc1_w"][H:].astype(bf16),
        "fc1_b": p["fc1_b"].astype(f32),
        "fc2_w": p["fc2_w"].astype(bf16), "fc2_b": p["fc2_b"].astype(f32),
        "glu_w": p["glu_w"].astype(bf16), "glu_b": p["glu_b"].astype(f32),
        "m1_w": p["m1_w"].astype(bf16), "m1_b": p["m1_b"].astype(f32),
        "m2_w": p["m2_w"].astype(bf16), "m2_b": p["m2_b"].astype(f32),
        "cg_w": p["cg_w"].astype(bf16), "cg_b": p["cg_b"].astype(f32),
        "tr_w": p["tr_w"].astype(bf16), "tr_b": p["tr_b"].astype(f32),
        "sam_w": p["sam_w"].astype(f32), "sam_b": p["sam_b"].astype(f32),
    }


if __name__ == "__main__":
    # Small shapes consistent with the module's forward contract.
    B, K, T, N = 2, 4, 16, 16       # batch, k_subbands, time, n_features
    H, MLP_DIM = 32, 32             # hidden_dim_size, mlp_dim
    NUM_LAYERS = 2                  # num_layers (12 in the default ctor; small here)

    key = jax.random.PRNGKey(0)
    kx, kp = jax.random.split(key)
    x = jax.random.normal(kx, (B, K, T, N), jnp.float32)

    layer_keys = jax.random.split(kp, NUM_LAYERS * 2)
    layers_params = [
        (pack_rnn_module_params(init_rnn_module_params(layer_keys[2 * i], N, H, MLP_DIM)),
         pack_rnn_module_params(init_rnn_module_params(layer_keys[2 * i + 1], N, H, MLP_DIM)))
        for i in range(NUM_LAYERS)
    ]

    fwd = jax.jit(band_sequence_model)
    out = jax.block_until_ready(fwd(x, layers_params))
    assert out.shape == (B, K, T, N)
    assert bool(jnp.all(jnp.isfinite(out)))
    print("KERNEL_OK")
</pallas_src>

<mosaic_0001>
module attributes {stable_mosaic.version = 11 : i64} {
  func.func @_rnn_module_kernel(%arg0: i32, %arg1: memref<4x16x16xf32, #tpu.memory_space<vmem>>, %arg2: memref<1x16xf32, #tpu.memory_space<vmem>>, %arg3: memref<1x16xf32, #tpu.memory_space<vmem>>, %arg4: memref<16x256xbf16, #tpu.memory_space<vmem>>, %arg5: memref<1x256xf32, #tpu.memory_space<vmem>>, %arg6: memref<32x128xbf16, #tpu.memory_space<vmem>>, %arg7: memref<32x128xbf16, #tpu.memory_space<vmem>>, %arg8: memref<32x32xbf16, #tpu.memory_space<vmem>>, %arg9: memref<32x32xbf16, #tpu.memory_space<vmem>>, %arg10: memref<1x32xf32, #tpu.memory_space<vmem>>, %arg11: memref<32x16xbf16, #tpu.memory_space<vmem>>, %arg12: memref<1x16xf32, #tpu.memory_space<vmem>>, %arg13: memref<16x32xbf16, #tpu.memory_space<vmem>>, %arg14: memref<1x32xf32, #tpu.memory_space<vmem>>, %arg15: memref<16x32xbf16, #tpu.memory_space<vmem>>, %arg16: memref<1x32xf32, #tpu.memory_space<vmem>>, %arg17: memref<32x16xbf16, #tpu.memory_space<vmem>>, %arg18: memref<1x16xf32, #tpu.memory_space<vmem>>, %arg19: memref<16x32xbf16, #tpu.memory_space<vmem>>, %arg20: memref<1x32xf32, #tpu.memory_space<vmem>>, %arg21: memref<16x16xbf16, #tpu.memory_space<vmem>>, %arg22: memref<1x16xf32, #tpu.memory_space<vmem>>, %arg23: memref<2x7xf32, #tpu.memory_space<smem>>, %arg24: memref<1x1xf32, #tpu.memory_space<smem>>, %arg25: memref<4x16x16xf32, #tpu.memory_space<vmem>>, %arg26: memref<4x16x16xbf16, #tpu.memory_space<vmem>>, %arg27: memref<4x16x128xf32, #tpu.memory_space<vmem>>, %arg28: memref<4x16x128xf32, #tpu.memory_space<vmem>>, %arg29: memref<4x16x32xbf16, #tpu.memory_space<vmem>>, %arg30: memref<4x16x32xbf16, #tpu.memory_space<vmem>>, %arg31: memref<16x32xf32, #tpu.memory_space<vmem>>, %arg32: memref<16x32xf32, #tpu.memory_space<vmem>>, %arg33: memref<16x32xf32, #tpu.memory_space<vmem>>, %arg34: memref<16x32xf32, #tpu.memory_space<vmem>>) attributes {dimension_semantics = [#tpu.dimension_semantics<parallel>], iteration_bounds = array<i64: 2>, scalar_prefetch = 0 : i64, scratch_operands = 9 : i64, tpu.core_type = #tpu.core_type<tc>, window_params = [{transform_indices = @transform_0, window_bounds = array<i64: 4, 16, 16>}, {pipeline_mode = #tpu.pipeline_mode<synchronous>, transform_indices = @transform_1, window_bounds = array<i64: 1, 16>}, {pipeline_mode = #tpu.pipeline_mode<synchronous>, transform_indices = @transform_2, window_bounds = array<i64: 1, 16>}, {pipeline_mode = #tpu.pipeline_mode<synchronous>, transform_indices = @transform_3, window_bounds = array<i64: 16, 256>}, {pipeline_mode = #tpu.pipeline_mode<synchronous>, transform_indices = @transform_4, window_bounds = array<i64: 1, 256>}, {pipeline_mode = #tpu.pipeline_mode<synchronous>, transform_indices = @transform_5, window_bounds = array<i64: 32, 128>}, {pipeline_mode = #tpu.pipeline_mode<synchronous>, transform_indices = @transform_6, window_bounds = array<i64: 32, 128>}, {pipeline_mode = #tpu.pipeline_mode<synchronous>, transform_indices = @transform_7, window_bounds = array<i64: 32, 32>}, {pipeline_mode = #tpu.pipeline_mode<synchronous>, transform_indices = @transform_8, window_bounds = array<i64: 32, 32>}, {pipeline_mode = #tpu.pipeline_mode<synchronous>, transform_indices = @transform_9, window_bounds = array<i64: 1, 32>}, {pipeline_mode = #tpu.pipeline_mode<synchronous>, transform_indices = @transform_10, window_bounds = array<i64: 32, 16>}, {pipeline_mode = #tpu.pipeline_mode<synchronous>, transform_indices = @transform_11, window_bounds = array<i64: 1, 16>}, {pipeline_mode = #tpu.pipeline_mode<synchronous>, transform_indices = @transform_12, window_bounds = array<i64: 16, 32>}, {pipeline_mode = #tpu.pipeline_mode<synchronous>, transform_indices = @transform_13, window_bounds = array<i64: 1, 32>}, {pipeline_mode = #tpu.pipeline_mode<synchronous>, transform_indices = @transform_14, window_bounds = array<i64: 16, 32>}, {pipeline_mode = #tpu.pipeline_mode<synchronous>, transform_indices = @transform_15, window_bounds = array<i64: 1, 32>}, {pipeline_mode = #tpu.pipeline_mode<synchronous>, transform_indices = @transform_16, window_bounds = array<i64: 32, 16>}, {pipeline_mode = #tpu.pipeline_mode<synchronous>, transform_indices = @transform_17, window_bounds = array<i64: 1, 16>}, {pipeline_mode = #tpu.pipeline_mode<synchronous>, transform_indices = @transform_18, window_bounds = array<i64: 16, 32>}, {pipeline_mode = #tpu.pipeline_mode<synchronous>, transform_indices = @transform_19, window_bounds = array<i64: 1, 32>}, {pipeline_mode = #tpu.pipeline_mode<synchronous>, transform_indices = @transform_20, window_bounds = array<i64: 16, 16>}, {pipeline_mode = #tpu.pipeline_mode<synchronous>, transform_indices = @transform_21, window_bounds = array<i64: 1, 16>}, {transform_indices = @transform_22, window_bounds = array<i64: 2, 7>}, {transform_indices = @transform_23, window_bounds = array<i64: 1, 1>}, {transform_indices = @transform_24, window_bounds = array<i64: 4, 16, 16>}]} {
    %c0 = arith.constant 0 : index
    %c0_0 = arith.constant 0 : index
    %c0_1 = arith.constant 0 : index
    %0 = vector.load %arg1[%c0, %c0_0, %c0_1] : memref<4x16x16xf32, #tpu.memory_space<vmem>>, vector<4x16x16xf32>
    %cst = arith.constant dense<0.000000e+00> : vector<16x16xf32>
    %1 = vector.multi_reduction <add>, %0, %cst [0] : vector<4x16x16xf32> to vector<16x16xf32>
    %2 = vector.shape_cast %1 : vector<16x16xf32> to vector<1x16x16xf32>
    %cst_2 = arith.constant 4.000000e+00 : f32
    %3 = vector.broadcast %cst_2 : f32 to vector<1x16x16xf32>
    %4 = arith.divf %2, %3 : vector<1x16x16xf32>
    %5 = vector.broadcast %4 : vector<1x16x16xf32> to vector<4x16x16xf32>
    %6 = arith.subf %0, %5 : vector<4x16x16xf32>
    %7 = arith.mulf %6, %6 : vector<4x16x16xf32>
    %cst_3 = arith.constant dense<0.000000e+00> : vector<16x16xf32>
    %8 = vector.multi_reduction <add>, %7, %cst_3 [0] : vector<4x16x16xf32> to vector<16x16xf32>
    %9 = vector.shape_cast %8 : vector<16x16xf32> to vector<1x16x16xf32>
    %cst_4 = arith.constant 4.000000e+00 : f32
    %10 = vector.broadcast %cst_4 : f32 to vector<1x16x16xf32>
    %11 = arith.divf %9, %10 : vector<1x16x16xf32>
    %12 = vector.broadcast %4 : vector<1x16x16xf32> to vector<4x16x16xf32>
    %13 = arith.subf %0, %12 : vector<4x16x16xf32>
    %cst_5 = arith.constant 9.99999974E-6 : f32
    %14 = vector.broadcast %cst_5 : f32 to vector<1x16x16xf32>
    %15 = arith.addf %11, %14 : vector<1x16x16xf32>
    %16 = math.rsqrt %15 : vector<1x16x16xf32>
    %17 = vector.broadcast %16 : vector<1x16x16xf32> to vector<4x16x16xf32>
    %18 = arith.mulf %13, %17 : vector<4x16x16xf32>
    %c0_6 = arith.constant 0 : index
    %c0_7 = arith.constant 0 : index
    %19 = vector.load %arg2[%c0_6, %c0_7] : memref<1x16xf32, #tpu.memory_space<vmem>>, vector<1x16xf32>
    %20 = vector.shape_cast %19 : vector<1x16xf32> to vector<1x1x16xf32>
    %21 = vector.broadcast %20 : vector<1x1x16xf32> to vector<4x16x16xf32>
    %22 = arith.mulf %18, %21 : vector<4x16x16xf32>
    %c0_8 = arith.constant 0 : index
    %c0_9 = arith.constant 0 : index
    %23 = vector.load %arg3[%c0_8, %c0_9] : memref<1x16xf32, #tpu.memory_space<vmem>>, vector<1x16xf32>
    %24 = vector.shape_cast %23 : vector<1x16xf32> to vector<1x1x16xf32>
    %25 = vector.broadcast %24 : vector<1x1x16xf32> to vector<4x16x16xf32>
    %26 = arith.addf %22, %25 : vector<4x16x16xf32>
    %27 = arith.truncf %26 : vector<4x16x16xf32> to vector<4x16x16xbf16>
    %c0_10 = arith.constant 0 : index
    %c0_11 = arith.constant 0 : index
    %c0_12 = arith.constant 0 : index
    %28 = vector.load %arg26[%c0_10, %c0_11, %c0_12] : memref<4x16x16xbf16, #tpu.memory_space<vmem>>, vector<4x16x16xbf16>
    tpu.vector_store %arg26[%c0_10, %c0_11, %c0_12], %27 {strides = array<i32>} : memref<4x16x16xbf16, #tpu.memory_space<vmem>>, vector<4x16x16xbf16>,
    %c0_13 = arith.constant 0 : index
    %c0_14 = arith.constant 0 : index
    %c0_15 = arith.constant 0 : index
    %29 = vector.load %arg26[%c0_13, %c0_14, %c0_15] : memref<4x16x16xbf16, #tpu.memory_space<vmem>>, vector<4x16x16xbf16>
    %30 = vector.shape_cast %29 : vector<4x16x16xbf16> to vector<64x16xbf16>
    %c0_16 = arith.constant 0 : index
    %c0_17 = arith.constant 0 : index
    %31 = vector.load %arg4[%c0_16, %c0_17] : memref<16x256xbf16, #tpu.memory_space<vmem>>, vector<16x256xbf16>
    %cst_18 = arith.constant dense<0.000000e+00> : vector<64x256xf32>
    %32 = tpu.matmul %30, %31, %cst_18 {dimension_numbers = #tpu.dot_dimension_numbers<[1], [0], [0], [1], [0, 0, 1, 1], [], []>} : vector<64x16xbf16>, vector<16x256xbf16>, vector<64x256xf32> -> vector<64x256xf32>
    %c0_19 = arith.constant 0 : index
    %c0_20 = arith.constant 0 : index
    %33 = vector.load %arg5[%c0_19, %c0_20] : memref<1x256xf32, #tpu.memory_space<vmem>>, vector<1x256xf32>
    %34 = vector.broadcast %33 : vector<1x256xf32> to vector<64x256xf32>
    %35 = arith.addf %32, %34 : vector<64x256xf32>
    %36 = vector.extract_strided_slice %35 {offsets = [0, 0], sizes = [64, 128], strides = [1, 1]} : vector<64x256xf32> to vector<64x128xf32>
    %37 = vector.shape_cast %36 : vector<64x128xf32> to vector<4x16x128xf32>
    %c0_21 = arith.constant 0 : index
    %c0_22 = arith.constant 0 : index
    %c0_23 = arith.constant 0 : index
    %38 = vector.load %arg27[%c0_21, %c0_22, %c0_23] : memref<4x16x128xf32, #tpu.memory_space<vmem>>, vector<4x16x128xf32>
    tpu.vector_store %arg27[%c0_21, %c0_22, %c0_23], %37 {strides = array<i32>} : memref<4x16x128xf32, #tpu.memory_space<vmem>>, vector<4x16x128xf32>,
    %39 = vector.extract_strided_slice %35 {offsets = [0, 128], sizes = [64, 128], strides = [1, 1]} : vector<64x256xf32> to vector<64x128xf32>
    %40 = vector.shape_cast %39 : vector<64x128xf32> to vector<4x16x128xf32>
    %c0_24 = arith.constant 0 : index
    %c0_25 = arith.constant 0 : index
    %c0_26 = arith.constant 0 : index
    %41 = vector.load %arg28[%c0_24, %c0_25, %c0_26] : memref<4x16x128xf32, #tpu.memory_space<vmem>>, vector<4x16x128xf32>
    tpu.vector_store %arg28[%c0_24, %c0_25, %c0_26], %40 {strides = array<i32>} : memref<4x16x128xf32, #tpu.memory_space<vmem>>, vector<4x16x128xf32>,
    %c0_27 = arith.constant 0 : index
    %c0_28 = arith.constant 0 : index
    %42 = vector.load %arg6[%c0_27, %c0_28] : memref<32x128xbf16, #tpu.memory_space<vmem>>, vector<32x128xbf16>
    %c0_29 = arith.constant 0 : index
    %c0_30 = arith.constant 0 : index
    %43 = vector.load %arg7[%c0_29, %c0_30] : memref<32x128xbf16, #tpu.memory_space<vmem>>, vector<32x128xbf16>
    %cst_31 = arith.constant 0.000000e+00 : f32
    %44 = vector.broadcast %cst_31 : f32 to vector<16x32xf32>
    %c0_32 = arith.constant 0 : index
    %c0_33 = arith.constant 0 : index
    %45 = vector.load %arg31[%c0_32, %c0_33] : memref<16x32xf32, #tpu.memory_space<vmem>>, vector<16x32xf32>
    tpu.vector_store %arg31[%c0_32, %c0_33], %44 {strides = array<i32>} : memref<16x32xf32, #tpu.memory_space<vmem>>, vector<16x32xf32>,
    %cst_34 = arith.constant 0.000000e+00 : f32
    %46 = vector.broadcast %cst_34 : f32 to vector<16x32xf32>
    %c0_35 = arith.constant 0 : index
    %c0_36 = arith.constant 0 : index
    %47 = vector.load %arg32[%c0_35, %c0_36] : memref<16x32xf32, #tpu.memory_space<vmem>>, vector<16x32xf32>
    tpu.vector_store %arg32[%c0_35, %c0_36], %46 {strides = array<i32>} : memref<16x32xf32, #tpu.memory_space<vmem>>, vector<16x32xf32>,
    %cst_37 = arith.constant 0.000000e+00 : f32
    %48 = vector.broadcast %cst_37 : f32 to vector<16x32xf32>
    %c0_38 = arith.constant 0 : index
    %c0_39 = arith.constant 0 : index
    %49 = vector.load %arg33[%c0_38, %c0_39] : memref<16x32xf32, #tpu.memory_space<vmem>>, vector<16x32xf32>
    tpu.vector_store %arg33[%c0_38, %c0_39], %48 {strides = array<i32>} : memref<16x32xf32, #tpu.memory_space<vmem>>, vector<16x32xf32>,
    %cst_40 = arith.constant 0.000000e+00 : f32
    %50 = vector.broadcast %cst_40 : f32 to vector<16x32xf32>
    %c0_41 = arith.constant 0 : index
    %c0_42 = arith.constant 0 : index
    %51 = vector.load %arg34[%c0_41, %c0_42] : memref<16x32xf32, #tpu.memory_space<vmem>>, vector<16x32xf32>
    tpu.vector_store %arg34[%c0_41, %c0_42], %50 {strides = array<i32>} : memref<16x32xf32, #tpu.memory_space<vmem>>, vector<16x32xf32>,
    %c0_i32 = arith.constant 0 : i32
    %c4_i32 = arith.constant 4 : i32
    %52 = arith.addi %c0_i32, %c4_i32 : i32
    %c1_i32 = arith.constant 1 : i32
    scf.for %arg35 = %c0_i32 to %52 step %c1_i32  : i32 {
      %c1_i32_141 = arith.constant 1 : i32
      %236 = arith.muli %arg35, %c1_i32_141 : i32
      %c0_i32_142 = arith.constant 0 : i32
      %237 = arith.addi %c0_i32_142, %236 : i32
      %c3_i32 = arith.constant 3 : i32
      %238 = arith.subi %c3_i32, %237 : i32
      %239 = arith.index_cast %237 : i32 to index
      %c0_143 = arith.constant 0 : index
      %c0_144 = arith.constant 0 : index
      %240 = vector.load %arg27[%239, %c0_143, %c0_144] : memref<4x16x128xf32, #tpu.memory_space<vmem>>, vector<1x16x128xf32>
      %241 = vector.shape_cast %240 : vector<1x16x128xf32> to vector<16x128xf32>
      %c0_145 = arith.constant 0 : index
      %c0_146 = arith.constant 0 : index
      %242 = vector.load %arg31[%c0_145, %c0_146] : memref<16x32xf32, #tpu.memory_space<vmem>>, vector<16x32xf32>
      %c0_147 = arith.constant 0 : index
      %c0_148 = arith.constant 0 : index
      %243 = vector.load %arg32[%c0_147, %c0_148] : memref<16x32xf32, #tpu.memory_space<vmem>>, vector<16x32xf32>
      %244 = arith.truncf %242 : vector<16x32xf32> to vector<16x32xbf16>
      %cst_149 = arith.constant dense<0.000000e+00> : vector<16x128xf32>
      %245 = tpu.matmul %244, %42, %cst_149 {dimension_numbers = #tpu.dot_dimension_numbers<[1], [0], [0], [1], [0, 0, 1, 1], [], []>} : vector<16x32xbf16>, vector<32x128xbf16>, vector<16x128xf32> -> vector<16x128xf32>
      %246 = arith.addf %241, %245 : vector<16x128xf32>
      %247 = vector.extract_strided_slice %246 {offsets = [0, 0], sizes = [16, 32], strides = [1, 1]} : vector<16x128xf32> to vector<16x32xf32>
      %248 = arith.negf %247 : vector<16x32xf32>
      %249 = math.exp %248 : vector<16x32xf32>
      %cst_150 = arith.constant 1.000000e+00 : f32
      %250 = vector.broadcast %cst_150 : f32 to vector<16x32xf32>
      %251 = arith.addf %250, %249 : vector<16x32xf32>
      %252 = arith.divf %250, %251 : vector<16x32xf32>
      %253 = vector.extract_strided_slice %246 {offsets = [0, 32], sizes = [16, 32], strides = [1, 1]} : vector<16x128xf32> to vector<16x32xf32>
      %254 = arith.negf %253 : vector<16x32xf32>
      %255 = math.exp %254 : vector<16x32xf32>
      %cst_151 = arith.constant 1.000000e+00 : f32
      %256 = vector.broadcast %cst_151 : f32 to vector<16x32xf32>
      %257 = arith.addf %256, %255 : vector<16x32xf32>
      %258 = arith.divf %256, %257 : vector<16x32xf32>
      %259 = vector.extract_strided_slice %246 {offsets = [0, 64], sizes = [16, 32], strides = [1, 1]} : vector<16x128xf32> to vector<16x32xf32>
      %260 = math.tanh %259 : vector<16x32xf32>
      %261 = vector.extract_strided_slice %246 {offsets = [0, 96], sizes = [16, 32], strides = [1, 1]} : vector<16x128xf32> to vector<16x32xf32>
      %262 = arith.negf %261 : vector<16x32xf32>
      %263 = math.exp %262 : vector<16x32xf32>
      %cst_152 = arith.constant 1.000000e+00 : f32
      %264 = vector.broadcast %cst_152 : f32 to vector<16x32xf32>
      %265 = arith.addf %264, %263 : vector<16x32xf32>
      %266 = arith.divf %264, %265 : vector<16x32xf32>
      %267 = arith.mulf %258, %243 : vector<16x32xf32>
      %268 = arith.mulf %252, %260 : vector<16x32xf32>
      %269 = arith.addf %267, %268 : vector<16x32xf32>
      %270 = math.tanh %269 : vector<16x32xf32>
      %271 = arith.mulf %266, %270 : vector<16x32xf32>
      %272 = arith.index_cast %238 : i32 to index
      %c0_153 = arith.constant 0 : index
      %c0_154 = arith.constant 0 : index
      %273 = vector.load %arg28[%272, %c0_153, %c0_154] : memref<4x16x128xf32, #tpu.memory_space<vmem>>, vector<1x16x128xf32>
      %274 = vector.shape_cast %273 : vector<1x16x128xf32> to vector<16x128xf32>
      %c0_155 = arith.constant 0 : index
      %c0_156 = arith.constant 0 : index
      %275 = vector.load %arg33[%c0_155, %c0_156] : memref<16x32xf32, #tpu.memory_space<vmem>>, vector<16x32xf32>
      %c0_157 = arith.constant 0 : index
      %c0_158 = arith.constant 0 : index
      %276 = vector.load %arg34[%c0_157, %c0_158] : memref<16x32xf32, #tpu.memory_space<vmem>>, vector<16x32xf32>
      %277 = arith.truncf %275 : vector<16x32xf32> to vector<16x32xbf16>
      %cst_159 = arith.constant dense<0.000000e+00> : vector<16x128xf32>
      %278 = tpu.matmul %277, %43, %cst_159 {dimension_numbers = #tpu.dot_dimension_numbers<[1], [0], [0], [1], [0, 0, 1, 1], [], []>} : vector<16x32xbf16>, vector<32x128xbf16>, vector<16x128xf32> -> vector<16x128xf32>
      %279 = arith.addf %274, %278 : vector<16x128xf32>
      %280 = vector.extract_strided_slice %279 {offsets = [0, 0], sizes = [16, 32], strides = [1, 1]} : vector<16x128xf32> to vector<16x32xf32>
      %281 = arith.negf %280 : vector<16x32xf32>
      %282 = math.exp %281 : vector<16x32xf32>
      %cst_160 = arith.constant 1.000000e+00 : f32
      %283 = vector.broadcast %cst_160 : f32 to vector<16x32xf32>
      %284 = arith.addf %283, %282 : vector<16x32xf32>
      %285 = arith.divf %283, %284 : vector<16x32xf32>
      %286 = vector.extract_strided_slice %279 {offsets = [0, 32], sizes = [16, 32], strides = [1, 1]} : vector<16x128xf32> to vector<16x32xf32>
      %287 = arith.negf %286 : vector<16x32xf32>
      %288 = math.exp %287 : vector<16x32xf32>
      %cst_161 = arith.constant 1.000000e+00 : f32
      %289 = vector.broadcast %cst_161 : f32 to vector<16x32xf32>
      %290 = arith.addf %289, %288 : vector<16x32xf32>
      %291 = arith.divf %289, %290 : vector<16x32xf32>
      %292 = vector.extract_strided_slice %279 {offsets = [0, 64], sizes = [16, 32], strides = [1, 1]} : vector<16x128xf32> to vector<16x32xf32>
      %293 = math.tanh %292 : vector<16x32xf32>
      %294 = vector.extract_strided_slice %279 {offsets = [0, 96], sizes = [16, 32], strides = [1, 1]} : vector<16x128xf32> to vector<16x32xf32>
      %295 = arith.negf %294 : vector<16x32xf32>
      %296 = math.exp %295 : vector<16x32xf32>
      %cst_162 = arith.constant 1.000000e+00 : f32
      %297 = vector.broadcast %cst_162 : f32 to vector<16x32xf32>
      %298 = arith.addf %297, %296 : vector<16x32xf32>
      %299 = arith.divf %297, %298 : vector<16x32xf32>
      %300 = arith.mulf %291, %276 : vector<16x32xf32>
      %301 = arith.mulf %285, %293 : vector<16x32xf32>
      %302 = arith.addf %300, %301 : vector<16x32xf32>
      %303 = math.tanh %302 : vector<16x32xf32>
      %304 = arith.mulf %299, %303 : vector<16x32xf32>
      %c0_163 = arith.constant 0 : index
      %c0_164 = arith.constant 0 : index
      %305 = vector.load %arg31[%c0_163, %c0_164] : memref<16x32xf32, #tpu.memory_space<vmem>>, vector<16x32xf32>
      tpu.vector_store %arg31[%c0_163, %c0_164], %271 {strides = array<i32>} : memref<16x32xf32, #tpu.memory_space<vmem>>, vector<16x32xf32>,
      %c0_165 = arith.constant 0 : index
      %c0_166 = arith.constant 0 : index
      %306 = vector.load %arg32[%c0_165, %c0_166] : memref<16x32xf32, #tpu.memory_space<vmem>>, vector<16x32xf32>
      tpu.vector_store %arg32[%c0_165, %c0_166], %269 {strides = array<i32>} : memref<16x32xf32, #tpu.memory_space<vmem>>, vector<16x32xf32>,
      %c0_167 = arith.constant 0 : index
      %c0_168 = arith.constant 0 : index
      %307 = vector.load %arg33[%c0_167, %c0_168] : memref<16x32xf32, #tpu.memory_space<vmem>>, vector<16x32xf32>
      tpu.vector_store %arg33[%c0_167, %c0_168], %304 {strides = array<i32>} : memref<16x32xf32, #tpu.memory_space<vmem>>, vector<16x32xf32>,
      %c0_169 = arith.constant 0 : index
      %c0_170 = arith.constant 0 : index
      %308 = vector.load %arg34[%c0_169, %c0_170] : memref<16x32xf32, #tpu.memory_space<vmem>>, vector<16x32xf32>
      tpu.vector_store %arg34[%c0_169, %c0_170], %302 {strides = array<i32>} : memref<16x32xf32, #tpu.memory_space<vmem>>, vector<16x32xf32>,
      %309 = arith.truncf %271 : vector<16x32xf32> to vector<16x32xbf16>
      %310 = arith.index_cast %237 : i32 to index
      %c0_171 = arith.constant 0 : index
      %c0_172 = arith.constant 0 : index
      %311 = vector.load %arg29[%310, %c0_171, %c0_172] : memref<4x16x32xbf16, #tpu.memory_space<vmem>>, vector<1x16x32xbf16>
      %312 = vector.shape_cast %311 : vector<1x16x32xbf16> to vector<16x32xbf16>
      %313 = vector.shape_cast %309 : vector<16x32xbf16> to vector<1x16x32xbf16>
      tpu.vector_store %arg29[%310, %c0_171, %c0_172], %313 {strides = array<i32>} : memref<4x16x32xbf16, #tpu.memory_space<vmem>>, vector<1x16x32xbf16>,
      %314 = arith.truncf %304 : vector<16x32xf32> to vector<16x32xbf16>
      %315 = arith.index_cast %238 : i32 to index
      %c0_173 = arith.constant 0 : index
      %c0_174 = arith.constant 0 : index
      %316 = vector.load %arg30[%315, %c0_173, %c0_174] : memref<4x16x32xbf16, #tpu.memory_space<vmem>>, vector<1x16x32xbf16>
      %317 = vector.shape_cast %316 : vector<1x16x32xbf16> to vector<16x32xbf16>
      %318 = vector.shape_cast %314 : vector<16x32xbf16> to vector<1x16x32xbf16>
      tpu.vector_store %arg30[%315, %c0_173, %c0_174], %318 {strides = array<i32>} : memref<4x16x32xbf16, #tpu.memory_space<vmem>>, vector<1x16x32xbf16>,
    }
    %c4_i32_43 = arith.constant 4 : i32
    %c0_44 = arith.constant 0 : index
    %c0_45 = arith.constant 0 : index
    %c0_46 = arith.constant 0 : index
    %53 = vector.load %arg29[%c0_44, %c0_45, %c0_46] : memref<4x16x32xbf16, #tpu.memory_space<vmem>>, vector<4x16x32xbf16>
    %54 = vector.shape_cast %53 : vector<4x16x32xbf16> to vector<64x32xbf16>
    %c0_47 = arith.constant 0 : index
    %c0_48 = arith.constant 0 : index
    %c0_49 = arith.constant 0 : index
    %55 = vector.load %arg30[%c0_47, %c0_48, %c0_49] : memref<4x16x32xbf16, #tpu.memory_space<vmem>>, vector<4x16x32xbf16>
    %56 = vector.shape_cast %55 : vector<4x16x32xbf16> to vector<64x32xbf16>
    %c0_50 = arith.constant 0 : index
    %c0_51 = arith.constant 0 : index
    %57 = vector.load %arg8[%c0_50, %c0_51] : memref<32x32xbf16, #tpu.memory_space<vmem>>, vector<32x32xbf16>
    %cst_52 = arith.constant dense<0.000000e+00> : vector<64x32xf32>
    %58 = tpu.matmul %54, %57, %cst_52 {dimension_numbers = #tpu.dot_dimension_numbers<[1], [0], [0], [1], [0, 0, 1, 1], [], []>} : vector<64x32xbf16>, vector<32x32xbf16>, vector<64x32xf32> -> vector<64x32xf32>
    %c0_53 = arith.constant 0 : index
    %c0_54 = arith.constant 0 : index
    %59 = vector.load %arg9[%c0_53, %c0_54] : memref<32x32xbf16, #tpu.memory_space<vmem>>, vector<32x32xbf16>
    %cst_55 = arith.constant dense<0.000000e+00> : vector<64x32xf32>
    %60 = tpu.matmul %56, %59, %cst_55 {dimension_numbers = #tpu.dot_dimension_numbers<[1], [0], [0], [1], [0, 0, 1, 1], [], []>} : vector<64x32xbf16>, vector<32x32xbf16>, vector<64x32xf32> -> vector<64x32xf32>
    %61 = arith.addf %58, %60 : vector<64x32xf32>
    %c0_56 = arith.constant 0 : index
    %c0_57 = arith.constant 0 : index
    %62 = vector.load %arg10[%c0_56, %c0_57] : memref<1x32xf32, #tpu.memory_space<vmem>>, vector<1x32xf32>
    %63 = vector.broadcast %62 : vector<1x32xf32> to vector<64x32xf32>
    %64 = arith.addf %61, %63 : vector<64x32xf32>
    %65 = math.tanh %64 : vector<64x32xf32>
    %66 = arith.truncf %65 : vector<64x32xf32> to vector<64x32xbf16>
    %c0_58 = arith.constant 0 : index
    %c0_59 = arith.constant 0 : index
    %67 = vector.load %arg11[%c0_58, %c0_59] : memref<32x16xbf16, #tpu.memory_space<vmem>>, vector<32x16xbf16>
    %cst_60 = arith.constant dense<0.000000e+00> : vector<64x16xf32>
    %68 = tpu.matmul %66, %67, %cst_60 {dimension_numbers = #tpu.dot_dimension_numbers<[1], [0], [0], [1], [0, 0, 1, 1], [], []>} : vector<64x32xbf16>, vector<32x16xbf16>, vector<64x16xf32> -> vector<64x16xf32>
    %c0_61 = arith.constant 0 : index
    %c0_62 = arith.constant 0 : index
    %69 = vector.load %arg12[%c0_61, %c0_62] : memref<1x16xf32, #tpu.memory_space<vmem>>, vector<1x16xf32>
    %70 = vector.broadcast %69 : vector<1x16xf32> to vector<64x16xf32>
    %71 = arith.addf %68, %70 : vector<64x16xf32>
    %72 = arith.truncf %71 : vector<64x16xf32> to vector<64x16xbf16>
    %c0_63 = arith.constant 0 : index
    %c0_64 = arith.constant 0 : index
    %73 = vector.load %arg13[%c0_63, %c0_64] : memref<16x32xbf16, #tpu.memory_space<vmem>>, vector<16x32xbf16>
    %cst_65 = arith.constant dense<0.000000e+00> : vector<64x32xf32>
    %74 = tpu.matmul %72, %73, %cst_65 {dimension_numbers = #tpu.dot_dimension_numbers<[1], [0], [0], [1], [0, 0, 1, 1], [], []>} : vector<64x16xbf16>, vector<16x32xbf16>, vector<64x32xf32> -> vector<64x32xf32>
    %c0_66 = arith.constant 0 : index
    %c0_67 = arith.constant 0 : index
    %75 = vector.load %arg14[%c0_66, %c0_67] : memref<1x32xf32, #tpu.memory_space<vmem>>, vector<1x32xf32>
    %76 = vector.broadcast %75 : vector<1x32xf32> to vector<64x32xf32>
    %77 = arith.addf %74, %76 : vector<64x32xf32>
    %78 = vector.extract_strided_slice %77 {offsets = [0, 0], sizes = [64, 16], strides = [1, 1]} : vector<64x32xf32> to vector<64x16xf32>
    %79 = vector.extract_strided_slice %77 {offsets = [0, 16], sizes = [64, 16], strides = [1, 1]} : vector<64x32xf32> to vector<64x16xf32>
    %80 = arith.negf %79 : vector<64x16xf32>
    %81 = math.exp %80 : vector<64x16xf32>
    %cst_68 = arith.constant 1.000000e+00 : f32
    %82 = vector.broadcast %cst_68 : f32 to vector<64x16xf32>
    %83 = arith.addf %82, %81 : vector<64x16xf32>
    %84 = arith.divf %82, %83 : vector<64x16xf32>
    %85 = arith.mulf %78, %84 : vector<64x16xf32>
    %86 = vector.shape_cast %85 : vector<64x16xf32> to vector<4x16x16xf32>
    %cst_69 = arith.constant dense<0.000000e+00> : vector<16x16xf32>
    %87 = vector.multi_reduction <add>, %86, %cst_69 [0] : vector<4x16x16xf32> to vector<16x16xf32>
    %cst_70 = arith.constant 4.000000e+00 : f32
    %88 = vector.broadcast %cst_70 : f32 to vector<16x16xf32>
    %89 = arith.divf %87, %88 : vector<16x16xf32>
    %cst_71 = arith.constant dense<0xFF800000> : vector<16x16xf32>
    %90 = vector.multi_reduction <maximumf>, %86, %cst_71 [0] : vector<4x16x16xf32> to vector<16x16xf32>
    %91 = arith.truncf %89 : vector<16x16xf32> to vector<16x16xbf16>
    %c0_72 = arith.constant 0 : index
    %c0_73 = arith.constant 0 : index
    %92 = vector.load %arg15[%c0_72, %c0_73] : memref<16x32xbf16, #tpu.memory_space<vmem>>, vector<16x32xbf16>
    %cst_74 = arith.constant dense<0.000000e+00> : vector<16x32xf32>
    %93 = tpu.matmul %91, %92, %cst_74 {dimension_numbers = #tpu.dot_dimension_numbers<[1], [0], [0], [1], [0, 0, 1, 1], [], []>} : vector<16x16xbf16>, vector<16x32xbf16>, vector<16x32xf32> -> vector<16x32xf32>
    %c0_75 = arith.constant 0 : index
    %c0_76 = arith.constant 0 : index
    %94 = vector.load %arg16[%c0_75, %c0_76] : memref<1x32xf32, #tpu.memory_space<vmem>>, vector<1x32xf32>
    %95 = vector.broadcast %94 : vector<1x32xf32> to vector<16x32xf32>
    %96 = arith.addf %93, %95 : vector<16x32xf32>
    %cst_77 = arith.constant 0.000000e+00 : f32
    %97 = vector.broadcast %cst_77 : f32 to vector<16x32xf32>
    %98 = arith.maximumf %96, %97 : vector<16x32xf32>
    %99 = arith.truncf %98 : vector<16x32xf32> to vector<16x32xbf16>
    %c0_78 = arith.constant 0 : index
    %c0_79 = arith.constant 0 : index
    %100 = vector.load %arg17[%c0_78, %c0_79] : memref<32x16xbf16, #tpu.memory_space<vmem>>, vector<32x16xbf16>
    %cst_80 = arith.constant dense<0.000000e+00> : vector<16x16xf32>
    %101 = tpu.matmul %99, %100, %cst_80 {dimension_numbers = #tpu.dot_dimension_numbers<[1], [0], [0], [1], [0, 0, 1, 1], [], []>} : vector<16x32xbf16>, vector<32x16xbf16>, vector<16x16xf32> -> vector<16x16xf32>
    %c0_81 = arith.constant 0 : index
    %c0_82 = arith.constant 0 : index
    %102 = vector.load %arg18[%c0_81, %c0_82] : memref<1x16xf32, #tpu.memory_space<vmem>>, vector<1x16xf32>
    %103 = vector.broadcast %102 : vector<1x16xf32> to vector<16x16xf32>
    %104 = arith.addf %101, %103 : vector<16x16xf32>
    %105 = arith.truncf %90 : vector<16x16xf32> to vector<16x16xbf16>
    %c0_83 = arith.constant 0 : index
    %c0_84 = arith.constant 0 : index
    %106 = vector.load %arg15[%c0_83, %c0_84] : memref<16x32xbf16, #tpu.memory_space<vmem>>, vector<16x32xbf16>
    %cst_85 = arith.constant dense<0.000000e+00> : vector<16x32xf32>
    %107 = tpu.matmul %105, %106, %cst_85 {dimension_numbers = #tpu.dot_dimension_numbers<[1], [0], [0], [1], [0, 0, 1, 1], [], []>} : vector<16x16xbf16>, vector<16x32xbf16>, vector<16x32xf32> -> vector<16x32xf32>
    %c0_86 = arith.constant 0 : index
    %c0_87 = arith.constant 0 : index
    %108 = vector.load %arg16[%c0_86, %c0_87] : memref<1x32xf32, #tpu.memory_space<vmem>>, vector<1x32xf32>
    %109 = vector.broadcast %108 : vector<1x32xf32> to vector<16x32xf32>
    %110 = arith.addf %107, %109 : vector<16x32xf32>
    %cst_88 = arith.constant 0.000000e+00 : f32
    %111 = vector.broadcast %cst_88 : f32 to vector<16x32xf32>
    %112 = arith.maximumf %110, %111 : vector<16x32xf32>
    %113 = arith.truncf %112 : vector<16x32xf32> to vector<16x32xbf16>
    %c0_89 = arith.constant 0 : index
    %c0_90 = arith.constant 0 : index
    %114 = vector.load %arg17[%c0_89, %c0_90] : memref<32x16xbf16, #tpu.memory_space<vmem>>, vector<32x16xbf16>
    %cst_91 = arith.constant dense<0.000000e+00> : vector<16x16xf32>
    %115 = tpu.matmul %113, %114, %cst_91 {dimension_numbers = #tpu.dot_dimension_numbers<[1], [0], [0], [1], [0, 0, 1, 1], [], []>} : vector<16x32xbf16>, vector<32x16xbf16>, vector<16x16xf32> -> vector<16x16xf32>
    %c0_92 = arith.constant 0 : index
    %c0_93 = arith.constant 0 : index
    %116 = vector.load %arg18[%c0_92, %c0_93] : memref<1x16xf32, #tpu.memory_space<vmem>>, vector<1x16xf32>
    %117 = vector.broadcast %116 : vector<1x16xf32> to vector<16x16xf32>
    %118 = arith.addf %115, %117 : vector<16x16xf32>
    %119 = arith.addf %104, %118 : vector<16x16xf32>
    %120 = arith.truncf %119 : vector<16x16xf32> to vector<16x16xbf16>
    %c0_94 = arith.constant 0 : index
    %c0_95 = arith.constant 0 : index
    %121 = vector.load %arg19[%c0_94, %c0_95] : memref<16x32xbf16, #tpu.memory_space<vmem>>, vector<16x32xbf16>
    %cst_96 = arith.constant dense<0.000000e+00> : vector<16x32xf32>
    %122 = tpu.matmul %120, %121, %cst_96 {dimension_numbers = #tpu.dot_dimension_numbers<[1], [0], [0], [1], [0, 0, 1, 1], [], []>} : vector<16x16xbf16>, vector<16x32xbf16>, vector<16x32xf32> -> vector<16x32xf32>
    %c0_97 = arith.constant 0 : index
    %c0_98 = arith.constant 0 : index
    %123 = vector.load %arg20[%c0_97, %c0_98] : memref<1x32xf32, #tpu.memory_space<vmem>>, vector<1x32xf32>
    %124 = vector.broadcast %123 : vector<1x32xf32> to vector<16x32xf32>
    %125 = arith.addf %122, %124 : vector<16x32xf32>
    %126 = vector.extract_strided_slice %125 {offsets = [0, 0], sizes = [16, 16], strides = [1, 1]} : vector<16x32xf32> to vector<16x16xf32>
    %127 = vector.extract_strided_slice %125 {offsets = [0, 16], sizes = [16, 16], strides = [1, 1]} : vector<16x32xf32> to vector<16x16xf32>
    %128 = arith.negf %127 : vector<16x16xf32>
    %129 = math.exp %128 : vector<16x16xf32>
    %cst_99 = arith.constant 1.000000e+00 : f32
    %130 = vector.broadcast %cst_99 : f32 to vector<16x16xf32>
    %131 = arith.addf %130, %129 : vector<16x16xf32>
    %132 = arith.divf %130, %131 : vector<16x16xf32>
    %133 = arith.mulf %126, %132 : vector<16x16xf32>
    %134 = arith.truncf %85 : vector<64x16xf32> to vector<64x16xbf16>
    %c0_100 = arith.constant 0 : index
    %c0_101 = arith.constant 0 : index
    %135 = vector.load %arg21[%c0_100, %c0_101] : memref<16x16xbf16, #tpu.memory_space<vmem>>, vector<16x16xbf16>
    %cst_102 = arith.constant dense<0.000000e+00> : vector<64x16xf32>
    %136 = tpu.matmul %134, %135, %cst_102 {dimension_numbers = #tpu.dot_dimension_numbers<[1], [0], [0], [1], [0, 0, 1, 1], [], []>} : vector<64x16xbf16>, vector<16x16xbf16>, vector<64x16xf32> -> vector<64x16xf32>
    %c0_103 = arith.constant 0 : index
    %c0_104 = arith.constant 0 : index
    %137 = vector.load %arg22[%c0_103, %c0_104] : memref<1x16xf32, #tpu.memory_space<vmem>>, vector<1x16xf32>
    %138 = vector.broadcast %137 : vector<1x16xf32> to vector<64x16xf32>
    %139 = arith.addf %136, %138 : vector<64x16xf32>
    %140 = vector.shape_cast %139 : vector<64x16xf32> to vector<4x16x16xf32>
    %141 = vector.shape_cast %133 : vector<16x16xf32> to vector<1x16x16xf32>
    %142 = vector.broadcast %141 : vector<1x16x16xf32> to vector<4x16x16xf32>
    %143 = arith.mulf %140, %142 : vector<4x16x16xf32>
    %cst_105 = arith.constant dense<0.000000e+00> : vector<4x16xf32>
    %144 = vector.multi_reduction <add>, %143, %cst_105 [2] : vector<4x16x16xf32> to vector<4x16xf32>
    %cst_106 = arith.constant 1.600000e+01 : f32
    %145 = vector.broadcast %cst_106 : f32 to vector<4x16xf32>
    %146 = arith.divf %144, %145 : vector<4x16xf32>
    %cst_107 = arith.constant dense<0xFF800000> : vector<4x16xf32>
    %147 = vector.multi_reduction <maximumf>, %143, %cst_107 [2] : vector<4x16x16xf32> to vector<4x16xf32>
    %cst_108 = arith.constant 0.000000e+00 : f32
    %148 = vector.broadcast %cst_108 : f32 to vector<3x16xf32>
    %149 = tpu.concatenate %148, %146, %148 in 0 : vector<3x16xf32>, vector<4x16xf32>, vector<3x16xf32> -> vector<10x16xf32>
    %150 = tpu.concatenate %148, %147, %148 in 0 : vector<3x16xf32>, vector<4x16xf32>, vector<3x16xf32> -> vector<10x16xf32>
    %cst_109 = arith.constant 0.000000e+00 : f32
    %151 = vector.broadcast %cst_109 : f32 to vector<4x16xf32>
    %c0_110 = arith.constant 0 : index
    %c0_111 = arith.constant 0 : index
    %152 = memref.load %arg24[%c0_110, %c0_111] : memref<1x1xf32, #tpu.memory_space<smem>>
    %153 = vector.broadcast %152 : f32 to vector<4x16xf32>
    %154 = arith.addf %151, %153 : vector<4x16xf32>
    %c0_112 = arith.constant 0 : index
    %c0_113 = arith.constant 0 : index
    %155 = memref.load %arg23[%c0_112, %c0_113] : memref<2x7xf32, #tpu.memory_space<smem>>
    %c1 = arith.constant 1 : index
    %c0_114 = arith.constant 0 : index
    %156 = memref.load %arg23[%c1, %c0_114] : memref<2x7xf32, #tpu.memory_space<smem>>
    %157 = vector.extract_strided_slice %149 {offsets = [0, 0], sizes = [4, 16], strides = [1, 1]} : vector<10x16xf32> to vector<4x16xf32>
    %158 = vector.broadcast %155 : f32 to vector<4x16xf32>
    %159 = arith.mulf %158, %157 : vector<4x16xf32>
    %160 = arith.addf %154, %159 : vector<4x16xf32>
    %161 = vector.extract_strided_slice %150 {offsets = [0, 0], sizes = [4, 16], strides = [1, 1]} : vector<10x16xf32> to vector<4x16xf32>
    %162 = vector.broadcast %156 : f32 to vector<4x16xf32>
    %163 = arith.mulf %162, %161 : vector<4x16xf32>
    %164 = arith.addf %160, %163 : vector<4x16xf32>
    %c0_115 = arith.constant 0 : index
    %c1_116 = arith.constant 1 : index
    %165 = memref.load %arg23[%c0_115, %c1_116] : memref<2x7xf32, #tpu.memory_space<smem>>
    %c1_117 = arith.constant 1 : index
    %c1_118 = arith.constant 1 : index
    %166 = memref.load %arg23[%c1_117, %c1_118] : memref<2x7xf32, #tpu.memory_space<smem>>
    %167 = vector.extract_strided_slice %149 {offsets = [1, 0], sizes = [4, 16], strides = [1, 1]} : vector<10x16xf32> to vector<4x16xf32>
    %168 = vector.broadcast %165 : f32 to vector<4x16xf32>
    %169 = arith.mulf %168, %167 : vector<4x16xf32>
    %170 = arith.addf %164, %169 : vector<4x16xf32>
    %171 = vector.extract_strided_slice %150 {offsets = [1, 0], sizes = [4, 16], strides = [1, 1]} : vector<10x16xf32> to vector<4x16xf32>
    %172 = vector.broadcast %166 : f32 to vector<4x16xf32>
    %173 = arith.mulf %172, %171 : vector<4x16xf32>
    %174 = arith.addf %170, %173 : vector<4x16xf32>
    %c0_119 = arith.constant 0 : index
    %c2 = arith.constant 2 : index
    %175 = memref.load %arg23[%c0_119, %c2] : memref<2x7xf32, #tpu.memory_space<smem>>
    %c1_120 = arith.constant 1 : index
    %c2_121 = arith.constant 2 : index
    %176 = memref.load %arg23[%c1_120, %c2_121] : memref<2x7xf32, #tpu.memory_space<smem>>
    %177 = vector.extract_strided_slice %149 {offsets = [2, 0], sizes = [4, 16], strides = [1, 1]} : vector<10x16xf32> to vector<4x16xf32>
    %178 = vector.broadcast %175 : f32 to vector<4x16xf32>
    %179 = arith.mulf %178, %177 : vector<4x16xf32>
    %180 = arith.addf %174, %179 : vector<4x16xf32>
    %181 = vector.extract_strided_slice %150 {offsets = [2, 0], sizes = [4, 16], strides = [1, 1]} : vector<10x16xf32> to vector<4x16xf32>
    %182 = vector.broadcast %176 : f32 to vector<4x16xf32>
    %183 = arith.mulf %182, %181 : vector<4x16xf32>
    %184 = arith.addf %180, %183 : vector<4x16xf32>
    %c0_122 = arith.constant 0 : index
    %c3 = arith.constant 3 : index
    %185 = memref.load %arg23[%c0_122, %c3] : memref<2x7xf32, #tpu.memory_space<smem>>
    %c1_123 = arith.constant 1 : index
    %c3_124 = arith.constant 3 : index
    %186 = memref.load %arg23[%c1_123, %c3_124] : memref<2x7xf32, #tpu.memory_space<smem>>
    %187 = vector.extract_strided_slice %149 {offsets = [3, 0], sizes = [4, 16], strides = [1, 1]} : vector<10x16xf32> to vector<4x16xf32>
    %188 = vector.broadcast %185 : f32 to vector<4x16xf32>
    %189 = arith.mulf %188, %187 : vector<4x16xf32>
    %190 = arith.addf %184, %189 : vector<4x16xf32>
    %191 = vector.extract_strided_slice %150 {offsets = [3, 0], sizes = [4, 16], strides = [1, 1]} : vector<10x16xf32> to vector<4x16xf32>
    %192 = vector.broadcast %186 : f32 to vector<4x16xf32>
    %193 = arith.mulf %192, %191 : vector<4x16xf32>
    %194 = arith.addf %190, %193 : vector<4x16xf32>
    %c0_125 = arith.constant 0 : index
    %c4 = arith.constant 4 : index
    %195 = memref.load %arg23[%c0_125, %c4] : memref<2x7xf32, #tpu.memory_space<smem>>
    %c1_126 = arith.constant 1 : index
    %c4_127 = arith.constant 4 : index
    %196 = memref.load %arg23[%c1_126, %c4_127] : memref<2x7xf32, #tpu.memory_space<smem>>
    %197 = vector.extract_strided_slice %149 {offsets = [4, 0], sizes = [4, 16], strides = [1, 1]} : vector<10x16xf32> to vector<4x16xf32>
    %198 = vector.broadcast %195 : f32 to vector<4x16xf32>
    %199 = arith.mulf %198, %197 : vector<4x16xf32>
    %200 = arith.addf %194, %199 : vector<4x16xf32>
    %201 = vector.extract_strided_slice %150 {offsets = [4, 0], sizes = [4, 16], strides = [1, 1]} : vector<10x16xf32> to vector<4x16xf32>
    %202 = vector.broadcast %196 : f32 to vector<4x16xf32>
    %203 = arith.mulf %202, %201 : vector<4x16xf32>
    %204 = arith.addf %200, %203 : vector<4x16xf32>
    %c0_128 = arith.constant 0 : index
    %c5 = arith.constant 5 : index
    %205 = memref.load %arg23[%c0_128, %c5] : memref<2x7xf32, #tpu.memory_space<smem>>
    %c1_129 = arith.constant 1 : index
    %c5_130 = arith.constant 5 : index
    %206 = memref.load %arg23[%c1_129, %c5_130] : memref<2x7xf32, #tpu.memory_space<smem>>
    %207 = vector.extract_strided_slice %149 {offsets = [5, 0], sizes = [4, 16], strides = [1, 1]} : vector<10x16xf32> to vector<4x16xf32>
    %208 = vector.broadcast %205 : f32 to vector<4x16xf32>
    %209 = arith.mulf %208, %207 : vector<4x16xf32>
    %210 = arith.addf %204, %209 : vector<4x16xf32>
    %211 = vector.extract_strided_slice %150 {offsets = [5, 0], sizes = [4, 16], strides = [1, 1]} : vector<10x16xf32> to vector<4x16xf32>
    %212 = vector.broadcast %206 : f32 to vector<4x16xf32>
    %213 = arith.mulf %212, %211 : vector<4x16xf32>
    %214 = arith.addf %210, %213 : vector<4x16xf32>
    %c0_131 = arith.constant 0 : index
    %c6 = arith.constant 6 : index
    %215 = memref.load %arg23[%c0_131, %c6] : memref<2x7xf32, #tpu.memory_space<smem>>
    %c1_132 = arith.constant 1 : index
    %c6_133 = arith.constant 6 : index
    %216 = memref.load %arg23[%c1_132, %c6_133] : memref<2x7xf32, #tpu.memory_space<smem>>
    %217 = vector.extract_strided_slice %149 {offsets = [6, 0], sizes = [4, 16], strides = [1, 1]} : vector<10x16xf32> to vector<4x16xf32>
    %218 = vector.broadcast %215 : f32 to vector<4x16xf32>
    %219 = arith.mulf %218, %217 : vector<4x16xf32>
    %220 = arith.addf %214, %219 : vector<4x16xf32>
    %221 = vector.extract_strided_slice %150 {offsets = [6, 0], sizes = [4, 16], strides = [1, 1]} : vector<10x16xf32> to vector<4x16xf32>
    %222 = vector.broadcast %216 : f32 to vector<4x16xf32>
    %223 = arith.mulf %222, %221 : vector<4x16xf32>
    %224 = arith.addf %220, %223 : vector<4x16xf32>
    %225 = arith.negf %224 : vector<4x16xf32>
    %226 = math.exp %225 : vector<4x16xf32>
    %cst_134 = arith.constant 1.000000e+00 : f32
    %227 = vector.broadcast %cst_134 : f32 to vector<4x16xf32>
    %228 = arith.addf %227, %226 : vector<4x16xf32>
    %229 = arith.divf %227, %228 : vector<4x16xf32>
    %230 = vector.shape_cast %229 : vector<4x16xf32> to vector<4x16x1xf32>
    %231 = vector.broadcast %230 : vector<4x16x1xf32> to vector<4x16x16xf32>
    %232 = arith.mulf %143, %231 : vector<4x16x16xf32>
    %c0_135 = arith.constant 0 : index
    %c0_136 = arith.constant 0 : index
    %c0_137 = arith.constant 0 : index
    %233 = vector.load %arg1[%c0_135, %c0_136, %c0_137] : memref<4x16x16xf32, #tpu.memory_space<vmem>>, vector<4x16x16xf32>
    %234 = arith.addf %232, %233 : vector<4x16x16xf32>
    %c0_138 = arith.constant 0 : index
    %c0_139 = arith.constant 0 : index
    %c0_140 = arith.constant 0 : index
    %235 = vector.load %arg25[%c0_138, %c0_139, %c0_140] : memref<4x16x16xf32, #tpu.memory_space<vmem>>, vector<4x16x16xf32>
    tpu.vector_store %arg25[%c0_138, %c0_139, %c0_140], %234 {strides = array<i32>} : memref<4x16x16xf32, #tpu.memory_space<vmem>>, vector<4x16x16xf32>,
    return
  }
  func.func @transform_0(%arg0: i32) -> (i32, i32, i32) {
    %c0_i32 = arith.constant 0 : i32
    %c0_i32_0 = arith.constant 0 : i32
    %c0_i32_1 = arith.constant 0 : i32
    return %c0_i32, %arg0, %c0_i32_0 : i32, i32, i32
  }
  func.func @transform_1(%arg0: i32) -> (i32, i32) {
    %c0_i32 = arith.constant 0 : i32
    %c0_i32_0 = arith.constant 0 : i32
    %c0_i32_1 = arith.constant 0 : i32
    return %c0_i32, %c0_i32_0 : i32, i32
  }
  func.func @transform_2(%arg0: i32) -> (i32, i32) {
    %c0_i32 = arith.constant 0 : i32
    %c0_i32_0 = arith.constant 0 : i32
    %c0_i32_1 = arith.constant 0 : i32
    return %c0_i32, %c0_i32_0 : i32, i32
  }
  func.func @transform_3(%arg0: i32) -> (i32, i32) {
    %c0_i32 = arith.constant 0 : i32
    %c0_i32_0 = arith.constant 0 : i32
    %c0_i32_1 = arith.constant 0 : i32
    return %c0_i32, %c0_i32_0 : i32, i32
  }
  func.func @transform_4(%arg0: i32) -> (i32, i32) {
    %c0_i32 = arith.constant 0 : i32
    %c0_i32_0 = arith.constant 0 : i32
    %c0_i32_1 = arith.constant 0 : i32
    return %c0_i32, %c0_i32_0 : i32, i32
  }
  func.func @transform_5(%arg0: i32) -> (i32, i32) {
    %c0_i32 = arith.constant 0 : i32
    %c0_i32_0 = arith.constant 0 : i32
    %c0_i32_1 = arith.constant 0 : i32
    return %c0_i32, %c0_i32_0 : i32, i32
  }
  func.func @transform_6(%arg0: i32) -> (i32, i32) {
    %c0_i32 = arith.constant 0 : i32
    %c0_i32_0 = arith.constant 0 : i32
    %c0_i32_1 = arith.constant 0 : i32
    return %c0_i32, %c0_i32_0 : i32, i32
  }
  func.func @transform_7(%arg0: i32) -> (i32, i32) {
    %c0_i32 = arith.constant 0 : i32
    %c0_i32_0 = arith.constant 0 : i32
    %c0_i32_1 = arith.constant 0 : i32
    return %c0_i32, %c0_i32_0 : i32, i32
  }
  func.func @transform_8(%arg0: i32) -> (i32, i32) {
    %c0_i32 = arith.constant 0 : i32
    %c0_i32_0 = arith.constant 0 : i32
    %c0_i32_1 = arith.constant 0 : i32
    return %c0_i32, %c0_i32_0 : i32, i32
  }
  func.func @transform_9(%arg0: i32) -> (i32, i32) {
    %c0_i32 = arith.constant 0 : i32
    %c0_i32_0 = arith.constant 0 : i32
    %c0_i32_1 = arith.constant 0 : i32
    return %c0_i32, %c0_i32_0 : i32, i32
  }
  func.func @transform_10(%arg0: i32) -> (i32, i32) {
    %c0_i32 = arith.constant 0 : i32
    %c0_i32_0 = arith.constant 0 : i32
    %c0_i32_1 = arith.constant 0 : i32
    return %c0_i32, %c0_i32_0 : i32, i32
  }
  func.func @transform_11(%arg0: i32) -> (i32, i32) {
    %c0_i32 = arith.constant 0 : i32
    %c0_i32_0 = arith.constant 0 : i32
    %c0_i32_1 = arith.constant 0 : i32
    return %c0_i32, %c0_i32_0 : i32, i32
  }
  func.func @transform_12(%arg0: i32) -> (i32, i32) {
    %c0_i32 = arith.constant 0 : i32
    %c0_i32_0 = arith.constant 0 : i32
    %c0_i32_1 = arith.constant 0 : i32
    return %c0_i32, %c0_i32_0 : i32, i32
  }
  func.func @transform_13(%arg0: i32) -> (i32, i32) {
    %c0_i32 = arith.constant 0 : i32
    %c0_i32_0 = arith.constant 0 : i32
    %c0_i32_1 = arith.constant 0 : i32
    return %c0_i32, %c0_i32_0 : i32, i32
  }
  func.func @transform_14(%arg0: i32) -> (i32, i32) {
    %c0_i32 = arith.constant 0 : i32
    %c0_i32_0 = arith.constant 0 : i32
    %c0_i32_1 = arith.constant 0 : i32
    return %c0_i32, %c0_i32_0 : i32, i32
  }
  func.func @transform_15(%arg0: i32) -> (i32, i32) {
    %c0_i32 = arith.constant 0 : i32
    %c0_i32_0 = arith.constant 0 : i32
    %c0_i32_1 = arith.constant 0 : i32
    return %c0_i32, %c0_i32_0 : i32, i32
  }
  func.func @transform_16(%arg0: i32) -> (i32, i32) {
    %c0_i32 = arith.constant 0 : i32
    %c0_i32_0 = arith.constant 0 : i32
    %c0_i32_1 = arith.constant 0 : i32
    return %c0_i32, %c0_i32_0 : i32, i32
  }
  func.func @transform_17(%arg0: i32) -> (i32, i32) {
    %c0_i32 = arith.constant 0 : i32
    %c0_i32_0 = arith.constant 0 : i32
    %c0_i32_1 = arith.constant 0 : i32
    return %c0_i32, %c0_i32_0 : i32, i32
  }
  func.func @transform_18(%arg0: i32) -> (i32, i32) {
    %c0_i32 = arith.constant 0 : i32
    %c0_i32_0 = arith.constant 0 : i32
    %c0_i32_1 = arith.constant 0 : i32
    return %c0_i32, %c0_i32_0 : i32, i32
  }
  func.func @transform_19(%arg0: i32) -> (i32, i32) {
    %c0_i32 = arith.constant 0 : i32
    %c0_i32_0 = arith.constant 0 : i32
    %c0_i32_1 = arith.constant 0 : i32
    return %c0_i32, %c0_i32_0 : i32, i32
  }
  func.func @transform_20(%arg0: i32) -> (i32, i32) {
    %c0_i32 = arith.constant 0 : i32
    %c0_i32_0 = arith.constant 0 : i32
    %c0_i32_1 = arith.constant 0 : i32
    return %c0_i32, %c0_i32_0 : i32, i32
  }
  func.func @transform_21(%arg0: i32) -> (i32, i32) {
    %c0_i32 = arith.constant 0 : i32
    %c0_i32_0 = arith.constant 0 : i32
    %c0_i32_1 = arith.constant 0 : i32
    return %c0_i32, %c0_i32_0 : i32, i32
  }
  func.func @transform_22(%arg0: i32) -> (i32, i32) {
    %c0_i32 = arith.constant 0 : i32
    %c0_i32_0 = arith.constant 0 : i32
    %c0_i32_1 = arith.constant 0 : i32
    return %c0_i32, %c0_i32_0 : i32, i32
  }
  func.func @transform_23(%arg0: i32) -> (i32, i32) {
    %c0_i32 = arith.constant 0 : i32
    %c0_i32_0 = arith.constant 0 : i32
    %c0_i32_1 = arith.constant 0 : i32
    return %c0_i32, %c0_i32_0 : i32, i32
  }
  func.func @transform_24(%arg0: i32) -> (i32, i32, i32) {
    %c0_i32 = arith.constant 0 : i32
    %c0_i32_0 = arith.constant 0 : i32
    %c0_i32_1 = arith.constant 0 : i32
    return %c0_i32, %arg0, %c0_i32_0 : i32, i32, i32
  }
}

module attributes {stable_mosaic.version = 11 : i64} {
  func.func @_rnn_module_kernel(%arg0: i32, %arg1: memref<16x8x16xf32, #tpu.memory_space<vmem>>, %arg2: memref<1x16xf32, #tpu.memory_space<vmem>>, %arg3: memref<1x16xf32, #tpu.memory_space<vmem>>, %arg4: memref<16x256xbf16, #tpu.memory_space<vmem>>, %arg5: memref<1x256xf32, #tpu.memory_space<vmem>>, %arg6: memref<32x128xbf16, #tpu.memory_space<vmem>>, %arg7: memref<32x128xbf16, #tpu.memory_space<vmem>>, %arg8: memref<32x32xbf16, #tpu.memory_space<vmem>>, %arg9: memref<32x32xbf16, #tpu.memory_space<vmem>>, %arg10: memref<1x32xf32, #tpu.memory_space<vmem>>, %arg11: memref<32x16xbf16, #tpu.memory_space<vmem>>, %arg12: memref<1x16xf32, #tpu.memory_space<vmem>>, %arg13: memref<16x32xbf16, #tpu.memory_space<vmem>>, %arg14: memref<1x32xf32, #tpu.memory_space<vmem>>, %arg15: memref<16x32xbf16, #tpu.memory_space<vmem>>, %arg16: memref<1x32xf32, #tpu.memory_space<vmem>>, %arg17: memref<32x16xbf16, #tpu.memory_space<vmem>>, %arg18: memref<1x16xf32, #tpu.memory_space<vmem>>, %arg19: memref<16x32xbf16, #tpu.memory_space<vmem>>, %arg20: memref<1x32xf32, #tpu.memory_space<vmem>>, %arg21: memref<16x16xbf16, #tpu.memory_space<vmem>>, %arg22: memref<1x16xf32, #tpu.memory_space<vmem>>, %arg23: memref<2x7xf32, #tpu.memory_space<smem>>, %arg24: memref<1x1xf32, #tpu.memory_space<smem>>, %arg25: memref<16x8x16xf32, #tpu.memory_space<vmem>>, %arg26: memref<16x8x16xbf16, #tpu.memory_space<vmem>>, %arg27: memref<16x8x128xf32, #tpu.memory_space<vmem>>, %arg28: memref<16x8x128xf32, #tpu.memory_space<vmem>>, %arg29: memref<16x8x32xbf16, #tpu.memory_space<vmem>>, %arg30: memref<16x8x32xbf16, #tpu.memory_space<vmem>>, %arg31: memref<8x32xf32, #tpu.memory_space<vmem>>, %arg32: memref<8x32xf32, #tpu.memory_space<vmem>>, %arg33: memref<8x32xf32, #tpu.memory_space<vmem>>, %arg34: memref<8x32xf32, #tpu.memory_space<vmem>>) attributes {dimension_semantics = [#tpu.dimension_semantics<parallel>], iteration_bounds = array<i64: 1>, scalar_prefetch = 0 : i64, scratch_operands = 9 : i64, tpu.core_type = #tpu.core_type<tc>, window_params = [{transform_indices = @transform_0, window_bounds = array<i64: 16, 8, 16>}, {pipeline_mode = #tpu.pipeline_mode<synchronous>, transform_indices = @transform_1, window_bounds = array<i64: 1, 16>}, {pipeline_mode = #tpu.pipeline_mode<synchronous>, transform_indices = @transform_2, window_bounds = array<i64: 1, 16>}, {pipeline_mode = #tpu.pipeline_mode<synchronous>, transform_indices = @transform_3, window_bounds = array<i64: 16, 256>}, {pipeline_mode = #tpu.pipeline_mode<synchronous>, transform_indices = @transform_4, window_bounds = array<i64: 1, 256>}, {pipeline_mode = #tpu.pipeline_mode<synchronous>, transform_indices = @transform_5, window_bounds = array<i64: 32, 128>}, {pipeline_mode = #tpu.pipeline_mode<synchronous>, transform_indices = @transform_6, window_bounds = array<i64: 32, 128>}, {pipeline_mode = #tpu.pipeline_mode<synchronous>, transform_indices = @transform_7, window_bounds = array<i64: 32, 32>}, {pipeline_mode = #tpu.pipeline_mode<synchronous>, transform_indices = @transform_8, window_bounds = array<i64: 32, 32>}, {pipeline_mode = #tpu.pipeline_mode<synchronous>, transform_indices = @transform_9, window_bounds = array<i64: 1, 32>}, {pipeline_mode = #tpu.pipeline_mode<synchronous>, transform_indices = @transform_10, window_bounds = array<i64: 32, 16>}, {pipeline_mode = #tpu.pipeline_mode<synchronous>, transform_indices = @transform_11, window_bounds = array<i64: 1, 16>}, {pipeline_mode = #tpu.pipeline_mode<synchronous>, transform_indices = @transform_12, window_bounds = array<i64: 16, 32>}, {pipeline_mode = #tpu.pipeline_mode<synchronous>, transform_indices = @transform_13, window_bounds = array<i64: 1, 32>}, {pipeline_mode = #tpu.pipeline_mode<synchronous>, transform_indices = @transform_14, window_bounds = array<i64: 16, 32>}, {pipeline_mode = #tpu.pipeline_mode<synchronous>, transform_indices = @transform_15, window_bounds = array<i64: 1, 32>}, {pipeline_mode = #tpu.pipeline_mode<synchronous>, transform_indices = @transform_16, window_bounds = array<i64: 32, 16>}, {pipeline_mode = #tpu.pipeline_mode<synchronous>, transform_indices = @transform_17, window_bounds = array<i64: 1, 16>}, {pipeline_mode = #tpu.pipeline_mode<synchronous>, transform_indices = @transform_18, window_bounds = array<i64: 16, 32>}, {pipeline_mode = #tpu.pipeline_mode<synchronous>, transform_indices = @transform_19, window_bounds = array<i64: 1, 32>}, {pipeline_mode = #tpu.pipeline_mode<synchronous>, transform_indices = @transform_20, window_bounds = array<i64: 16, 16>}, {pipeline_mode = #tpu.pipeline_mode<synchronous>, transform_indices = @transform_21, window_bounds = array<i64: 1, 16>}, {transform_indices = @transform_22, window_bounds = array<i64: 2, 7>}, {transform_indices = @transform_23, window_bounds = array<i64: 1, 1>}, {transform_indices = @transform_24, window_bounds = array<i64: 16, 8, 16>}]} {
    %c0 = arith.constant 0 : index
    %c0_0 = arith.constant 0 : index
    %c0_1 = arith.constant 0 : index
    %0 = vector.load %arg1[%c0, %c0_0, %c0_1] : memref<16x8x16xf32, #tpu.memory_space<vmem>>, vector<16x8x16xf32>
    %cst = arith.constant dense<0.000000e+00> : vector<8x16xf32>
    %1 = vector.multi_reduction <add>, %0, %cst [0] : vector<16x8x16xf32> to vector<8x16xf32>
    %2 = vector.shape_cast %1 : vector<8x16xf32> to vector<1x8x16xf32>
    %cst_2 = arith.constant 1.600000e+01 : f32
    %3 = vector.broadcast %cst_2 : f32 to vector<1x8x16xf32>
    %4 = arith.divf %2, %3 : vector<1x8x16xf32>
    %5 = vector.broadcast %4 : vector<1x8x16xf32> to vector<16x8x16xf32>
    %6 = arith.subf %0, %5 : vector<16x8x16xf32>
    %7 = arith.mulf %6, %6 : vector<16x8x16xf32>
    %cst_3 = arith.constant dense<0.000000e+00> : vector<8x16xf32>
    %8 = vector.multi_reduction <add>, %7, %cst_3 [0] : vector<16x8x16xf32> to vector<8x16xf32>
    %9 = vector.shape_cast %8 : vector<8x16xf32> to vector<1x8x16xf32>
    %cst_4 = arith.constant 1.600000e+01 : f32
    %10 = vector.broadcast %cst_4 : f32 to vector<1x8x16xf32>
    %11 = arith.divf %9, %10 : vector<1x8x16xf32>
    %12 = vector.broadcast %4 : vector<1x8x16xf32> to vector<16x8x16xf32>
    %13 = arith.subf %0, %12 : vector<16x8x16xf32>
    %cst_5 = arith.constant 9.99999974E-6 : f32
    %14 = vector.broadcast %cst_5 : f32 to vector<1x8x16xf32>
    %15 = arith.addf %11, %14 : vector<1x8x16xf32>
    %16 = math.rsqrt %15 : vector<1x8x16xf32>
    %17 = vector.broadcast %16 : vector<1x8x16xf32> to vector<16x8x16xf32>
    %18 = arith.mulf %13, %17 : vector<16x8x16xf32>
    %c0_6 = arith.constant 0 : index
    %c0_7 = arith.constant 0 : index
    %19 = vector.load %arg2[%c0_6, %c0_7] : memref<1x16xf32, #tpu.memory_space<vmem>>, vector<1x16xf32>
    %20 = vector.shape_cast %19 : vector<1x16xf32> to vector<1x1x16xf32>
    %21 = vector.broadcast %20 : vector<1x1x16xf32> to vector<16x8x16xf32>
    %22 = arith.mulf %18, %21 : vector<16x8x16xf32>
    %c0_8 = arith.constant 0 : index
    %c0_9 = arith.constant 0 : index
    %23 = vector.load %arg3[%c0_8, %c0_9] : memref<1x16xf32, #tpu.memory_space<vmem>>, vector<1x16xf32>
    %24 = vector.shape_cast %23 : vector<1x16xf32> to vector<1x1x16xf32>
    %25 = vector.broadcast %24 : vector<1x1x16xf32> to vector<16x8x16xf32>
    %26 = arith.addf %22, %25 : vector<16x8x16xf32>
    %27 = arith.truncf %26 : vector<16x8x16xf32> to vector<16x8x16xbf16>
    %c0_10 = arith.constant 0 : index
    %c0_11 = arith.constant 0 : index
    %c0_12 = arith.constant 0 : index
    %28 = vector.load %arg26[%c0_10, %c0_11, %c0_12] : memref<16x8x16xbf16, #tpu.memory_space<vmem>>, vector<16x8x16xbf16>
    tpu.vector_store %arg26[%c0_10, %c0_11, %c0_12], %27 {strides = array<i32>} : memref<16x8x16xbf16, #tpu.memory_space<vmem>>, vector<16x8x16xbf16>,
    %c0_13 = arith.constant 0 : index
    %c0_14 = arith.constant 0 : index
    %c0_15 = arith.constant 0 : index
    %29 = vector.load %arg26[%c0_13, %c0_14, %c0_15] : memref<16x8x16xbf16, #tpu.memory_space<vmem>>, vector<16x8x16xbf16>
    %30 = vector.shape_cast %29 : vector<16x8x16xbf16> to vector<128x16xbf16>
    %c0_16 = arith.constant 0 : index
    %c0_17 = arith.constant 0 : index
    %31 = vector.load %arg4[%c0_16, %c0_17] : memref<16x256xbf16, #tpu.memory_space<vmem>>, vector<16x256xbf16>
    %cst_18 = arith.constant dense<0.000000e+00> : vector<128x256xf32>
    %32 = tpu.matmul %30, %31, %cst_18 {dimension_numbers = #tpu.dot_dimension_numbers<[1], [0], [0], [1], [0, 0, 1, 1], [], []>} : vector<128x16xbf16>, vector<16x256xbf16>, vector<128x256xf32> -> vector<128x256xf32>
    %c0_19 = arith.constant 0 : index
    %c0_20 = arith.constant 0 : index
    %33 = vector.load %arg5[%c0_19, %c0_20] : memref<1x256xf32, #tpu.memory_space<vmem>>, vector<1x256xf32>
    %34 = vector.broadcast %33 : vector<1x256xf32> to vector<128x256xf32>
    %35 = arith.addf %32, %34 : vector<128x256xf32>
    %36 = vector.extract_strided_slice %35 {offsets = [0, 0], sizes = [128, 128], strides = [1, 1]} : vector<128x256xf32> to vector<128x128xf32>
    %37 = vector.shape_cast %36 : vector<128x128xf32> to vector<16x8x128xf32>
    %c0_21 = arith.constant 0 : index
    %c0_22 = arith.constant 0 : index
    %c0_23 = arith.constant 0 : index
    %38 = vector.load %arg27[%c0_21, %c0_22, %c0_23] : memref<16x8x128xf32, #tpu.memory_space<vmem>>, vector<16x8x128xf32>
    tpu.vector_store %arg27[%c0_21, %c0_22, %c0_23], %37 {strides = array<i32>} : memref<16x8x128xf32, #tpu.memory_space<vmem>>, vector<16x8x128xf32>,
    %39 = vector.extract_strided_slice %35 {offsets = [0, 128], sizes = [128, 128], strides = [1, 1]} : vector<128x256xf32> to vector<128x128xf32>
    %40 = vector.shape_cast %39 : vector<128x128xf32> to vector<16x8x128xf32>
    %c0_24 = arith.constant 0 : index
    %c0_25 = arith.constant 0 : index
    %c0_26 = arith.constant 0 : index
    %41 = vector.load %arg28[%c0_24, %c0_25, %c0_26] : memref<16x8x128xf32, #tpu.memory_space<vmem>>, vector<16x8x128xf32>
    tpu.vector_store %arg28[%c0_24, %c0_25, %c0_26], %40 {strides = array<i32>} : memref<16x8x128xf32, #tpu.memory_space<vmem>>, vector<16x8x128xf32>,
    %c0_27 = arith.constant 0 : index
    %c0_28 = arith.constant 0 : index
    %42 = vector.load %arg6[%c0_27, %c0_28] : memref<32x128xbf16, #tpu.memory_space<vmem>>, vector<32x128xbf16>
    %c0_29 = arith.constant 0 : index
    %c0_30 = arith.constant 0 : index
    %43 = vector.load %arg7[%c0_29, %c0_30] : memref<32x128xbf16, #tpu.memory_space<vmem>>, vector<32x128xbf16>
    %cst_31 = arith.constant 0.000000e+00 : f32
    %44 = vector.broadcast %cst_31 : f32 to vector<8x32xf32>
    %c0_32 = arith.constant 0 : index
    %c0_33 = arith.constant 0 : index
    %45 = vector.load %arg31[%c0_32, %c0_33] : memref<8x32xf32, #tpu.memory_space<vmem>>, vector<8x32xf32>
    tpu.vector_store %arg31[%c0_32, %c0_33], %44 {strides = array<i32>} : memref<8x32xf32, #tpu.memory_space<vmem>>, vector<8x32xf32>,
    %cst_34 = arith.constant 0.000000e+00 : f32
    %46 = vector.broadcast %cst_34 : f32 to vector<8x32xf32>
    %c0_35 = arith.constant 0 : index
    %c0_36 = arith.constant 0 : index
    %47 = vector.load %arg32[%c0_35, %c0_36] : memref<8x32xf32, #tpu.memory_space<vmem>>, vector<8x32xf32>
    tpu.vector_store %arg32[%c0_35, %c0_36], %46 {strides = array<i32>} : memref<8x32xf32, #tpu.memory_space<vmem>>, vector<8x32xf32>,
    %cst_37 = arith.constant 0.000000e+00 : f32
    %48 = vector.broadcast %cst_37 : f32 to vector<8x32xf32>
    %c0_38 = arith.constant 0 : index
    %c0_39 = arith.constant 0 : index
    %49 = vector.load %arg33[%c0_38, %c0_39] : memref<8x32xf32, #tpu.memory_space<vmem>>, vector<8x32xf32>
    tpu.vector_store %arg33[%c0_38, %c0_39], %48 {strides = array<i32>} : memref<8x32xf32, #tpu.memory_space<vmem>>, vector<8x32xf32>,
    %cst_40 = arith.constant 0.000000e+00 : f32
    %50 = vector.broadcast %cst_40 : f32 to vector<8x32xf32>
    %c0_41 = arith.constant 0 : index
    %c0_42 = arith.constant 0 : index
    %51 = vector.load %arg34[%c0_41, %c0_42] : memref<8x32xf32, #tpu.memory_space<vmem>>, vector<8x32xf32>
    tpu.vector_store %arg34[%c0_41, %c0_42], %50 {strides = array<i32>} : memref<8x32xf32, #tpu.memory_space<vmem>>, vector<8x32xf32>,
    %c0_i32 = arith.constant 0 : i32
    %c16_i32 = arith.constant 16 : i32
    %52 = arith.addi %c0_i32, %c16_i32 : i32
    %c1_i32 = arith.constant 1 : i32
    scf.for %arg35 = %c0_i32 to %52 step %c1_i32  : i32 {
      %c1_i32_141 = arith.constant 1 : i32
      %236 = arith.muli %arg35, %c1_i32_141 : i32
      %c0_i32_142 = arith.constant 0 : i32
      %237 = arith.addi %c0_i32_142, %236 : i32
      %c15_i32 = arith.constant 15 : i32
      %238 = arith.subi %c15_i32, %237 : i32
      %239 = arith.index_cast %237 : i32 to index
      %c0_143 = arith.constant 0 : index
      %c0_144 = arith.constant 0 : index
      %240 = vector.load %arg27[%239, %c0_143, %c0_144] : memref<16x8x128xf32, #tpu.memory_space<vmem>>, vector<1x8x128xf32>
      %241 = vector.shape_cast %240 : vector<1x8x128xf32> to vector<8x128xf32>
      %c0_145 = arith.constant 0 : index
      %c0_146 = arith.constant 0 : index
      %242 = vector.load %arg31[%c0_145, %c0_146] : memref<8x32xf32, #tpu.memory_space<vmem>>, vector<8x32xf32>
      %c0_147 = arith.constant 0 : index
      %c0_148 = arith.constant 0 : index
      %243 = vector.load %arg32[%c0_147, %c0_148] : memref<8x32xf32, #tpu.memory_space<vmem>>, vector<8x32xf32>
      %244 = arith.truncf %242 : vector<8x32xf32> to vector<8x32xbf16>
      %cst_149 = arith.constant dense<0.000000e+00> : vector<8x128xf32>
      %245 = tpu.matmul %244, %42, %cst_149 {dimension_numbers = #tpu.dot_dimension_numbers<[1], [0], [0], [1], [0, 0, 1, 1], [], []>} : vector<8x32xbf16>, vector<32x128xbf16>, vector<8x128xf32> -> vector<8x128xf32>
      %246 = arith.addf %241, %245 : vector<8x128xf32>
      %247 = vector.extract_strided_slice %246 {offsets = [0, 0], sizes = [8, 32], strides = [1, 1]} : vector<8x128xf32> to vector<8x32xf32>
      %248 = arith.negf %247 : vector<8x32xf32>
      %249 = math.exp %248 : vector<8x32xf32>
      %cst_150 = arith.constant 1.000000e+00 : f32
      %250 = vector.broadcast %cst_150 : f32 to vector<8x32xf32>
      %251 = arith.addf %250, %249 : vector<8x32xf32>
      %252 = arith.divf %250, %251 : vector<8x32xf32>
      %253 = vector.extract_strided_slice %246 {offsets = [0, 32], sizes = [8, 32], strides = [1, 1]} : vector<8x128xf32> to vector<8x32xf32>
      %254 = arith.negf %253 : vector<8x32xf32>
      %255 = math.exp %254 : vector<8x32xf32>
      %cst_151 = arith.constant 1.000000e+00 : f32
      %256 = vector.broadcast %cst_151 : f32 to vector<8x32xf32>
      %257 = arith.addf %256, %255 : vector<8x32xf32>
      %258 = arith.divf %256, %257 : vector<8x32xf32>
      %259 = vector.extract_strided_slice %246 {offsets = [0, 64], sizes = [8, 32], strides = [1, 1]} : vector<8x128xf32> to vector<8x32xf32>
      %260 = math.tanh %259 : vector<8x32xf32>
      %261 = vector.extract_strided_slice %246 {offsets = [0, 96], sizes = [8, 32], strides = [1, 1]} : vector<8x128xf32> to vector<8x32xf32>
      %262 = arith.negf %261 : vector<8x32xf32>
      %263 = math.exp %262 : vector<8x32xf32>
      %cst_152 = arith.constant 1.000000e+00 : f32
      %264 = vector.broadcast %cst_152 : f32 to vector<8x32xf32>
      %265 = arith.addf %264, %263 : vector<8x32xf32>
      %266 = arith.divf %264, %265 : vector<8x32xf32>
      %267 = arith.mulf %258, %243 : vector<8x32xf32>
      %268 = arith.mulf %252, %260 : vector<8x32xf32>
      %269 = arith.addf %267, %268 : vector<8x32xf32>
      %270 = math.tanh %269 : vector<8x32xf32>
      %271 = arith.mulf %266, %270 : vector<8x32xf32>
      %272 = arith.index_cast %238 : i32 to index
      %c0_153 = arith.constant 0 : index
      %c0_154 = arith.constant 0 : index
      %273 = vector.load %arg28[%272, %c0_153, %c0_154] : memref<16x8x128xf32, #tpu.memory_space<vmem>>, vector<1x8x128xf32>
      %274 = vector.shape_cast %273 : vector<1x8x128xf32> to vector<8x128xf32>
      %c0_155 = arith.constant 0 : index
      %c0_156 = arith.constant 0 : index
      %275 = vector.load %arg33[%c0_155, %c0_156] : memref<8x32xf32, #tpu.memory_space<vmem>>, vector<8x32xf32>
      %c0_157 = arith.constant 0 : index
      %c0_158 = arith.constant 0 : index
      %276 = vector.load %arg34[%c0_157, %c0_158] : memref<8x32xf32, #tpu.memory_space<vmem>>, vector<8x32xf32>
      %277 = arith.truncf %275 : vector<8x32xf32> to vector<8x32xbf16>
      %cst_159 = arith.constant dense<0.000000e+00> : vector<8x128xf32>
      %278 = tpu.matmul %277, %43, %cst_159 {dimension_numbers = #tpu.dot_dimension_numbers<[1], [0], [0], [1], [0, 0, 1, 1], [], []>} : vector<8x32xbf16>, vector<32x128xbf16>, vector<8x128xf32> -> vector<8x128xf32>
      %279 = arith.addf %274, %278 : vector<8x128xf32>
      %280 = vector.extract_strided_slice %279 {offsets = [0, 0], sizes = [8, 32], strides = [1, 1]} : vector<8x128xf32> to vector<8x32xf32>
      %281 = arith.negf %280 : vector<8x32xf32>
      %282 = math.exp %281 : vector<8x32xf32>
      %cst_160 = arith.constant 1.000000e+00 : f32
      %283 = vector.broadcast %cst_160 : f32 to vector<8x32xf32>
      %284 = arith.addf %283, %282 : vector<8x32xf32>
      %285 = arith.divf %283, %284 : vector<8x32xf32>
      %286 = vector.extract_strided_slice %279 {offsets = [0, 32], sizes = [8, 32], strides = [1, 1]} : vector<8x128xf32> to vector<8x32xf32>
      %287 = arith.negf %286 : vector<8x32xf32>
      %288 = math.exp %287 : vector<8x32xf32>
      %cst_161 = arith.constant 1.000000e+00 : f32
      %289 = vector.broadcast %cst_161 : f32 to vector<8x32xf32>
      %290 = arith.addf %289, %288 : vector<8x32xf32>
      %291 = arith.divf %289, %290 : vector<8x32xf32>
      %292 = vector.extract_strided_slice %279 {offsets = [0, 64], sizes = [8, 32], strides = [1, 1]} : vector<8x128xf32> to vector<8x32xf32>
      %293 = math.tanh %292 : vector<8x32xf32>
      %294 = vector.extract_strided_slice %279 {offsets = [0, 96], sizes = [8, 32], strides = [1, 1]} : vector<8x128xf32> to vector<8x32xf32>
      %295 = arith.negf %294 : vector<8x32xf32>
      %296 = math.exp %295 : vector<8x32xf32>
      %cst_162 = arith.constant 1.000000e+00 : f32
      %297 = vector.broadcast %cst_162 : f32 to vector<8x32xf32>
      %298 = arith.addf %297, %296 : vector<8x32xf32>
      %299 = arith.divf %297, %298 : vector<8x32xf32>
      %300 = arith.mulf %291, %276 : vector<8x32xf32>
      %301 = arith.mulf %285, %293 : vector<8x32xf32>
      %302 = arith.addf %300, %301 : vector<8x32xf32>
      %303 = math.tanh %302 : vector<8x32xf32>
      %304 = arith.mulf %299, %303 : vector<8x32xf32>
      %c0_163 = arith.constant 0 : index
      %c0_164 = arith.constant 0 : index
      %305 = vector.load %arg31[%c0_163, %c0_164] : memref<8x32xf32, #tpu.memory_space<vmem>>, vector<8x32xf32>
      tpu.vector_store %arg31[%c0_163, %c0_164], %271 {strides = array<i32>} : memref<8x32xf32, #tpu.memory_space<vmem>>, vector<8x32xf32>,
      %c0_165 = arith.constant 0 : index
      %c0_166 = arith.constant 0 : index
      %306 = vector.load %arg32[%c0_165, %c0_166] : memref<8x32xf32, #tpu.memory_space<vmem>>, vector<8x32xf32>
      tpu.vector_store %arg32[%c0_165, %c0_166], %269 {strides = array<i32>} : memref<8x32xf32, #tpu.memory_space<vmem>>, vector<8x32xf32>,
      %c0_167 = arith.constant 0 : index
      %c0_168 = arith.constant 0 : index
      %307 = vector.load %arg33[%c0_167, %c0_168] : memref<8x32xf32, #tpu.memory_space<vmem>>, vector<8x32xf32>
      tpu.vector_store %arg33[%c0_167, %c0_168], %304 {strides = array<i32>} : memref<8x32xf32, #tpu.memory_space<vmem>>, vector<8x32xf32>,
      %c0_169 = arith.constant 0 : index
      %c0_170 = arith.constant 0 : index
      %308 = vector.load %arg34[%c0_169, %c0_170] : memref<8x32xf32, #tpu.memory_space<vmem>>, vector<8x32xf32>
      tpu.vector_store %arg34[%c0_169, %c0_170], %302 {strides = array<i32>} : memref<8x32xf32, #tpu.memory_space<vmem>>, vector<8x32xf32>,
      %309 = arith.truncf %271 : vector<8x32xf32> to vector<8x32xbf16>
      %310 = arith.index_cast %237 : i32 to index
      %c0_171 = arith.constant 0 : index
      %c0_172 = arith.constant 0 : index
      %311 = vector.load %arg29[%310, %c0_171, %c0_172] : memref<16x8x32xbf16, #tpu.memory_space<vmem>>, vector<1x8x32xbf16>
      %312 = vector.shape_cast %311 : vector<1x8x32xbf16> to vector<8x32xbf16>
      %313 = vector.shape_cast %309 : vector<8x32xbf16> to vector<1x8x32xbf16>
      tpu.vector_store %arg29[%310, %c0_171, %c0_172], %313 {strides = array<i32>} : memref<16x8x32xbf16, #tpu.memory_space<vmem>>, vector<1x8x32xbf16>,
      %314 = arith.truncf %304 : vector<8x32xf32> to vector<8x32xbf16>
      %315 = arith.index_cast %238 : i32 to index
      %c0_173 = arith.constant 0 : index
      %c0_174 = arith.constant 0 : index
      %316 = vector.load %arg30[%315, %c0_173, %c0_174] : memref<16x8x32xbf16, #tpu.memory_space<vmem>>, vector<1x8x32xbf16>
      %317 = vector.shape_cast %316 : vector<1x8x32xbf16> to vector<8x32xbf16>
      %318 = vector.shape_cast %314 : vector<8x32xbf16> to vector<1x8x32xbf16>
      tpu.vector_store %arg30[%315, %c0_173, %c0_174], %318 {strides = array<i32>} : memref<16x8x32xbf16, #tpu.memory_space<vmem>>, vector<1x8x32xbf16>,
    }
    %c16_i32_43 = arith.constant 16 : i32
    %c0_44 = arith.constant 0 : index
    %c0_45 = arith.constant 0 : index
    %c0_46 = arith.constant 0 : index
    %53 = vector.load %arg29[%c0_44, %c0_45, %c0_46] : memref<16x8x32xbf16, #tpu.memory_space<vmem>>, vector<16x8x32xbf16>
    %54 = vector.shape_cast %53 : vector<16x8x32xbf16> to vector<128x32xbf16>
    %c0_47 = arith.constant 0 : index
    %c0_48 = arith.constant 0 : index
    %c0_49 = arith.constant 0 : index
    %55 = vector.load %arg30[%c0_47, %c0_48, %c0_49] : memref<16x8x32xbf16, #tpu.memory_space<vmem>>, vector<16x8x32xbf16>
    %56 = vector.shape_cast %55 : vector<16x8x32xbf16> to vector<128x32xbf16>
    %c0_50 = arith.constant 0 : index
    %c0_51 = arith.constant 0 : index
    %57 = vector.load %arg8[%c0_50, %c0_51] : memref<32x32xbf16, #tpu.memory_space<vmem>>, vector<32x32xbf16>
    %cst_52 = arith.constant dense<0.000000e+00> : vector<128x32xf32>
    %58 = tpu.matmul %54, %57, %cst_52 {dimension_numbers = #tpu.dot_dimension_numbers<[1], [0], [0], [1], [0, 0, 1, 1], [], []>} : vector<128x32xbf16>, vector<32x32xbf16>, vector<128x32xf32> -> vector<128x32xf32>
    %c0_53 = arith.constant 0 : index
    %c0_54 = arith.constant 0 : index
    %59 = vector.load %arg9[%c0_53, %c0_54] : memref<32x32xbf16, #tpu.memory_space<vmem>>, vector<32x32xbf16>
    %cst_55 = arith.constant dense<0.000000e+00> : vector<128x32xf32>
    %60 = tpu.matmul %56, %59, %cst_55 {dimension_numbers = #tpu.dot_dimension_numbers<[1], [0], [0], [1], [0, 0, 1, 1], [], []>} : vector<128x32xbf16>, vector<32x32xbf16>, vector<128x32xf32> -> vector<128x32xf32>
    %61 = arith.addf %58, %60 : vector<128x32xf32>
    %c0_56 = arith.constant 0 : index
    %c0_57 = arith.constant 0 : index
    %62 = vector.load %arg10[%c0_56, %c0_57] : memref<1x32xf32, #tpu.memory_space<vmem>>, vector<1x32xf32>
    %63 = vector.broadcast %62 : vector<1x32xf32> to vector<128x32xf32>
    %64 = arith.addf %61, %63 : vector<128x32xf32>
    %65 = math.tanh %64 : vector<128x32xf32>
    %66 = arith.truncf %65 : vector<128x32xf32> to vector<128x32xbf16>
    %c0_58 = arith.constant 0 : index
    %c0_59 = arith.constant 0 : index
    %67 = vector.load %arg11[%c0_58, %c0_59] : memref<32x16xbf16, #tpu.memory_space<vmem>>, vector<32x16xbf16>
    %cst_60 = arith.constant dense<0.000000e+00> : vector<128x16xf32>
    %68 = tpu.matmul %66, %67, %cst_60 {dimension_numbers = #tpu.dot_dimension_numbers<[1], [0], [0], [1], [0, 0, 1, 1], [], []>} : vector<128x32xbf16>, vector<32x16xbf16>, vector<128x16xf32> -> vector<128x16xf32>
    %c0_61 = arith.constant 0 : index
    %c0_62 = arith.constant 0 : index
    %69 = vector.load %arg12[%c0_61, %c0_62] : memref<1x16xf32, #tpu.memory_space<vmem>>, vector<1x16xf32>
    %70 = vector.broadcast %69 : vector<1x16xf32> to vector<128x16xf32>
    %71 = arith.addf %68, %70 : vector<128x16xf32>
    %72 = arith.truncf %71 : vector<128x16xf32> to vector<128x16xbf16>
    %c0_63 = arith.constant 0 : index
    %c0_64 = arith.constant 0 : index
    %73 = vector.load %arg13[%c0_63, %c0_64] : memref<16x32xbf16, #tpu.memory_space<vmem>>, vector<16x32xbf16>
    %cst_65 = arith.constant dense<0.000000e+00> : vector<128x32xf32>
    %74 = tpu.matmul %72, %73, %cst_65 {dimension_numbers = #tpu.dot_dimension_numbers<[1], [0], [0], [1], [0, 0, 1, 1], [], []>} : vector<128x16xbf16>, vector<16x32xbf16>, vector<128x32xf32> -> vector<128x32xf32>
    %c0_66 = arith.constant 0 : index
    %c0_67 = arith.constant 0 : index
    %75 = vector.load %arg14[%c0_66, %c0_67] : memref<1x32xf32, #tpu.memory_space<vmem>>, vector<1x32xf32>
    %76 = vector.broadcast %75 : vector<1x32xf32> to vector<128x32xf32>
    %77 = arith.addf %74, %76 : vector<128x32xf32>
    %78 = vector.extract_strided_slice %77 {offsets = [0, 0], sizes = [128, 16], strides = [1, 1]} : vector<128x32xf32> to vector<128x16xf32>
    %79 = vector.extract_strided_slice %77 {offsets = [0, 16], sizes = [128, 16], strides = [1, 1]} : vector<128x32xf32> to vector<128x16xf32>
    %80 = arith.negf %79 : vector<128x16xf32>
    %81 = math.exp %80 : vector<128x16xf32>
    %cst_68 = arith.constant 1.000000e+00 : f32
    %82 = vector.broadcast %cst_68 : f32 to vector<128x16xf32>
    %83 = arith.addf %82, %81 : vector<128x16xf32>
    %84 = arith.divf %82, %83 : vector<128x16xf32>
    %85 = arith.mulf %78, %84 : vector<128x16xf32>
    %86 = vector.shape_cast %85 : vector<128x16xf32> to vector<16x8x16xf32>
    %cst_69 = arith.constant dense<0.000000e+00> : vector<8x16xf32>
    %87 = vector.multi_reduction <add>, %86, %cst_69 [0] : vector<16x8x16xf32> to vector<8x16xf32>
    %cst_70 = arith.constant 1.600000e+01 : f32
    %88 = vector.broadcast %cst_70 : f32 to vector<8x16xf32>
    %89 = arith.divf %87, %88 : vector<8x16xf32>
    %cst_71 = arith.constant dense<0xFF800000> : vector<8x16xf32>
    %90 = vector.multi_reduction <maximumf>, %86, %cst_71 [0] : vector<16x8x16xf32> to vector<8x16xf32>
    %91 = arith.truncf %89 : vector<8x16xf32> to vector<8x16xbf16>
    %c0_72 = arith.constant 0 : index
    %c0_73 = arith.constant 0 : index
    %92 = vector.load %arg15[%c0_72, %c0_73] : memref<16x32xbf16, #tpu.memory_space<vmem>>, vector<16x32xbf16>
    %cst_74 = arith.constant dense<0.000000e+00> : vector<8x32xf32>
    %93 = tpu.matmul %91, %92, %cst_74 {dimension_numbers = #tpu.dot_dimension_numbers<[1], [0], [0], [1], [0, 0, 1, 1], [], []>} : vector<8x16xbf16>, vector<16x32xbf16>, vector<8x32xf32> -> vector<8x32xf32>
    %c0_75 = arith.constant 0 : index
    %c0_76 = arith.constant 0 : index
    %94 = vector.load %arg16[%c0_75, %c0_76] : memref<1x32xf32, #tpu.memory_space<vmem>>, vector<1x32xf32>
    %95 = vector.broadcast %94 : vector<1x32xf32> to vector<8x32xf32>
    %96 = arith.addf %93, %95 : vector<8x32xf32>
    %cst_77 = arith.constant 0.000000e+00 : f32
    %97 = vector.broadcast %cst_77 : f32 to vector<8x32xf32>
    %98 = arith.maximumf %96, %97 : vector<8x32xf32>
    %99 = arith.truncf %98 : vector<8x32xf32> to vector<8x32xbf16>
    %c0_78 = arith.constant 0 : index
    %c0_79 = arith.constant 0 : index
    %100 = vector.load %arg17[%c0_78, %c0_79] : memref<32x16xbf16, #tpu.memory_space<vmem>>, vector<32x16xbf16>
    %cst_80 = arith.constant dense<0.000000e+00> : vector<8x16xf32>
    %101 = tpu.matmul %99, %100, %cst_80 {dimension_numbers = #tpu.dot_dimension_numbers<[1], [0], [0], [1], [0, 0, 1, 1], [], []>} : vector<8x32xbf16>, vector<32x16xbf16>, vector<8x16xf32> -> vector<8x16xf32>
    %c0_81 = arith.constant 0 : index
    %c0_82 = arith.constant 0 : index
    %102 = vector.load %arg18[%c0_81, %c0_82] : memref<1x16xf32, #tpu.memory_space<vmem>>, vector<1x16xf32>
    %103 = vector.broadcast %102 : vector<1x16xf32> to vector<8x16xf32>
    %104 = arith.addf %101, %103 : vector<8x16xf32>
    %105 = arith.truncf %90 : vector<8x16xf32> to vector<8x16xbf16>
    %c0_83 = arith.constant 0 : index
    %c0_84 = arith.constant 0 : index
    %106 = vector.load %arg15[%c0_83, %c0_84] : memref<16x32xbf16, #tpu.memory_space<vmem>>, vector<16x32xbf16>
    %cst_85 = arith.constant dense<0.000000e+00> : vector<8x32xf32>
    %107 = tpu.matmul %105, %106, %cst_85 {dimension_numbers = #tpu.dot_dimension_numbers<[1], [0], [0], [1], [0, 0, 1, 1], [], []>} : vector<8x16xbf16>, vector<16x32xbf16>, vector<8x32xf32> -> vector<8x32xf32>
    %c0_86 = arith.constant 0 : index
    %c0_87 = arith.constant 0 : index
    %108 = vector.load %arg16[%c0_86, %c0_87] : memref<1x32xf32, #tpu.memory_space<vmem>>, vector<1x32xf32>
    %109 = vector.broadcast %108 : vector<1x32xf32> to vector<8x32xf32>
    %110 = arith.addf %107, %109 : vector<8x32xf32>
    %cst_88 = arith.constant 0.000000e+00 : f32
    %111 = vector.broadcast %cst_88 : f32 to vector<8x32xf32>
    %112 = arith.maximumf %110, %111 : vector<8x32xf32>
    %113 = arith.truncf %112 : vector<8x32xf32> to vector<8x32xbf16>
    %c0_89 = arith.constant 0 : index
    %c0_90 = arith.constant 0 : index
    %114 = vector.load %arg17[%c0_89, %c0_90] : memref<32x16xbf16, #tpu.memory_space<vmem>>, vector<32x16xbf16>
    %cst_91 = arith.constant dense<0.000000e+00> : vector<8x16xf32>
    %115 = tpu.matmul %113, %114, %cst_91 {dimension_numbers = #tpu.dot_dimension_numbers<[1], [0], [0], [1], [0, 0, 1, 1], [], []>} : vector<8x32xbf16>, vector<32x16xbf16>, vector<8x16xf32> -> vector<8x16xf32>
    %c0_92 = arith.constant 0 : index
    %c0_93 = arith.constant 0 : index
    %116 = vector.load %arg18[%c0_92, %c0_93] : memref<1x16xf32, #tpu.memory_space<vmem>>, vector<1x16xf32>
    %117 = vector.broadcast %116 : vector<1x16xf32> to vector<8x16xf32>
    %118 = arith.addf %115, %117 : vector<8x16xf32>
    %119 = arith.addf %104, %118 : vector<8x16xf32>
    %120 = arith.truncf %119 : vector<8x16xf32> to vector<8x16xbf16>
    %c0_94 = arith.constant 0 : index
    %c0_95 = arith.constant 0 : index
    %121 = vector.load %arg19[%c0_94, %c0_95] : memref<16x32xbf16, #tpu.memory_space<vmem>>, vector<16x32xbf16>
    %cst_96 = arith.constant dense<0.000000e+00> : vector<8x32xf32>
    %122 = tpu.matmul %120, %121, %cst_96 {dimension_numbers = #tpu.dot_dimension_numbers<[1], [0], [0], [1], [0, 0, 1, 1], [], []>} : vector<8x16xbf16>, vector<16x32xbf16>, vector<8x32xf32> -> vector<8x32xf32>
    %c0_97 = arith.constant 0 : index
    %c0_98 = arith.constant 0 : index
    %123 = vector.load %arg20[%c0_97, %c0_98] : memref<1x32xf32, #tpu.memory_space<vmem>>, vector<1x32xf32>
    %124 = vector.broadcast %123 : vector<1x32xf32> to vector<8x32xf32>
    %125 = arith.addf %122, %124 : vector<8x32xf32>
    %126 = vector.extract_strided_slice %125 {offsets = [0, 0], sizes = [8, 16], strides = [1, 1]} : vector<8x32xf32> to vector<8x16xf32>
    %127 = vector.extract_strided_slice %125 {offsets = [0, 16], sizes = [8, 16], strides = [1, 1]} : vector<8x32xf32> to vector<8x16xf32>
    %128 = arith.negf %127 : vector<8x16xf32>
    %129 = math.exp %128 : vector<8x16xf32>
    %cst_99 = arith.constant 1.000000e+00 : f32
    %130 = vector.broadcast %cst_99 : f32 to vector<8x16xf32>
    %131 = arith.addf %130, %129 : vector<8x16xf32>
    %132 = arith.divf %130, %131 : vector<8x16xf32>
    %133 = arith.mulf %126, %132 : vector<8x16xf32>
    %134 = arith.truncf %85 : vector<128x16xf32> to vector<128x16xbf16>
    %c0_100 = arith.constant 0 : index
    %c0_101 = arith.constant 0 : index
    %135 = vector.load %arg21[%c0_100, %c0_101] : memref<16x16xbf16, #tpu.memory_space<vmem>>, vector<16x16xbf16>
    %cst_102 = arith.constant dense<0.000000e+00> : vector<128x16xf32>
    %136 = tpu.matmul %134, %135, %cst_102 {dimension_numbers = #tpu.dot_dimension_numbers<[1], [0], [0], [1], [0, 0, 1, 1], [], []>} : vector<128x16xbf16>, vector<16x16xbf16>, vector<128x16xf32> -> vector<128x16xf32>
    %c0_103 = arith.constant 0 : index
    %c0_104 = arith.constant 0 : index
    %137 = vector.load %arg22[%c0_103, %c0_104] : memref<1x16xf32, #tpu.memory_space<vmem>>, vector<1x16xf32>
    %138 = vector.broadcast %137 : vector<1x16xf32> to vector<128x16xf32>
    %139 = arith.addf %136, %138 : vector<128x16xf32>
    %140 = vector.shape_cast %139 : vector<128x16xf32> to vector<16x8x16xf32>
    %141 = vector.shape_cast %133 : vector<8x16xf32> to vector<1x8x16xf32>
    %142 = vector.broadcast %141 : vector<1x8x16xf32> to vector<16x8x16xf32>
    %143 = arith.mulf %140, %142 : vector<16x8x16xf32>
    %cst_105 = arith.constant dense<0.000000e+00> : vector<16x8xf32>
    %144 = vector.multi_reduction <add>, %143, %cst_105 [2] : vector<16x8x16xf32> to vector<16x8xf32>
    %cst_106 = arith.constant 1.600000e+01 : f32
    %145 = vector.broadcast %cst_106 : f32 to vector<16x8xf32>
    %146 = arith.divf %144, %145 : vector<16x8xf32>
    %cst_107 = arith.constant dense<0xFF800000> : vector<16x8xf32>
    %147 = vector.multi_reduction <maximumf>, %143, %cst_107 [2] : vector<16x8x16xf32> to vector<16x8xf32>
    %cst_108 = arith.constant 0.000000e+00 : f32
    %148 = vector.broadcast %cst_108 : f32 to vector<3x8xf32>
    %149 = tpu.concatenate %148, %146, %148 in 0 : vector<3x8xf32>, vector<16x8xf32>, vector<3x8xf32> -> vector<22x8xf32>
    %150 = tpu.concatenate %148, %147, %148 in 0 : vector<3x8xf32>, vector<16x8xf32>, vector<3x8xf32> -> vector<22x8xf32>
    %cst_109 = arith.constant 0.000000e+00 : f32
    %151 = vector.broadcast %cst_109 : f32 to vector<16x8xf32>
    %c0_110 = arith.constant 0 : index
    %c0_111 = arith.constant 0 : index
    %152 = memref.load %arg24[%c0_110, %c0_111] : memref<1x1xf32, #tpu.memory_space<smem>>
    %153 = vector.broadcast %152 : f32 to vector<16x8xf32>
    %154 = arith.addf %151, %153 : vector<16x8xf32>
    %c0_112 = arith.constant 0 : index
    %c0_113 = arith.constant 0 : index
    %155 = memref.load %arg23[%c0_112, %c0_113] : memref<2x7xf32, #tpu.memory_space<smem>>
    %c1 = arith.constant 1 : index
    %c0_114 = arith.constant 0 : index
    %156 = memref.load %arg23[%c1, %c0_114] : memref<2x7xf32, #tpu.memory_space<smem>>
    %157 = vector.extract_strided_slice %149 {offsets = [0, 0], sizes = [16, 8], strides = [1, 1]} : vector<22x8xf32> to vector<16x8xf32>
    %158 = vector.broadcast %155 : f32 to vector<16x8xf32>
    %159 = arith.mulf %158, %157 : vector<16x8xf32>
    %160 = arith.addf %154, %159 : vector<16x8xf32>
    %161 = vector.extract_strided_slice %150 {offsets = [0, 0], sizes = [16, 8], strides = [1, 1]} : vector<22x8xf32> to vector<16x8xf32>
    %162 = vector.broadcast %156 : f32 to vector<16x8xf32>
    %163 = arith.mulf %162, %161 : vector<16x8xf32>
    %164 = arith.addf %160, %163 : vector<16x8xf32>
    %c0_115 = arith.constant 0 : index
    %c1_116 = arith.constant 1 : index
    %165 = memref.load %arg23[%c0_115, %c1_116] : memref<2x7xf32, #tpu.memory_space<smem>>
    %c1_117 = arith.constant 1 : index
    %c1_118 = arith.constant 1 : index
    %166 = memref.load %arg23[%c1_117, %c1_118] : memref<2x7xf32, #tpu.memory_space<smem>>
    %167 = vector.extract_strided_slice %149 {offsets = [1, 0], sizes = [16, 8], strides = [1, 1]} : vector<22x8xf32> to vector<16x8xf32>
    %168 = vector.broadcast %165 : f32 to vector<16x8xf32>
    %169 = arith.mulf %168, %167 : vector<16x8xf32>
    %170 = arith.addf %164, %169 : vector<16x8xf32>
    %171 = vector.extract_strided_slice %150 {offsets = [1, 0], sizes = [16, 8], strides = [1, 1]} : vector<22x8xf32> to vector<16x8xf32>
    %172 = vector.broadcast %166 : f32 to vector<16x8xf32>
    %173 = arith.mulf %172, %171 : vector<16x8xf32>
    %174 = arith.addf %170, %173 : vector<16x8xf32>
    %c0_119 = arith.constant 0 : index
    %c2 = arith.constant 2 : index
    %175 = memref.load %arg23[%c0_119, %c2] : memref<2x7xf32, #tpu.memory_space<smem>>
    %c1_120 = arith.constant 1 : index
    %c2_121 = arith.constant 2 : index
    %176 = memref.load %arg23[%c1_120, %c2_121] : memref<2x7xf32, #tpu.memory_space<smem>>
    %177 = vector.extract_strided_slice %149 {offsets = [2, 0], sizes = [16, 8], strides = [1, 1]} : vector<22x8xf32> to vector<16x8xf32>
    %178 = vector.broadcast %175 : f32 to vector<16x8xf32>
    %179 = arith.mulf %178, %177 : vector<16x8xf32>
    %180 = arith.addf %174, %179 : vector<16x8xf32>
    %181 = vector.extract_strided_slice %150 {offsets = [2, 0], sizes = [16, 8], strides = [1, 1]} : vector<22x8xf32> to vector<16x8xf32>
    %182 = vector.broadcast %176 : f32 to vector<16x8xf32>
    %183 = arith.mulf %182, %181 : vector<16x8xf32>
    %184 = arith.addf %180, %183 : vector<16x8xf32>
    %c0_122 = arith.constant 0 : index
    %c3 = arith.constant 3 : index
    %185 = memref.load %arg23[%c0_122, %c3] : memref<2x7xf32, #tpu.memory_space<smem>>
    %c1_123 = arith.constant 1 : index
    %c3_124 = arith.constant 3 : index
    %186 = memref.load %arg23[%c1_123, %c3_124] : memref<2x7xf32, #tpu.memory_space<smem>>
    %187 = vector.extract_strided_slice %149 {offsets = [3, 0], sizes = [16, 8], strides = [1, 1]} : vector<22x8xf32> to vector<16x8xf32>
    %188 = vector.broadcast %185 : f32 to vector<16x8xf32>
    %189 = arith.mulf %188, %187 : vector<16x8xf32>
    %190 = arith.addf %184, %189 : vector<16x8xf32>
    %191 = vector.extract_strided_slice %150 {offsets = [3, 0], sizes = [16, 8], strides = [1, 1]} : vector<22x8xf32> to vector<16x8xf32>
    %192 = vector.broadcast %186 : f32 to vector<16x8xf32>
    %193 = arith.mulf %192, %191 : vector<16x8xf32>
    %194 = arith.addf %190, %193 : vector<16x8xf32>
    %c0_125 = arith.constant 0 : index
    %c4 = arith.constant 4 : index
    %195 = memref.load %arg23[%c0_125, %c4] : memref<2x7xf32, #tpu.memory_space<smem>>
    %c1_126 = arith.constant 1 : index
    %c4_127 = arith.constant 4 : index
    %196 = memref.load %arg23[%c1_126, %c4_127] : memref<2x7xf32, #tpu.memory_space<smem>>
    %197 = vector.extract_strided_slice %149 {offsets = [4, 0], sizes = [16, 8], strides = [1, 1]} : vector<22x8xf32> to vector<16x8xf32>
    %198 = vector.broadcast %195 : f32 to vector<16x8xf32>
    %199 = arith.mulf %198, %197 : vector<16x8xf32>
    %200 = arith.addf %194, %199 : vector<16x8xf32>
    %201 = vector.extract_strided_slice %150 {offsets = [4, 0], sizes = [16, 8], strides = [1, 1]} : vector<22x8xf32> to vector<16x8xf32>
    %202 = vector.broadcast %196 : f32 to vector<16x8xf32>
    %203 = arith.mulf %202, %201 : vector<16x8xf32>
    %204 = arith.addf %200, %203 : vector<16x8xf32>
    %c0_128 = arith.constant 0 : index
    %c5 = arith.constant 5 : index
    %205 = memref.load %arg23[%c0_128, %c5] : memref<2x7xf32, #tpu.memory_space<smem>>
    %c1_129 = arith.constant 1 : index
    %c5_130 = arith.constant 5 : index
    %206 = memref.load %arg23[%c1_129, %c5_130] : memref<2x7xf32, #tpu.memory_space<smem>>
    %207 = vector.extract_strided_slice %149 {offsets = [5, 0], sizes = [16, 8], strides = [1, 1]} : vector<22x8xf32> to vector<16x8xf32>
    %208 = vector.broadcast %205 : f32 to vector<16x8xf32>
    %209 = arith.mulf %208, %207 : vector<16x8xf32>
    %210 = arith.addf %204, %209 : vector<16x8xf32>
    %211 = vector.extract_strided_slice %150 {offsets = [5, 0], sizes = [16, 8], strides = [1, 1]} : vector<22x8xf32> to vector<16x8xf32>
    %212 = vector.broadcast %206 : f32 to vector<16x8xf32>
    %213 = arith.mulf %212, %211 : vector<16x8xf32>
    %214 = arith.addf %210, %213 : vector<16x8xf32>
    %c0_131 = arith.constant 0 : index
    %c6 = arith.constant 6 : index
    %215 = memref.load %arg23[%c0_131, %c6] : memref<2x7xf32, #tpu.memory_space<smem>>
    %c1_132 = arith.constant 1 : index
    %c6_133 = arith.constant 6 : index
    %216 = memref.load %arg23[%c1_132, %c6_133] : memref<2x7xf32, #tpu.memory_space<smem>>
    %217 = vector.extract_strided_slice %149 {offsets = [6, 0], sizes = [16, 8], strides = [1, 1]} : vector<22x8xf32> to vector<16x8xf32>
    %218 = vector.broadcast %215 : f32 to vector<16x8xf32>
    %219 = arith.mulf %218, %217 : vector<16x8xf32>
    %220 = arith.addf %214, %219 : vector<16x8xf32>
    %221 = vector.extract_strided_slice %150 {offsets = [6, 0], sizes = [16, 8], strides = [1, 1]} : vector<22x8xf32> to vector<16x8xf32>
    %222 = vector.broadcast %216 : f32 to vector<16x8xf32>
    %223 = arith.mulf %222, %221 : vector<16x8xf32>
    %224 = arith.addf %220, %223 : vector<16x8xf32>
    %225 = arith.negf %224 : vector<16x8xf32>
    %226 = math.exp %225 : vector<16x8xf32>
    %cst_134 = arith.constant 1.000000e+00 : f32
    %227 = vector.broadcast %cst_134 : f32 to vector<16x8xf32>
    %228 = arith.addf %227, %226 : vector<16x8xf32>
    %229 = arith.divf %227, %228 : vector<16x8xf32>
    %230 = vector.shape_cast %229 : vector<16x8xf32> to vector<16x8x1xf32>
    %231 = vector.broadcast %230 : vector<16x8x1xf32> to vector<16x8x16xf32>
    %232 = arith.mulf %143, %231 : vector<16x8x16xf32>
    %c0_135 = arith.constant 0 : index
    %c0_136 = arith.constant 0 : index
    %c0_137 = arith.constant 0 : index
    %233 = vector.load %arg1[%c0_135, %c0_136, %c0_137] : memref<16x8x16xf32, #tpu.memory_space<vmem>>, vector<16x8x16xf32>
    %234 = arith.addf %232, %233 : vector<16x8x16xf32>
    %c0_138 = arith.constant 0 : index
    %c0_139 = arith.constant 0 : index
    %c0_140 = arith.constant 0 : index
    %235 = vector.load %arg25[%c0_138, %c0_139, %c0_140] : memref<16x8x16xf32, #tpu.memory_space<vmem>>, vector<16x8x16xf32>
    tpu.vector_store %arg25[%c0_138, %c0_139, %c0_140], %234 {strides = array<i32>} : memref<16x8x16xf32, #tpu.memory_space<vmem>>, vector<16x8x16xf32>,
    return
  }
  func.func @transform_0(%arg0: i32) -> (i32, i32, i32) {
    %c0_i32 = arith.constant 0 : i32
    %c0_i32_0 = arith.constant 0 : i32
    %c0_i32_1 = arith.constant 0 : i32
    return %c0_i32, %arg0, %c0_i32_0 : i32, i32, i32
  }
  func.func @transform_1(%arg0: i32) -> (i32, i32) {
    %c0_i32 = arith.constant 0 : i32
    %c0_i32_0 = arith.constant 0 : i32
    %c0_i32_1 = arith.constant 0 : i32
    return %c0_i32, %c0_i32_0 : i32, i32
  }
  func.func @transform_2(%arg0: i32) -> (i32, i32) {
    %c0_i32 = arith.constant 0 : i32
    %c0_i32_0 = arith.constant 0 : i32
    %c0_i32_1 = arith.constant 0 : i32
    return %c0_i32, %c0_i32_0 : i32, i32
  }
  func.func @transform_3(%arg0: i32) -> (i32, i32) {
    %c0_i32 = arith.constant 0 : i32
    %c0_i32_0 = arith.constant 0 : i32
    %c0_i32_1 = arith.constant 0 : i32
    return %c0_i32, %c0_i32_0 : i32, i32
  }
  func.func @transform_4(%arg0: i32) -> (i32, i32) {
    %c0_i32 = arith.constant 0 : i32
    %c0_i32_0 = arith.constant 0 : i32
    %c0_i32_1 = arith.constant 0 : i32
    return %c0_i32, %c0_i32_0 : i32, i32
  }
  func.func @transform_5(%arg0: i32) -> (i32, i32) {
    %c0_i32 = arith.constant 0 : i32
    %c0_i32_0 = arith.constant 0 : i32
    %c0_i32_1 = arith.constant 0 : i32
    return %c0_i32, %c0_i32_0 : i32, i32
  }
  func.func @transform_6(%arg0: i32) -> (i32, i32) {
    %c0_i32 = arith.constant 0 : i32
    %c0_i32_0 = arith.constant 0 : i32
    %c0_i32_1 = arith.constant 0 : i32
    return %c0_i32, %c0_i32_0 : i32, i32
  }
  func.func @transform_7(%arg0: i32) -> (i32, i32) {
    %c0_i32 = arith.constant 0 : i32
    %c0_i32_0 = arith.constant 0 : i32
    %c0_i32_1 = arith.constant 0 : i32
    return %c0_i32, %c0_i32_0 : i32, i32
  }
  func.func @transform_8(%arg0: i32) -> (i32, i32) {
    %c0_i32 = arith.constant 0 : i32
    %c0_i32_0 = arith.constant 0 : i32
    %c0_i32_1 = arith.constant 0 : i32
    return %c0_i32, %c0_i32_0 : i32, i32
  }
  func.func @transform_9(%arg0: i32) -> (i32, i32) {
    %c0_i32 = arith.constant 0 : i32
    %c0_i32_0 = arith.constant 0 : i32
    %c0_i32_1 = arith.constant 0 : i32
    return %c0_i32, %c0_i32_0 : i32, i32
  }
  func.func @transform_10(%arg0: i32) -> (i32, i32) {
    %c0_i32 = arith.constant 0 : i32
    %c0_i32_0 = arith.constant 0 : i32
    %c0_i32_1 = arith.constant 0 : i32
    return %c0_i32, %c0_i32_0 : i32, i32
  }
  func.func @transform_11(%arg0: i32) -> (i32, i32) {
    %c0_i32 = arith.constant 0 : i32
    %c0_i32_0 = arith.constant 0 : i32
    %c0_i32_1 = arith.constant 0 : i32
    return %c0_i32, %c0_i32_0 : i32, i32
  }
  func.func @transform_12(%arg0: i32) -> (i32, i32) {
    %c0_i32 = arith.constant 0 : i32
    %c0_i32_0 = arith.constant 0 : i32
    %c0_i32_1 = arith.constant 0 : i32
    return %c0_i32, %c0_i32_0 : i32, i32
  }
  func.func @transform_13(%arg0: i32) -> (i32, i32) {
    %c0_i32 = arith.constant 0 : i32
    %c0_i32_0 = arith.constant 0 : i32
    %c0_i32_1 = arith.constant 0 : i32
    return %c0_i32, %c0_i32_0 : i32, i32
  }
  func.func @transform_14(%arg0: i32) -> (i32, i32) {
    %c0_i32 = arith.constant 0 : i32
    %c0_i32_0 = arith.constant 0 : i32
    %c0_i32_1 = arith.constant 0 : i32
    return %c0_i32, %c0_i32_0 : i32, i32
  }
  func.func @transform_15(%arg0: i32) -> (i32, i32) {
    %c0_i32 = arith.constant 0 : i32
    %c0_i32_0 = arith.constant 0 : i32
    %c0_i32_1 = arith.constant 0 : i32
    return %c0_i32, %c0_i32_0 : i32, i32
  }
  func.func @transform_16(%arg0: i32) -> (i32, i32) {
    %c0_i32 = arith.constant 0 : i32
    %c0_i32_0 = arith.constant 0 : i32
    %c0_i32_1 = arith.constant 0 : i32
    return %c0_i32, %c0_i32_0 : i32, i32
  }
  func.func @transform_17(%arg0: i32) -> (i32, i32) {
    %c0_i32 = arith.constant 0 : i32
    %c0_i32_0 = arith.constant 0 : i32
    %c0_i32_1 = arith.constant 0 : i32
    return %c0_i32, %c0_i32_0 : i32, i32
  }
  func.func @transform_18(%arg0: i32) -> (i32, i32) {
    %c0_i32 = arith.constant 0 : i32
    %c0_i32_0 = arith.constant 0 : i32
    %c0_i32_1 = arith.constant 0 : i32
    return %c0_i32, %c0_i32_0 : i32, i32
  }
  func.func @transform_19(%arg0: i32) -> (i32, i32) {
    %c0_i32 = arith.constant 0 : i32
    %c0_i32_0 = arith.constant 0 : i32
    %c0_i32_1 = arith.constant 0 : i32
    return %c0_i32, %c0_i32_0 : i32, i32
  }
  func.func @transform_20(%arg0: i32) -> (i32, i32) {
    %c0_i32 = arith.constant 0 : i32
    %c0_i32_0 = arith.constant 0 : i32
    %c0_i32_1 = arith.constant 0 : i32
    return %c0_i32, %c0_i32_0 : i32, i32
  }
  func.func @transform_21(%arg0: i32) -> (i32, i32) {
    %c0_i32 = arith.constant 0 : i32
    %c0_i32_0 = arith.constant 0 : i32
    %c0_i32_1 = arith.constant 0 : i32
    return %c0_i32, %c0_i32_0 : i32, i32
  }
  func.func @transform_22(%arg0: i32) -> (i32, i32) {
    %c0_i32 = arith.constant 0 : i32
    %c0_i32_0 = arith.constant 0 : i32
    %c0_i32_1 = arith.constant 0 : i32
    return %c0_i32, %c0_i32_0 : i32, i32
  }
  func.func @transform_23(%arg0: i32) -> (i32, i32) {
    %c0_i32 = arith.constant 0 : i32
    %c0_i32_0 = arith.constant 0 : i32
    %c0_i32_1 = arith.constant 0 : i32
    return %c0_i32, %c0_i32_0 : i32, i32
  }
  func.func @transform_24(%arg0: i32) -> (i32, i32, i32) {
    %c0_i32 = arith.constant 0 : i32
    %c0_i32_0 = arith.constant 0 : i32
    %c0_i32_1 = arith.constant 0 : i32
    return %c0_i32, %arg0, %c0_i32_0 : i32, i32, i32
  }
}

</mosaic_0001>

<bundles_post_ra>
// kernel: band_sequence_model.5
= control target key start
LH: loop header
LB: loop body
LE: loop exit
PB: predicated region body
PF: predicated region fallthrough
CT: control target
= control target key end

     0   :  { %s4299_s0 = inlined_call_operand.vmem [shape: f32[4,32,16], index: 0, kind: input, shape index: {}]   ;;  %s4300_s1 = inlined_call_operand.vmem [shape: f32[1,16], index: 1, kind: input, shape index: {}]   ;;  %s4301_s2 = inlined_call_operand.vmem [shape: f32[1,16], index: 2, kind: input, shape index: {}]   ;;  %s4302_s3 = inlined_call_operand.vmem [shape: bf16[16,256], index: 3, kind: input, shape index: {}]   ;;  %s4303_s4 = inlined_call_operand.vmem [shape: f32[1,256], index: 4, kind: input, shape index: {}]   ;;  %s4304_s5 = inlined_call_operand.vmem [shape: bf16[32,128], index: 5, kind: input, shape index: {}]   ;;  %s4305_s6 = inlined_call_operand.vmem [shape: bf16[32,128], index: 6, kind: input, shape index: {}]   ;;  %s4306_s7 = inlined_call_operand.vmem [shape: bf16[32,32], index: 7, kind: input, shape index: {}]   ;;  %s4307_s8 = inlined_call_operand.vmem [shape: bf16[32,32], index: 8, kind: input, shape index: {}]   ;;  %s4308_s9 = inlined_call_operand.vmem [shape: f32[1,32], index: 9, kind: input, shape index: {}]   ;;  %s4309_s10 = inlined_call_operand.vmem [shape: bf16[32,16], index: 10, kind: input, shape index: {}]   ;;  %s4310_s11 = inlined_call_operand.vmem [shape: f32[1,16], index: 11, kind: input, shape index: {}]   ;;  %s4311_s12 = inlined_call_operand.vmem [shape: bf16[16,32], index: 12, kind: input, shape index: {}]   ;;  %s4312_s13 = inlined_call_operand.vmem [shape: f32[1,32], index: 13, kind: input, shape index: {}]   ;;  %s4313_s14 = inlined_call_operand.vmem [shape: bf16[16,32], index: 14, kind: input, shape index: {}]   ;;  %s4314_s15 = inlined_call_operand.vmem [shape: f32[1,32], index: 15, kind: input, shape index: {}]   ;;  %s4315_s16 = inlined_call_operand.vmem [shape: bf16[32,16], index: 16, kind: input, shape index: {}]   ;;  %s4316_s17 = inlined_call_operand.vmem [shape: f32[1,16], index: 17, kind: input, shape index: {}]   ;;  %s4317_s18 = inlined_call_operand.vmem [shape: bf16[16,32], index: 18, kind: input, shape index: {}]   ;;  %s4318_s19 = inlined_call_operand.vmem [shape: f32[1,32], index: 19, kind: input, shape index: {}]   ;;  %s4319_s20 = inlined_call_operand.vmem [shape: bf16[16,16], index: 20, kind: input, shape index: {}]   ;;  %s4320_s21 = inlined_call_operand.vmem [shape: f32[1,16], index: 21, kind: input, shape index: {}]   ;;  %s4321_s22 = inlined_call_operand.vmem [shape: f32[2,7], index: 22, kind: input, shape index: {}]   ;;  %s4322_s23 = inlined_call_operand.<no memory space> [shape: f32[1,1], index: 23, kind: input, shape index: {}]   ;;  %s4323_s24 = inlined_call_operand.vmem [shape: f32[4,32,16], index: 24, kind: output, shape index: {}]  }
   0x1   :  { %4333 = sst [smem:[#allocation19_spill]] %s4299_s0 }
   0x2   :  { %4334 = sst [smem:[#allocation20_spill]] %s4300_s1 }
   0x3   :  { %4335 = sst [smem:[#allocation21_spill]] %s4301_s2 }
   0x4   :  { %4336 = sst [smem:[#allocation22_spill]] %s4302_s3 }
   0x5   :  { %4337 = sst [smem:[#allocation23_spill]] %s4303_s4 }
   0x6   :  { %4338 = sst [smem:[#allocation24_spill]] %s4304_s5 }
   0x7   :  { %4339 = sst [smem:[#allocation25_spill]] %s4305_s6 }
   0x8   :  { %4340 = sst [smem:[#allocation26_spill]] %s4306_s7 }
   0x9   :  { %4341 = sst [smem:[#allocation27_spill]] %s4307_s8 }
   0xa   :  { %4342 = sst [smem:[#allocation28_spill]] %s4321_s22 }
   0xb   :  { %29 = sst [smem:[#allocation11]] %s4322_s23 }
   0xc   :  { %30 = vsyncpa [#allocation14], 0  ;;  %s3625_s27 = smov 0   ;;  %s3627_s28 = smov 0  }
   0xd   :  { %s3629_s6 = smov 0  }
   0xe LB: > { %s3641_s23 = sadd.s32 4294967295, %s3481_s6   ;;  %s3644_s2 = sadd.s32 1, %s3481_s6   ;;  %s3481_s6 = sphi %s3629_s6, %s4359_s6   ;;  %s3477_s28 = sphi %s3627_s28, %s4362_s28   ;;  %s3473_s27 = sphi %s3625_s27, %s4361_s27  }
   0xf   : > { %4343 = sst [smem:[#allocation17_spill]] %s3644_s2  ;;  %s40_s29 = ssub.s32 %s3481_s6, %s3644_s2 }
  0x10   : > { %s43_s0 = sadd.s32 1, %s3477_s28  ;;  %p41_p0 = scmp.eq.s32.totalorder %s40_s29, 0 }
  0x11   : > { %p50_p1 = scmp.ne.s32.totalorder %s3477_s28, %s3473_s27  ;;  %p51_p2 = scmp.eq.s32.totalorder %s3481_s6, 0 }
  0x12   : > { %p563_p3 = scmp.eq.s32.totalorder %s3641_s23, 1  ;;  %p2960_p6 = scmp.ge.s32.totalorder %s3481_s6, 1 }
  0x13   : > { %s3654_s7 = scalar_select %p41_p0, %s3477_s28, %s43_s0  }
  0x14   : > { %p3656_p4 = por %p51_p2, %p50_p1  ;;  %p3660_p5 = por %p563_p3, %p50_p1 }
  0x15   : > { %4344 = sst [smem:[#allocation18_spill]] %s3654_s7  ;;  %p576_p7 = scmp.lt.s32.totalorder %s3481_s6, 3 }
  0x16   : > { %s4346_s3 = scalar_select %p3660_p5, 1, 0 }
  0x17   : > { %p3269_p8 = scmp.eq.s32.totalorder %s3641_s23, 0  ;;  %p3667_p9 = pnand %p2960_p6, %p576_p7 }
  0x18   : > { %s4348_s22 = sld [smem:[#allocation28_spill]] }
  0x19   : > { %p3265_p10 = pneg %p3667_p9 }
  0x1b   : > { %p3266_p11 = pnand %p3269_p8, %p3265_p10 }
  0x1d   : > { %p3438_p13 = pneg %p3266_p11 }
  0x1e   : > { %s652_s1 = sshll.u32 %s4348_s22, 4  ;;  %s653_s1 = int_to_ptr.vmem [resolvable:$true] %s652_s1 }
  0x1f   : > { %s3436_s5 = scalar_lea.vmem %s653_s1, 32  ;;  %p3444_p2 = scmp.lt.s32.totalorder %s653_s1, %s653_s1 }
  0x20   : > { %p3437_p12 = scmp.ne.s32.totalorder %s653_s1, %s3436_s5  ;;  %p3445_p3 = scmp.lt.s32.totalorder %s3436_s5, %s3436_s5 }
  0x22   : > { %p3439_p0 = pnand %p3438_p13, %p3437_p12  ;;  %p3446_p6 = por %p3445_p3, %p3444_p2 }
  0x24   : > { %p3440_p1 = pneg %p3439_p0 }
  0x26   : > { %p3447_p7 = pnand %p3446_p6, %p3440_p1 }
  0x28   : > { %3450 = shalt.err (!%p3447_p7)
}
  0x29   : > { %s3487_s26 = smov [#allocation13]   ;;  %p2962_p5 = scmp.ge.s32.totalorder %s3481_s6, 2 }
  0x2a   : > { %3268 = dma.vmem_to_smem (!%p3266_p11), %s653_s1, 32, %s3487_s26, [#allocation14]  }
  0x2b   : > { %662 = sbr.rel (%p2962_p5) target bundleno = 62 (0x3e), region = 108 }
  0x30   : > { %665 = sbr.rel (!%p3656_p4) target bundleno = 62 (0x3e), region = 112  ;;  %s667_s29 = sand.u32 (%p3656_p4), 1, %s3477_s28  }
  0x31   : > { %s3091_s0 = sshll.u32 (%p3656_p4), %s3481_s6, 4  ;;  %s2963_s8 = sshll.u32 (%p3656_p4), %s667_s29, 6 }
  0x32   : > { %s4349_s7 = sld [smem:[#allocation19_spill]] (%p3656_p4)  ;;  %s669_s2 = scalar_lea.vmem (%p3656_p4), [#allocation12], %s2963_s8 }
  0x38   : > { %s672_s5 = scalar_lea.vmem %s4349_s7, %s3091_s0 }
  0x39   : > { %v715_v0 = vld [vmem:[%s672_s5] sm:$0xff]  ;;  %v717_v1 = vld [vmem:[%s672_s5 + $0x8] sm:$0xff] }
  0x3a   : > { %v719_v2 = vld [vmem:[%s672_s5 + $0x20] sm:$0xff]  ;;  %716 = vst [vmem:[%s669_s2] sm:$0xff] %v715_v0  ;;  %718 = vst [vmem:[%s669_s2 + $0x8] sm:$0xff] %v717_v1  ;;  %v721_v3 = vld [vmem:[%s672_s5 + $0x28] sm:$0xff] }
  0x3b   : > { %720 = vst [vmem:[%s669_s2 + $0x10] sm:$0xff] %v719_v2  ;;  %v723_v4 = vld [vmem:[%s672_s5 + $0x40] sm:$0xff]  ;;  %v725_v5 = vld [vmem:[%s672_s5 + $0x48] sm:$0xff]  ;;  %722 = vst [vmem:[%s669_s2 + $0x18] sm:$0xff] %v721_v3 }
  0x3c   : > { %724 = vst [vmem:[%s669_s2 + $0x20] sm:$0xff] %v723_v4  ;;  %726 = vst [vmem:[%s669_s2 + $0x28] sm:$0xff] %v725_v5  ;;  %v727_v6 = vld [vmem:[%s672_s5 + $0x60] sm:$0xff]  ;;  %v729_v7 = vld [vmem:[%s672_s5 + $0x68] sm:$0xff] }
  0x3d   : > { %728 = vst [vmem:[%s669_s2 + $0x30] sm:$0xff] %v727_v6  ;;  %730 = vst [vmem:[%s669_s2 + $0x38] sm:$0xff] %v729_v7 }
  0x3e PF: > { %739 = sbr.rel (%p3667_p9) target bundleno = 2996 (0xbb4), region = 150  ;;  %s742_s22 = sand.u32 (!%p3667_p9), 1, %s3473_s27  }
  0x3f   : > { %s3689_s6 = sshll.u32 (!%p3667_p9), %s742_s22, 6 }
  0x40   : > { %s3692_s7 = scalar_lea.vmem (!%p3667_p9), [#allocation12], %s3689_s6 }
  0x43   : > { %3468 = dma.done.wait (%p3269_p8), [#allocation14], 32  }
  0x44   : > { %3470 = vsyncadd (%p3269_p8), [#allocation14], 4294967264 }
  0x45   : > { %752 = sfence }
  0x46   : > { %s4350_s1 = sld [smem:[#allocation22_spill]]  ;;  %v3488_v10 = vmov 0   ;;  %v814_v11 = vld [vmem:[%s3692_s7] sm:$0xff]  ;;  %v815_v12 = vld [vmem:[%s3692_s7 + $0x8] sm:$0xff]  ;;  %vm822_vm0 = vcmask 130048   ;;  %v816_v13 = vld [vmem:[%s3692_s7 + $0x10] sm:$0xff] }
  0x47   : > { %1051 = vmatprep.mubr.bf16.mxu0 %v3488_v10  ;;  %1071 = vmatprep.mubr.bf16.mxu1 %v3488_v10  ;;  %v817_v14 = vld [vmem:[%s3692_s7 + $0x18] sm:$0xff]  ;;  %v818_v15 = vld [vmem:[%s3692_s7 + $0x20] sm:$0xff]  ;;  %v823_v16 = vsel %vm822_vm0, %v814_v11, 0.0  ;;  %v830_v17 = vsel %vm822_vm0, %v815_v12, 0.0  ;;  %v819_v18 = vld [vmem:[%s3692_s7 + $0x28] sm:$0xff]  ;;  %v824_v21 = vsel %vm822_vm0, %v816_v13, 0.0 }
  0x48   : > { %v820_v19 = vld [vmem:[%s3692_s7 + $0x30] sm:$0xff]  ;;  %v821_v20 = vld [vmem:[%s3692_s7 + $0x38] sm:$0xff]  ;;  %v826_v22 = vsel %vm822_vm0, %v818_v15, 0.0  ;;  %v831_v23 = vsel %vm822_vm0, %v817_v14, 0.0  ;;  %v825_v24 = vadd.f32 %v824_v21, %v823_v16  ;;  %v833_v26 = vsel %vm822_vm0, %v819_v18, 0.0  ;;  %s4351_s0 = sld [smem:[#allocation20_spill]] }
  0x49   : > { %v832_v25 = vadd.f32 %v831_v23, %v830_v17  ;;  %v828_v27 = vsel %vm822_vm0, %v820_v19, 0.0  ;;  %v835_v28 = vsel %vm822_vm0, %v821_v20, 0.0  ;;  %vm946_vm1 = vcmask 125952   ;;  %s4352_s5 = sld [smem:[#allocation21_spill]] }
  0x4a   : > { %v827_v29 = vadd.f32 %v826_v22, %v825_v24  ;;  %vm1116_vm2 = vcmask 261120   ;;  %s4353_s30 = sld [smem:[#allocation24_spill]] }
  0x4b   : > { %v834_v30 = vadd.f32 %v833_v26, %v832_v25  ;;  %s4354_s22 = sld [smem:[#allocation25_spill]] }
  0x4c   : > { %v3313_v8 = vld [vmem:[%s4350_s1 + $0x4] ss:$8 sps:$4 sm:$0xff]   ;;  %v3315_v9 = vld [vmem:[%s4350_s1] ss:$8 sps:$4 sm:$0xff]   ;;  %v829_v31 = vadd.f32 %v828_v27, %v827_v29  ;;  %s4355_s4 = sld [smem:[#allocation23_spill]]  ;;  %s3819_s1 = scalar_lea.vmem [#allocation15], %s3689_s6 }
  0x4d   : > { %1033 = vmatprep.subr.bf16.mxu0 %v3313_v8  ;;  %3259 = vmatprep.subr.bf16.mxu1 %v3313_v8  ;;  %v836_v32 = vadd.f32 %v835_v28, %v834_v30 }
  0x4e   : > { %1034 = vmatpush1.bf16.msra.mxu0 %v3315_v9  ;;  %3260 = vmatpush1.bf16.msra.mxu1 %v3315_v9  ;;  %v838_v33 = vmul.f32 0.25, %v829_v31  ;;  %v2970_v6 = vld [vmem:[%s4351_s0] ss:$0 sm:$0xff] }
  0x4f   : > { %v839_v34 = vmul.f32 0.25, %v836_v32 }
  0x50   : > { %v840_v35 = vsub.f32 %v814_v11, %v838_v33  ;;  %v842_v37 = vsub.f32 %v816_v13, %v838_v33  ;;  %v844_v39 = vsub.f32 %v818_v15, %v838_v33  ;;  %v846_v41 = vsub.f32 %v820_v19, %v838_v33 }
  0x51   : > { %v841_v36 = vsub.f32 %v815_v12, %v839_v34  ;;  %v843_v38 = vsub.f32 %v817_v14, %v839_v34  ;;  %v845_v40 = vsub.f32 %v819_v18, %v839_v34  ;;  %v847_v42 = vsub.f32 %v821_v20, %v839_v34  ;;  %v2971_v14 = vld [vmem:[%s4352_s5] ss:$0 sm:$0xff]  ;;  %s3821_s5 = smov 0  }
  0x52   : > { %v848_v43 = vmul.f32 %v840_v35, %v840_v35  ;;  %v850_v45 = vmul.f32 %v842_v37, %v842_v37  ;;  %v852_v47 = vmul.f32 %v844_v39, %v844_v39  ;;  %v854_v49 = vmul.f32 %v846_v41, %v846_v41 }
  0x53   : > { %v849_v44 = vmul.f32 %v841_v36, %v841_v36  ;;  %v851_v46 = vmul.f32 %v843_v38, %v843_v38  ;;  %v853_v48 = vmul.f32 %v845_v40, %v845_v40  ;;  %v855_v50 = vmul.f32 %v847_v42, %v847_v42 }
  0x54   : > { %v856_v51 = vsel %vm822_vm0, %v848_v43, 0.0  ;;  %v857_v52 = vsel %vm822_vm0, %v850_v45, 0.0  ;;  %v859_v56 = vsel %vm822_vm0, %v852_v47, 0.0  ;;  %v861_v58 = vsel %vm822_vm0, %v854_v49, 0.0  ;;  %v3758_v47 = vld [vmem:[%s4353_s30 + $0x4] sm:$0xf] }
  0x55   : > { %v863_v53 = vsel %vm822_vm0, %v849_v44, 0.0  ;;  %v864_v54 = vsel %vm822_vm0, %v851_v46, 0.0  ;;  %v858_v55 = vadd.f32 %v857_v52, %v856_v51  ;;  %v866_v59 = vsel %vm822_vm0, %v853_v48, 0.0  ;;  %v3753_v46 = vld [vmem:[%s4353_s30] sm:$0xf] }
  0x56   : > { %v865_v57 = vadd.f32 %v864_v54, %v863_v53  ;;  %v868_v60 = vsel %vm822_vm0, %v855_v50, 0.0  ;;  %v3489_v48 = vmov 0.0   ;;  %v3784_v49 = vld [vmem:[%s4353_s30 + $0xc] sm:$0xf]  ;;  %v3789_v50 = vld [vmem:[%s4354_s22] sm:$0xf]  ;;  %v967_v54 = vlaneseq }
  0x57   : > { %v860_v61 = vadd.f32 %v859_v56, %v858_v55  ;;  %1117 = vst.msk [vmem:[#allocation7] sm:$0xff] %vm1116_vm2, %v3489_v48  ;;  %1118 = vst.msk [vmem:[#allocation7 + $0x8] sm:$0xff] %vm1116_vm2, %v3489_v48  ;;  %v3794_v51 = vld [vmem:[%s4354_s22 + $0x4] sm:$0xf]  ;;  %v3799_v52 = vld [vmem:[%s4354_s22 + $0x8] sm:$0xf] }
  0x58   : > { %v867_v62 = vadd.f32 %v866_v59, %v865_v57  ;;  %1119 = vst.msk [vmem:[#allocation8] sm:$0xff] %vm1116_vm2, %v3489_v48  ;;  %1120 = vst.msk [vmem:[#allocation8 + $0x8] sm:$0xff] %vm1116_vm2, %v3489_v48  ;;  %v3804_v53 = vld [vmem:[%s4354_s22 + $0xc] sm:$0xf]  ;;  %v3807_v55 = vshrl.u32 %v967_v54, 7 }
  0x59   : > { %v862_v63 = vadd.f32 %v861_v58, %v860_v61  ;;  %1121 = vst.msk [vmem:[#allocation9] sm:$0xff] %vm1116_vm2, %v3489_v48  ;;  %1122 = vst.msk [vmem:[#allocation9 + $0x8] sm:$0xff] %vm1116_vm2, %v3489_v48  ;;  %v965_v57 = vld [vmem:[%s4355_s4] sm:$0x3] }
  0x5a   : > { %v869_v0 = vadd.f32 %v868_v60, %v867_v62  ;;  %1123 = vst.msk [vmem:[#allocation10] sm:$0xff] %vm1116_vm2, %v3489_v48  ;;  %1124 = vst.msk [vmem:[#allocation10 + $0x8] sm:$0xff] %vm1116_vm2, %v3489_v48  ;;  %v969_v56 = vsub.s32 0, %v3807_v55  ;;  %v973_v58 = vsub.s32 1, %v3807_v55 }
  0x5b   : > { %v870_v1 = vmul.f32 0.25, %v862_v63 }
  0x5c   : > { %v871_v2 = vmul.f32 0.25, %v869_v0  ;;  %v970_v59 = vrot.slane %v965_v57, %v969_v56  ;;  %v974_v60 = vrot.slane %v965_v57, %v973_v58 }
  0x5d   : > { %v872_v3 = vadd.f32 1e-05, %v870_v1 }
  0x5e   : > { %v873_v4 = vadd.f32 1e-05, %v871_v2 }
  0x5f   : > { %3320 = vrsqrt.f32 %v872_v3 }
  0x60   : > { %3322 = vrsqrt.f32 %v873_v4 }
  0x6c   : > { %v3321_v5 = vpop.eup %3320 }
  0x6d   : > { %v3323_v7 = vpop.eup %3322  ;;  %v876_v8 = vmul.f32 %v3321_v5, %v840_v35  ;;  %v880_v9 = vmul.f32 %v3321_v5, %v844_v39  ;;  %v878_v11 = vmul.f32 %v3321_v5, %v842_v37  ;;  %v882_v12 = vmul.f32 %v3321_v5, %v846_v41 }
  0x6e   : > { %v877_v13 = vmul.f32 %v3323_v7, %v841_v36  ;;  %v881_v15 = vmul.f32 %v3323_v7, %v845_v40  ;;  %v879_v16 = vmul.f32 %v3323_v7, %v843_v38  ;;  %v883_v17 = vmul.f32 %v3323_v7, %v847_v42 }
  0x6f   : > { %v891_v18 = vmul.f32 %v2970_v6, %v876_v8  ;;  %v895_v19 = vmul.f32 %v2970_v6, %v880_v9  ;;  %v893_v20 = vmul.f32 %v2970_v6, %v878_v11  ;;  %v897_v21 = vmul.f32 %v2970_v6, %v882_v12 }
  0x70   : > { %v892_v22 = vmul.f32 %v2970_v6, %v877_v13  ;;  %v896_v23 = vmul.f32 %v2970_v6, %v881_v15  ;;  %v894_v24 = vmul.f32 %v2970_v6, %v879_v16  ;;  %v898_v25 = vmul.f32 %v2970_v6, %v883_v17 }
  0x71   : > { %v906_v26 = vadd.f32 %v2971_v14, %v891_v18  ;;  %v910_v27 = vadd.f32 %v2971_v14, %v895_v19  ;;  %v908_v28 = vadd.f32 %v2971_v14, %v893_v20  ;;  %v912_v29 = vadd.f32 %v2971_v14, %v897_v21 }
  0x72   : > { %v907_v30 = vadd.f32 %v2971_v14, %v892_v22  ;;  %v911_v31 = vadd.f32 %v2971_v14, %v896_v23  ;;  %v909_v32 = vadd.f32 %v2971_v14, %v894_v24  ;;  %v913_v33 = vadd.f32 %v2971_v14, %v898_v25 }
  0x73   : > { %v3092_v34 = vpack.c.bf16 %v906_v26, %v906_v26  ;;  %v3096_v35 = vpack.c.bf16 %v910_v27, %v910_v27  ;;  %v3094_v36 = vpack.c.bf16 %v908_v28, %v908_v28  ;;  %v3098_v37 = vpack.c.bf16 %v912_v29, %v912_v29 }
  0x74   : > { %v3093_v38 = vpack.c.bf16 %v907_v30, %v907_v30  ;;  %v3097_v39 = vpack.c.bf16 %v911_v31, %v911_v31  ;;  %v3095_v40 = vpack.c.bf16 %v909_v32, %v909_v32  ;;  %v3099_v41 = vpack.c.bf16 %v913_v33, %v913_v33 }
  0x75   : > { %947 = vst.msk [vmem:[#allocation2] sm:$0xf] %vm946_vm1, %v3092_v34  ;;  %951 = vst.msk [vmem:[#allocation2 + $0x10] sm:$0xf] %vm946_vm1, %v3096_v35 }
  0x76   : > { %949 = vst.msk [vmem:[#allocation2 + $0x8] sm:$0xf] %vm946_vm1, %v3094_v36  ;;  %953 = vst.msk [vmem:[#allocation2 + $0x18] sm:$0xf] %vm946_vm1, %v3098_v37 }
  0x77   : > { %948 = vst.msk [vmem:[#allocation2 + $0x4] sm:$0xf] %vm946_vm1, %v3093_v38  ;;  %952 = vst.msk [vmem:[#allocation2 + $0x14] sm:$0xf] %vm946_vm1, %v3097_v39 }
  0x78   : > { %950 = vst.msk [vmem:[#allocation2 + $0xc] sm:$0xf] %vm946_vm1, %v3095_v40  ;;  %954 = vst.msk [vmem:[#allocation2 + $0x1c] sm:$0xf] %vm946_vm1, %v3099_v41 }
  0x7e   : > { %v3316_v42 = vld [vmem:[#allocation2] sm:$0xff]   ;;  %v3317_v43 = vld [vmem:[#allocation2 + $0x10] sm:$0xff]  }
  0x7f   : > { %2986 = vmatmul.mubr.msk.bf16.vlgmr.msra.gmra.mxu0 %vm822_vm0, %v3316_v42  ;;  %2988 = vmatmul.mubr.msk.bf16.vlgmr.msra.gmra.mxu1 %vm822_vm0, %v3317_v43  ;;  %v3318_v44 = vld [vmem:[#allocation2 + $0x8] sm:$0xff]   ;;  %v3319_v45 = vld [vmem:[#allocation2 + $0x18] sm:$0xff]  }
  0x80   : > { %1061 = vmatprep.mubr.bf16.mxu0 %v3488_v10  ;;  %1081 = vmatprep.mubr.bf16.mxu1 %v3488_v10  ;;  %v3763_v10 = vld [vmem:[%s4353_s30 + $0x8] sm:$0xf] }
  0x87   : > { %2987 = vmatmul.mubr.msk.bf16.gmra.mxu0 %vm822_vm0, %v3318_v44  ;;  %2989 = vmatmul.mubr.msk.bf16.gmra.mxu1 %vm822_vm0, %v3319_v45 }
 0x13f   : > { %v1053_v61 = vpop.f32.mrf.mxu0  ;;  %v1073_v63 = vpop.f32.mrf.mxu1 }
 0x140   : > { %v1054_v62 = vadd.f32 %v1053_v61, %v970_v59  ;;  %v1074_v0 = vadd.f32 %v1073_v63, %v970_v59 }
 0x141   : > { %v1055_v1 = vpop.f32.mrf.mxu0  ;;  %v1075_v3 = vpop.f32.mrf.mxu1 }
 0x142   : > { %1092 = vst [vmem:[#allocation3] sm:$0xff] %v1054_v62  ;;  %v1056_v2 = vadd.f32 %v1055_v1, %v974_v60  ;;  %1096 = vst [vmem:[#allocation3 + $0x20] sm:$0xff] %v1074_v0  ;;  %v1076_v4 = vadd.f32 %v1075_v3, %v974_v60 }
 0x143   : > { %v1057_v5 = vpop.f32.mrf.mxu0  ;;  %v1077_v7 = vpop.f32.mrf.mxu1 }
 0x144   : > { %1100 = vst [vmem:[#allocation4] sm:$0xff] %v1056_v2  ;;  %v1058_v6 = vadd.f32 %v1057_v5, %v970_v59  ;;  %1104 = vst [vmem:[#allocation4 + $0x20] sm:$0xff] %v1076_v4  ;;  %v1078_v8 = vadd.f32 %v1077_v7, %v970_v59 }
 0x145   : > { %v1059_v9 = vpop.f32.mrf.mxu0  ;;  %v1079_v12 = vpop.f32.mrf.mxu1 }
 0x146   : > { %1093 = vst [vmem:[#allocation3 + $0x8] sm:$0xff] %v1058_v6  ;;  %v1060_v11 = vadd.f32 %v1059_v9, %v974_v60  ;;  %1097 = vst [vmem:[#allocation3 + $0x28] sm:$0xff] %v1078_v8  ;;  %v1080_v13 = vadd.f32 %v1079_v12, %v974_v60 }
 0x147   : > { %v1063_v14 = vpop.f32.mrf.mxu0  ;;  %v1083_v16 = vpop.f32.mrf.mxu1 }
 0x148   : > { %1101 = vst [vmem:[#allocation4 + $0x8] sm:$0xff] %v1060_v11  ;;  %v1064_v15 = vadd.f32 %v1063_v14, %v970_v59  ;;  %1105 = vst [vmem:[#allocation4 + $0x28] sm:$0xff] %v1080_v13  ;;  %v1084_v17 = vadd.f32 %v1083_v16, %v970_v59 }
 0x149   : > { %v1065_v18 = vpop.f32.mrf.mxu0  ;;  %v1085_v20 = vpop.f32.mrf.mxu1 }
 0x14a   : > { %1094 = vst [vmem:[#allocation3 + $0x10] sm:$0xff] %v1064_v15  ;;  %v1066_v19 = vadd.f32 %v1065_v18, %v974_v60  ;;  %1098 = vst [vmem:[#allocation3 + $0x30] sm:$0xff] %v1084_v17  ;;  %v1086_v21 = vadd.f32 %v1085_v20, %v974_v60 }
 0x14b   : > { %v1067_v22 = vpop.f32.mrf.mxu0  ;;  %v1087_v24 = vpop.f32.mrf.mxu1 }
 0x14c   : > { %1102 = vst [vmem:[#allocation4 + $0x10] sm:$0xff] %v1066_v19  ;;  %v1068_v23 = vadd.f32 %v1067_v22, %v970_v59  ;;  %1106 = vst [vmem:[#allocation4 + $0x30] sm:$0xff] %v1086_v21  ;;  %v1088_v25 = vadd.f32 %v1087_v24, %v970_v59 }
 0x14d   : > { %v1069_v26 = vpop.f32.mrf.mxu0  ;;  %v1089_v28 = vpop.f32.mrf.mxu1 }
 0x14e   : > { %1095 = vst [vmem:[#allocation3 + $0x18] sm:$0xff] %v1068_v23  ;;  %v1070_v27 = vadd.f32 %v1069_v26, %v974_v60  ;;  %1099 = vst [vmem:[#allocation3 + $0x38] sm:$0xff] %v1088_v25  ;;  %v1090_v29 = vadd.f32 %v1089_v28, %v974_v60 }
 0x150   : > { %1103 = vst [vmem:[#allocation4 + $0x18] sm:$0xff] %v1070_v27  ;;  %1107 = vst [vmem:[#allocation4 + $0x38] sm:$0xff] %v1090_v29 }
 0x151 LB: >> { %v2992_v30 = vcombine.low %v3763_v10, %v3784_v49  ;;  %v2998_v31 = vcombine.low %v3799_v52, %v3804_v53  ;;  %v3490_v32 = vmov 0.0   ;;  %v1136_v33 = vld [vmem:[#allocation7] sm:$0xff]  ;;  %v2991_v34 = vcombine.low %v3753_v46, %v3758_v47  ;;  %v1137_v36 = vld [vmem:[#allocation7 + $0x8] sm:$0xff]  ;;  %s1131_s6 = ssub.s32 3, %s3485_s5  ;;  %s2990_s2 = sshll.u32 %s3485_s5, 4  ;;  %v1138_v9 = vld [vmem:[#allocation8] sm:$0xff]  ;;  %s3485_s5 = sphi %s3821_s5, %s1130_s5  }
 0x152   : >> { %3153 = vmatprep.subr.bf16.mxu0 %v3490_v32  ;;  %3161 = vmatprep.subr.bf16.mxu1 %v3490_v32  ;;  %v2997_v35 = vcombine.low %v3789_v50, %v3794_v51  ;;  %v1259_v37 = vld [vmem:[#allocation9] sm:$0xff]  ;;  %v1260_v38 = vld [vmem:[#allocation9 + $0x8] sm:$0xff]  ;;  %vm3491_vm3 = vmmov 0   ;;  %v1140_v39 = vpack.c.bf16 %v1137_v36, %v1136_v33  ;;  %s2996_s27 = sshll.u32 %s1131_s6, 4  ;;  %s1133_s25 = scalar_lea.vmem [#allocation3], %s2990_s2  ;;  %v1139_v11 = vld [vmem:[#allocation8 + $0x8] sm:$0xff] }
 0x153   : >> { %3154 = vmatpush3.bf16.msra.mxu0 %v2992_v30  ;;  %3162 = vmatpush3.bf16.msra.mxu1 %v2998_v31  ;;  %v1263_v40 = vpack.c.bf16 %v1260_v38, %v1259_v37  ;;  %s1256_s26 = scalar_lea.vmem [#allocation4], %s2996_s27  ;;  %s3492_s29 = smov 64   ;;  %v1261_v12 = vld [vmem:[#allocation10] sm:$0xff]  ;;  %v1262_v13 = vld [vmem:[#allocation10 + $0x8] sm:$0xff]  ;;  %vm1433_vm4 = vcmask 257024  }
 0x154   : >> { %3155 = vmatprep.subr.bf16.mxu0 %v3490_v32  ;;  %3163 = vmatprep.subr.bf16.mxu1 %v3490_v32  ;;  %s3493_s0 = smov 32   ;;  %s3494_s8 = smov 96  }
 0x155   : >> { %3157 = vmatprep.mubr.msk.bf16.mxu0 %vm3491_vm3, %v3490_v32  ;;  %3165 = vmatprep.mubr.msk.bf16.mxu1 %vm3491_vm3, %v3490_v32  ;;  %v1134_v41 = vld [vmem:[%s1133_s25] sm:$0xff]  ;;  %v1135_v61 = vld [vmem:[%s1133_s25 + $0x8] sm:$0xff]  ;;  %s3102_s4 = sshll.u32 %s3485_s5, 3  ;;  %s3105_s2 = sshll.u32 %s1131_s6, 3 }
 0x156   : >> { %s1432_s27 = scalar_lea.vmem [#allocation5], %s3102_s4  ;;  %s1450_s25 = scalar_lea.vmem [#allocation6], %s3105_s2 }
 0x157   : >> { %3156 = vmatpush3.bf16.msra.mxu0 %v2991_v34  ;;  %3164 = vmatpush3.bf16.msra.mxu1 %v2997_v35  ;;  %v1257_v42 = vld [vmem:[%s1256_s26] sm:$0xff]  ;;  %v1258_v62 = vld [vmem:[%s1256_s26 + $0x8] sm:$0xff]  ;;  %s1130_s5 = sadd.s32 1, %s3485_s5  }
 0x158   : >> { %p1127_p4 = scmp.ge.s32.totalorder %s1130_s5, 4  }
 0x159   : > { %s4357_s4 = sld [smem:[#allocation26_spill]] (%p1127_p4)  ;;  %s3495_s6 = smov (%p1127_p4), 112   ;;  %vm3496_vm5 = vmmov (%p1127_p4), 0   ;;  %vm2522_vm6 = vcmask (%p1127_p4), 130112   ;;  %vm2551_vm7 = vcmask (%p1127_p4), 1044484   ;;  %vm2553_vm8 = vcmask (%p1127_p4), 1045509  }
 0x15a   : >> { %3158 = vmatmul.mubr.msk.bf16.vlgmr.msra.gmra.mxu0 %vm1116_vm2, %v1140_v39  ;;  %3166 = vmatmul.mubr.msk.bf16.vlgmr.msra.gmra.mxu1 %vm1116_vm2, %v1263_v40  ;;  %vm2555_vm9 = vcmask (%p1127_p4), 1046534   ;;  %vm2558_vm10 = vcmask (%p1127_p4), 1042432   ;;  %s4167_s2 = sld [smem:[#allocation11]] (%p1127_p4)  ;;  %vm2560_vm11 = vcmask (%p1127_p4), 1046528   ;;  %vm2708_vm12 = vcmask (%p1127_p4), 1041408   ;;  %p4358_p5 = scmp.ne.s32.totalorder (%p1127_p4), %s4346_s3, 0 }
 0x15b   : > { %s4173_s22 = sld [smem:[#allocation13 + $0x81]] (%p1127_p4) }
 0x15c   : > { %s4180_s5 = sld [smem:[#allocation13 + $0x2]] (%p1127_p4) }
 0x15d   : > { %s4187_s26 = sld [smem:[#allocation13 + $0x82]] (%p1127_p4) }
 0x21a   : >> { %v1190_v43 = vpop.f32.mrf.mxu0  ;;  %v1313_v44 = vpop.f32.mrf.mxu1 }
 0x21b   : >> { %v1197_v45 = vadd.f32 %v1190_v43, %v1134_v41  ;;  %v1320_v57 = vadd.f32 %v1313_v44, %v1257_v42 }
 0x21c   : >> { %v3159_v59 = vpop.f32.mrf.mxu0  ;;  %v3167_v60 = vpop.f32.mrf.mxu1 }
 0x21d   : >> { %3324 = vtanh.f32 %v1197_v45  ;;  %v2994_v14 = vmul.f32 -1.442695, %v1197_v45  ;;  %v3000_v15 = vmul.f32 -1.442695, %v1320_v57 }
 0x21e   : >> { %3326 = vtanh.f32 %v1320_v57  ;;  %v1193_v63 = vpop.f32.mrf.mxu0  ;;  %v1316_v0 = vpop.f32.mrf.mxu1 }
 0x21f   : >> { %v1198_v1 = vadd.f32 %v1193_v63, %v1135_v61  ;;  %v1321_v2 = vadd.f32 %v1316_v0, %v1258_v62 }
 0x220   : >> { %v3160_v3 = vpop.f32.mrf.mxu0  ;;  %v3168_v4 = vpop.f32.mrf.mxu1 }
 0x221   : >> { %3328 = vtanh.f32 %v1198_v1  ;;  %v2995_v16 = vmul.f32 -1.442695, %v1198_v1  ;;  %v3001_v17 = vmul.f32 -1.442695, %v1321_v2 }
 0x222   : >> { %3330 = vtanh.f32 %v1321_v2 }
 0x223   : >> { %3332 = vpow2.f32 %v2994_v14 }
 0x224   : >> { %3334 = vpow2.f32 %v3000_v15 }
 0x225   : >> { %3336 = vpow2.f32 %v2995_v16 }
 0x226   : >> { %3338 = vpow2.f32 %v3001_v17 }
 0x22a   : >> { %v3325_v5 = vpop.eup %3324 }
 0x22b   : >> { %v3327_v6 = vpop.eup %3326  ;;  %1225 = vrot.lane.b32.xlu0 %v3325_v5, %s3492_s29 }
 0x22c   : >> { %1348 = vrot.lane.b32.xlu1 %v3327_v6, %s3492_s29 }
 0x22e   : >> { %v3329_v7 = vpop.eup %3328 }
 0x22f   : >> { %v3331_v8 = vpop.eup %3330  ;;  %1227 = vrot.lane.b32.xlu0 %v3329_v7, %s3492_s29 }
 0x230   : >> { %1350 = vrot.lane.b32.xlu1 %v3331_v8, %s3492_s29  ;;  %v3333_v18 = vpop.eup %3332 }
 0x231   : >> { %v3335_v19 = vpop.eup %3334  ;;  %v1205_v20 = vadd.f32 1.0, %v3333_v18 }
 0x232   : >> { %v3337_v21 = vpop.eup %3336  ;;  %v1328_v22 = vadd.f32 1.0, %v3335_v19 }
 0x233   : >> { %1215 = vrot.lane.b32.xlu0 %v1138_v9, %s3493_s0  ;;  %3340 = vrcp.f32 %v1205_v20  ;;  %v1206_v23 = vadd.f32 1.0, %v3337_v21  ;;  %v3339_v24 = vpop.eup %3338 }
 0x234   : >> { %1217 = vrot.lane.b32.xlu1 %v1139_v11, %s3493_s0  ;;  %3342 = vrcp.f32 %v1328_v22  ;;  %v1329_v25 = vadd.f32 1.0, %v3339_v24 }
 0x235   : >> { %3344 = vrcp.f32 %v1206_v23 }
 0x236   : >> { %3346 = vrcp.f32 %v1329_v25 }
 0x237   : >> { %1338 = vrot.lane.b32.xlu0 %v1261_v12, %s3493_s0 }
 0x238   : >> { %1340 = vrot.lane.b32.xlu1 %v1262_v13, %s3493_s0 }
 0x240   : >> { %v3341_v26 = vpop.eup %3340 }
 0x241   : >> { %v3343_v30 = vpop.eup %3342 }
 0x242   : >> { %v3345_v31 = vpop.eup %3344 }
 0x243   : >> { %v3347_v36 = vpop.eup %3346 }
 0x29d   : >> { %v1226_v27 = vpop.permute.xlu0 %1225 }
 0x29e   : >> { %v1231_v28 = vmul.f32 %v3341_v26, %v1226_v27  ;;  %v1349_v29 = vpop.permute.xlu1 %1348 }
 0x29f   : >> { %v1354_v33 = vmul.f32 %v3343_v30, %v1349_v29 }
 0x2a0   : >> { %1235 = vrot.lane.b32.xlu0 %v1231_v28, %s3493_s0 }
 0x2a1   : >> { %v1228_v32 = vpop.permute.xlu0 %1227 }
 0x2a2   : >> { %v1232_v34 = vmul.f32 %v3345_v31, %v1228_v32  ;;  %v1351_v35 = vpop.permute.xlu1 %1350  ;;  %v3357_v32 = vld [vmem:[%s4357_s4 + $0x8] sm:$0xff] (%p1127_p4)  }
 0x2a3   : >> { %v1355_v37 = vmul.f32 %v3347_v36, %v1351_v35  ;;  %3181 = vmatprep.subr.bf16.mxu1 (%p1127_p4), %v3357_v32  ;;  %v3368_v35 = vld [vmem:[%s4309_s10 + $0x8] sm:$0xff] (%p1127_p4)  }
 0x2a4   : >> { %1237 = vrot.lane.b32.xlu1 %v1232_v34, %s3493_s0  ;;  %1358 = vrot.lane.b32.xlu0 %v1354_v33, %s3493_s0  ;;  %v3359_v34 = vld [vmem:[%s4357_s4] sm:$0xff] (%p1127_p4)  }
 0x2a5   : >> { %v1216_v38 = vpop.permute.xlu0 %1215  ;;  %3182 = vmatpush3.bf16.msra.mxu1 (%p1127_p4), %v3357_v32 }
 0x2a6   : >> { %v1218_v39 = vpop.permute.xlu1 %1217  ;;  %v1221_v41 = vmul.f32 %v3341_v26, %v1216_v38  ;;  %3183 = vmatprep.subr.bf16.mxu1 (%p1127_p4), %v3359_v34 }
 0x2a7   : >> { %v1222_v45 = vmul.f32 %v3345_v31, %v1218_v39 }
 0x2a8   : >> { %1360 = vrot.lane.b32.xlu1 %v1355_v37, %s3493_s0  ;;  %v3370_v37 = vld [vmem:[%s4311_s12] sm:$0xff] (%p1127_p4)  }
 0x2a9   : >> { %v1339_v40 = vpop.permute.xlu0 %1338  ;;  %3184 = vmatpush3.bf16.msra.mxu1 (%p1127_p4), %v3359_v34 }
 0x2aa   : >> { %v1341_v42 = vpop.permute.xlu1 %1340  ;;  %v1344_v57 = vmul.f32 %v3343_v30, %v1339_v40  ;;  %3205 = vmatprep.subr.bf16.mxu1 (%p1127_p4), %v3370_v37 }
 0x2ab   : >> { %v1345_v63 = vmul.f32 %v3347_v36, %v1341_v42 }
 0x312   : >> { %v1236_v43 = vpop.permute.xlu0 %1235 }
 0x313   : >> { %v1241_v44 = vadd.f32 %v1236_v43, %v1221_v41 }
 0x315   : >> { %3348 = vtanh.f32 %v1241_v44 }
 0x316   : >> { %v1238_v59 = vpop.permute.xlu1 %1237  ;;  %v1359_v60 = vpop.permute.xlu0 %1358 }
 0x317   : >> { %v1242_v61 = vadd.f32 %v1238_v59, %v1222_v45  ;;  %v1364_v62 = vadd.f32 %v1359_v60, %v1344_v57  ;;  %v3030_v45 = vld [vmem:[%s4308_s9] ss:$0 sm:$0xff] (%p1127_p4) }
 0x319   : >> { %3350 = vtanh.f32 %v1242_v61 }
 0x31a   : >> { %3352 = vtanh.f32 %v1364_v62  ;;  %v1361_v0 = vpop.permute.xlu1 %1360 }
 0x31b   : >> { %v1365_v1 = vadd.f32 %v1361_v0, %v1345_v63 }
 0x31d   : >> { %3354 = vtanh.f32 %v1365_v1 }
 0x322   : >> { %v3349_v2 = vpop.eup %3348 }
 0x323   : >> { %1247 = vrot.lane.b32.xlu0 %v3349_v2, %s3492_s29 }
 0x326   : >> { %v3351_v3 = vpop.eup %3350 }
 0x327   : >> { %v3353_v4 = vpop.eup %3352  ;;  %1249 = vrot.lane.b32.xlu1 %v3351_v3, %s3492_s29 }
 0x328   : >> { %1370 = vrot.lane.b32.xlu0 %v3353_v4, %s3492_s29 }
 0x32a   : >> { %v3355_v5 = vpop.eup %3354 }
 0x32b   : >> { %1372 = vrot.lane.b32.xlu1 %v3355_v5, %s3492_s29  ;;  %s4356_s29 = sld [smem:[#allocation27_spill]] (%p1127_p4) }
 0x32c   : >> { %1390 = vrot.lane.b32.xlu0 %v1241_v44, %s3494_s8 }
 0x32f   : >> { %1392 = vrot.lane.b32.xlu1 %v1242_v61, %s3494_s8 }
 0x330   : >> { %1410 = vrot.lane.b32.xlu0 %v1364_v62, %s3494_s8 }
 0x331   : > { %v3358_v33 = vld [vmem:[%s4356_s29] sm:$0xff] (%p1127_p4)  }
 0x333   : >> { %1412 = vrot.lane.b32.xlu1 %v1365_v1, %s3494_s8  ;;  %s4205_s8 = sld [smem:[#allocation13 + $0x83]] (%p1127_p4) }
 0x395   : >> { %v1248_v6 = vpop.permute.xlu0 %1247 }
 0x396   : >> { %v1253_v7 = vmul.f32 %v3341_v26, %v1248_v6 }
 0x398   : >> { %1380 = vrot.lane.b32.xlu0 %v1253_v7, %s3493_s0  ;;  %v3100_v16 = vpack.c.bf16 %v1253_v7, %v1253_v7 }
 0x399   : >> { %v1250_v8 = vpop.permute.xlu1 %1249 }
 0x39a   : >> { %v1254_v9 = vmul.f32 %v3345_v31, %v1250_v8  ;;  %v1371_v11 = vpop.permute.xlu0 %1370  ;;  %v3356_v31 = vld [vmem:[%s4356_s29 + $0x8] sm:$0xff] (%p1127_p4)  }
 0x39b   : >> { %v1376_v12 = vmul.f32 %v3343_v30, %v1371_v11  ;;  %3169 = vmatprep.subr.bf16.mxu0 (%p1127_p4), %v3356_v31 }
 0x39c   : >> { %1382 = vrot.lane.b32.xlu1 %v1254_v9, %s3493_s0  ;;  %v3101_v18 = vpack.c.bf16 %v1254_v9, %v1254_v9  ;;  %3170 = vmatpush3.bf16.msra.mxu0 (%p1127_p4), %v3356_v31 }
 0x39d   : >> { %1400 = vrot.lane.b32.xlu0 %v1376_v12, %s3493_s0  ;;  %v1373_v13 = vpop.permute.xlu1 %1372  ;;  %v3103_v20 = vpack.c.bf16 %v1376_v12, %v1376_v12  ;;  %3171 = vmatprep.subr.bf16.mxu0 (%p1127_p4), %v3358_v33 }
 0x39e   : >> { %v1377_v14 = vmul.f32 %v3347_v36, %v1373_v13  ;;  %v1391_v15 = vpop.permute.xlu0 %1390  ;;  %v3369_v36 = vld [vmem:[%s4309_s10] sm:$0xff] (%p1127_p4)  }
 0x39f   : >> { %1396 = vst.msk [vmem:[#allocation8] sm:$0xff] %vm1116_vm2, %v1391_v15 }
 0x3a0   : >> { %1402 = vrot.lane.b32.xlu1 %v1377_v14, %s3493_s0  ;;  %v3104_v22 = vpack.c.bf16 %v1377_v14, %v1377_v14  ;;  %3172 = vmatpush3.bf16.msra.mxu0 (%p1127_p4), %v3358_v33 }
 0x3a1   : >> { %1424 = vrot.lane.b32.xlu0 %v3100_v16, %s3493_s0  ;;  %v1393_v17 = vpop.permute.xlu1 %1392  ;;  %3193 = vmatprep.subr.bf16.mxu0 (%p1127_p4), %v3368_v35 }
 0x3a2   : >> { %1397 = vst.msk [vmem:[#allocation8 + $0x8] sm:$0xff] %vm1116_vm2, %v1393_v17  ;;  %v1411_v19 = vpop.permute.xlu0 %1410 }
 0x3a3   : >> { %1416 = vst.msk [vmem:[#allocation10] sm:$0xff] %vm1116_vm2, %v1411_v19 }
 0x3a4   : >> { %1426 = vrot.lane.b32.xlu1 %v3101_v18, %s3493_s0 }
 0x3a5   : >> { %1442 = vrot.lane.b32.xlu0 %v3103_v20, %s3493_s0  ;;  %v1413_v21 = vpop.permute.xlu1 %1412 }
 0x3a6   : >> { %1417 = vst.msk [vmem:[#allocation10 + $0x8] sm:$0xff] %vm1116_vm2, %v1413_v21 }
 0x3a8   : >> { %1444 = vrot.lane.b32.xlu1 %v3104_v22, %s3493_s0  ;;  %s4197_s0 = sld [smem:[#allocation13 + $0x3]] (%p1127_p4) }
 0x40a   : >> { %v1381_v23 = vpop.permute.xlu0 %1380 }
 0x40b   : >> { %1386 = vst.msk [vmem:[#allocation7] sm:$0xff] %vm1116_vm2, %v1381_v23 }
 0x40e   : >> { %v1383_v24 = vpop.permute.xlu1 %1382 }
 0x40f   : >> { %1387 = vst.msk [vmem:[#allocation7 + $0x8] sm:$0xff] %vm1116_vm2, %v1383_v24  ;;  %v1401_v25 = vpop.permute.xlu0 %1400 }
 0x410   : >> { %1406 = vst.msk [vmem:[#allocation9] sm:$0xff] %vm1116_vm2, %v1401_v25 }
 0x412   : >> { %v1403_v26 = vpop.permute.xlu1 %1402 }
 0x413   : >> { %1407 = vst.msk [vmem:[#allocation9 + $0x8] sm:$0xff] %vm1116_vm2, %v1403_v26  ;;  %v1425_v27 = vpop.permute.xlu0 %1424 }
 0x414   : >> { %1434 = vst.msk [vmem:[%s1432_s27] sm:$0xf] %vm1433_vm4, %v1425_v27 }
 0x416   : >> { %v1427_v28 = vpop.permute.xlu1 %1426 }
 0x417   : >> { %1435 = vst.msk [vmem:[%s1432_s27 + $0x4] sm:$0xf] %vm1433_vm4, %v1427_v28  ;;  %v1443_v29 = vpop.permute.xlu0 %1442  ;;  %1129 = sbr.rel (!%p1127_p4) target bundleno = 337 (0x151), region = 243  ;;  %s4165_s27 = sld [smem:[#allocation13 + $0x1]] (%p1127_p4) }
 0x418   : >> { %1451 = vst.msk [vmem:[%s1450_s25] sm:$0xf] %vm1433_vm4, %v1443_v29 }
 0x41a   : >> { %v1445_v30 = vpop.permute.xlu1 %1444 }
 0x41b   : >> { %1452 = vst.msk [vmem:[%s1450_s25 + $0x4] sm:$0xf] %vm1433_vm4, %v1445_v30  ;;  %s4171_s25 = sld [smem:[#allocation13 + $0x80]] (%p1127_p4) }
 0x41e   : > { %v3361_v47 = vld [vmem:[#allocation5] sm:$0xff]   ;;  %v3363_v49 = vld [vmem:[#allocation5 + $0x8] sm:$0xff]   ;;  %v3365_v51 = vld [vmem:[#allocation5 + $0x10] sm:$0xff]  }
 0x41f   : > { %3185 = vmatprep.mubr.msk.bf16.mxu1 %vm1116_vm2, %v3361_v47  ;;  %v3367_v53 = vld [vmem:[#allocation5 + $0x18] sm:$0xff]  }
 0x420   : > { %3186 = vmatmul.mubr.msk.bf16.vlgmr.msra.gmra.mxu1 %vm1116_vm2, %v3363_v49 }
 0x421   : > { %3189 = vmatprep.mubr.msk.bf16.mxu1 %vm1116_vm2, %v3365_v51  ;;  %3206 = vmatpush3.bf16.msra.mxu1 %v3370_v37 }
 0x422   : > { %v3360_v46 = vld [vmem:[#allocation6] sm:$0xff]   ;;  %v3362_v10 = vld [vmem:[#allocation6 + $0x8] sm:$0xff]   ;;  %v3364_v50 = vld [vmem:[#allocation6 + $0x10] sm:$0xff]   ;;  %3221 = vmatprep.subr.bf16.mxu1 %v3489_v48 }
 0x423   : > { %3173 = vmatprep.mubr.msk.bf16.mxu0 %vm1116_vm2, %v3360_v46  ;;  %v3366_v52 = vld [vmem:[#allocation6 + $0x18] sm:$0xff]   ;;  %v3031_v46 = vld [vmem:[%s4310_s11] ss:$0 sm:$0xff] }
 0x424   : > { %3174 = vmatmul.mubr.msk.bf16.vlgmr.msra.gmra.mxu0 %vm1116_vm2, %v3362_v10 }
 0x425   : > { %3177 = vmatprep.mubr.msk.bf16.mxu0 %vm1116_vm2, %v3364_v50  ;;  %3194 = vmatpush3.bf16.msra.mxu0 %v3368_v35 }
 0x426   : > { %3195 = vmatprep.subr.bf16.mxu0 %v3369_v36 }
 0x428   : > { %3190 = vmatmul.mubr.msk.bf16.gmra.mxu1 %vm1116_vm2, %v3367_v53 }
 0x429   : > { %3196 = vmatpush3.bf16.msra.mxu0 %v3369_v36 }
 0x42a   : > { %3215 = vmatprep.subr.bf16.mxu0 %v3489_v48 }
 0x42c   : > { %3178 = vmatmul.mubr.msk.bf16.gmra.mxu0 %vm1116_vm2, %v3366_v52 }
 0x4e0   : > { %v3187_v39 = vpop.f32.mrf.mxu1 }
 0x4e2   : > { %v1664_v41 = vpop.f32.mrf.mxu1 }
 0x4e4   : > { %v3175_v38 = vpop.f32.mrf.mxu0  ;;  %v3188_v57 = vpop.f32.mrf.mxu1 }
 0x4e5   : > { %v1673_v44 = vadd.f32 %v3187_v39, %v3175_v38 }
 0x4e6   : > { %v1555_v40 = vpop.f32.mrf.mxu0  ;;  %v1667_v62 = vpop.f32.mrf.mxu1 }
 0x4e7   : > { %v1665_v42 = vadd.f32 %v1664_v41, %v1555_v40  ;;  %v1704_v2 = vadd.f32 %v3030_v45, %v1673_v44 }
 0x4e8   : > { %v3176_v43 = vpop.f32.mrf.mxu0  ;;  %v3191_v3 = vpop.f32.mrf.mxu1 }
 0x4e9   : > { %v1702_v59 = vadd.f32 %v3030_v45, %v1665_v42  ;;  %v1676_v60 = vadd.f32 %v3188_v57, %v3176_v43 }
 0x4ea   : > { %v1558_v61 = vpop.f32.mrf.mxu0  ;;  %v1680_v6 = vpop.f32.mrf.mxu1 }
 0x4eb   : > { %v1705_v63 = vadd.f32 %v3030_v45, %v1676_v60  ;;  %v1668_v0 = vadd.f32 %v1667_v62, %v1558_v61  ;;  %3376 = vtanh.f32 %v1702_v59 }
 0x4ec   : > { %v3179_v1 = vpop.f32.mrf.mxu0  ;;  %v3192_v11 = vpop.f32.mrf.mxu1 }
 0x4ed   : > { %v1703_v4 = vadd.f32 %v3030_v45, %v1668_v0  ;;  %3378 = vtanh.f32 %v1705_v63  ;;  %v1689_v9 = vadd.f32 %v3191_v3, %v3179_v1 }
 0x4ee   : > { %v1571_v5 = vpop.f32.mrf.mxu0  ;;  %v1683_v15 = vpop.f32.mrf.mxu1 }
 0x4ef   : > { %3380 = vtanh.f32 %v1703_v4  ;;  %v1681_v7 = vadd.f32 %v1680_v6, %v1571_v5  ;;  %v1708_v18 = vadd.f32 %v3030_v45, %v1689_v9 }
 0x4f0   : > { %v3180_v8 = vpop.f32.mrf.mxu0  ;;  %3382 = vtanh.f32 %v1704_v2 }
 0x4f1   : > { %v1706_v12 = vadd.f32 %v3030_v45, %v1681_v7  ;;  %v1692_v13 = vadd.f32 %v3192_v11, %v3180_v8 }
 0x4f2   : > { %v1574_v14 = vpop.f32.mrf.mxu0 }
 0x4f3   : > { %v1709_v16 = vadd.f32 %v3030_v45, %v1692_v13  ;;  %v1684_v17 = vadd.f32 %v1683_v15, %v1574_v14  ;;  %3384 = vtanh.f32 %v1706_v12 }
 0x4f5   : > { %v1707_v19 = vadd.f32 %v3030_v45, %v1684_v17  ;;  %3386 = vtanh.f32 %v1709_v16  ;;  %v3038_v45 = vld [vmem:[%s4312_s13] ss:$0 sm:$0xff] }
 0x4f7   : > { %3388 = vtanh.f32 %v1707_v19 }
 0x4f8   : > { %3390 = vtanh.f32 %v1708_v18  ;;  %v3377_v20 = vpop.eup %3376 }
 0x4fa   : > { %v3379_v21 = vpop.eup %3378 }
 0x4fc   : > { %v3381_v22 = vpop.eup %3380 }
 0x4fd   : > { %v3383_v23 = vpop.eup %3382  ;;  %v1718_v24 = vpack.c.bf16 %v3381_v22, %v3377_v20 }
 0x4fe   : > { %v1719_v25 = vpack.c.bf16 %v3379_v21, %v3383_v23 }
 0x4ff   : > { %3197 = vmatprep.mubr.msk.bf16.mxu0 %vm1116_vm2, %v1718_v24 }
 0x500   : > { %3198 = vmatmul.mubr.msk.bf16.vlgmr.msra.gmra.mxu0 %vm1116_vm2, %v1719_v25  ;;  %v3385_v26 = vpop.eup %3384 }
 0x502   : > { %v3387_v27 = vpop.eup %3386 }
 0x504   : > { %v3389_v28 = vpop.eup %3388 }
 0x505   : > { %v3391_v29 = vpop.eup %3390  ;;  %v1720_v30 = vpack.c.bf16 %v3389_v28, %v3385_v26 }
 0x506   : > { %v1721_v31 = vpack.c.bf16 %v3387_v27, %v3391_v29 }
 0x507   : > { %3201 = vmatprep.mubr.msk.bf16.mxu0 %vm1116_vm2, %v1720_v30 }
 0x508   : > { %3202 = vmatmul.mubr.msk.bf16.gmra.mxu0 %vm1116_vm2, %v1721_v31 }
 0x509   : > { %3217 = vmatprep.mubr.msk.bf16.mxu0 %vm3496_vm5, %v3489_v48 }
 0x5c0   : > { %v3199_v32 = vpop.f32.mrf.mxu0 }
 0x5c1   : > { %v1800_v51 = vadd.f32 %v3199_v32, %v3031_v46 }
 0x5c2   : > { %v1791_v33 = vpop.f32.mrf.mxu0 }
 0x5c3   : > { %v1792_v49 = vadd.f32 %v3031_v46, %v1791_v33 }
 0x5c4   : > { %v3200_v34 = vpop.f32.mrf.mxu0 }
 0x5c5   : > { %v1803_v47 = vadd.f32 %v3200_v34, %v3031_v46 }
 0x5c6   : > { %v1794_v10 = vpop.f32.mrf.mxu0 }
 0x5c7   : > { %v1795_v50 = vadd.f32 %v3031_v46, %v1794_v10  ;;  %v1823_v35 = vpack.c.bf16 %v1803_v47, %v1800_v51  ;;  %v3954_v47 = vld [vmem:[%s4313_s14] sm:$0xff]  }
 0x5c8   : > { %v3203_v52 = vpop.f32.mrf.mxu0  ;;  %3216 = vmatpush3.bf16.msra.mxu0 %v3954_v47 }
 0x5c9   : > { %v1822_v53 = vpack.c.bf16 %v1795_v50, %v1792_v49  ;;  %v1816_v42 = vadd.f32 %v3203_v52, %v3031_v46  ;;  %3229 = vmatprep.subr.bf16.mxu0 %v3489_v48 }
 0x5ca   : > { %v1807_v36 = vpop.f32.mrf.mxu0 }
 0x5cb   : > { %3207 = vmatprep.mubr.msk.bf16.mxu1 %vm822_vm0, %v1822_v53  ;;  %v1808_v40 = vadd.f32 %v3031_v46, %v1807_v36  ;;  %v3972_v36 = vld [vmem:[%s4315_s16 + $0x8] sm:$0xff]  }
 0x5cc   : > { %v3204_v37 = vpop.f32.mrf.mxu0  ;;  %3208 = vmatmul.mubr.msk.bf16.vlgmr.msra.gmra.mxu1 %vm822_vm0, %v1823_v35 }
 0x5cd   : > { %v1819_v38 = vadd.f32 %v3204_v37, %v3031_v46  ;;  %3222 = vmatpush3.bf16.msra.mxu1 %v3972_v36 }
 0x5ce   : > { %v1810_v39 = vpop.f32.mrf.mxu0  ;;  %3223 = vmatprep.subr.bf16.mxu1 %v3489_v48 }
 0x5cf   : > { %v1811_v41 = vadd.f32 %v3031_v46, %v1810_v39  ;;  %v1825_v44 = vpack.c.bf16 %v1819_v38, %v1816_v42 }
 0x5d1   : > { %v1824_v43 = vpack.c.bf16 %v1811_v41, %v1808_v40 }
 0x5d3   : > { %3211 = vmatprep.mubr.msk.bf16.mxu1 %vm822_vm0, %v1824_v43 }
 0x5d4   : > { %3212 = vmatmul.mubr.msk.bf16.gmra.mxu1 %vm822_vm0, %v1825_v44 }
 0x5d5   : > { %3225 = vmatprep.mubr.msk.bf16.mxu1 %vm3496_vm5, %v3489_v48 }
 0x68c   : > { %v3209_v57 = vpop.f32.mrf.mxu1 }
 0x68d   : > { %v3926_v59 = vadd.f32 %v3209_v57, %v3038_v45 }
 0x68e   : > { %v1887_v60 = vpop.f32.mrf.mxu1 }
 0x68f   : > { %v3046_v61 = vmul.f32 -1.442695, %v3926_v59  ;;  %v3929_v62 = vadd.f32 %v3038_v45, %v1887_v60 }
 0x690   : > { %v3210_v63 = vpop.f32.mrf.mxu1 }
 0x691   : > { %3392 = vpow2.f32 %v3046_v61  ;;  %v3044_v0 = vmul.f32 -1.442695, %v3929_v62  ;;  %v3932_v1 = vadd.f32 %v3210_v63, %v3038_v45 }
 0x692   : > { %v1890_v2 = vpop.f32.mrf.mxu1 }
 0x693   : > { %3394 = vpow2.f32 %v3044_v0  ;;  %v3047_v3 = vmul.f32 -1.442695, %v3932_v1  ;;  %v3935_v4 = vadd.f32 %v3038_v45, %v1890_v2 }
 0x694   : > { %v3213_v5 = vpop.f32.mrf.mxu1 }
 0x695   : > { %3396 = vpow2.f32 %v3047_v3  ;;  %v3045_v6 = vmul.f32 -1.442695, %v3935_v4  ;;  %v3938_v7 = vadd.f32 %v3213_v5, %v3038_v45 }
 0x696   : > { %v1903_v8 = vpop.f32.mrf.mxu1 }
 0x697   : > { %3398 = vpow2.f32 %v3045_v6  ;;  %v3050_v9 = vmul.f32 -1.442695, %v3938_v7  ;;  %v3941_v11 = vadd.f32 %v3038_v45, %v1903_v8 }
 0x698   : > { %v3214_v12 = vpop.f32.mrf.mxu1 }
 0x699   : > { %v3048_v13 = vmul.f32 -1.442695, %v3941_v11  ;;  %v3944_v14 = vadd.f32 %v3214_v12, %v3038_v45  ;;  %3400 = vpow2.f32 %v3050_v9 }
 0x69a   : > { %v1906_v15 = vpop.f32.mrf.mxu1 }
 0x69b   : > { %3402 = vpow2.f32 %v3048_v13  ;;  %v3051_v16 = vmul.f32 -1.442695, %v3944_v14  ;;  %v3947_v17 = vadd.f32 %v3038_v45, %v1906_v15 }
 0x69d   : > { %v3049_v18 = vmul.f32 -1.442695, %v3947_v17  ;;  %3404 = vpow2.f32 %v3051_v16 }
 0x69e   : > { %v3393_v19 = vpop.eup %3392 }
 0x69f   : > { %v1944_v20 = vadd.f32 1.0, %v3393_v19  ;;  %3406 = vpow2.f32 %v3049_v18 }
 0x6a0   : > { %v3395_v21 = vpop.eup %3394 }
 0x6a1   : > { %3408 = vrcp.f32 %v1944_v20  ;;  %v1942_v22 = vadd.f32 1.0, %v3395_v21 }
 0x6a2   : > { %v3397_v23 = vpop.eup %3396 }
 0x6a3   : > { %3410 = vrcp.f32 %v1942_v22  ;;  %v1945_v24 = vadd.f32 1.0, %v3397_v23 }
 0x6a4   : > { %v3399_v25 = vpop.eup %3398 }
 0x6a5   : > { %3412 = vrcp.f32 %v1945_v24  ;;  %v1943_v26 = vadd.f32 1.0, %v3399_v25 }
 0x6a6   : > { %v3401_v27 = vpop.eup %3400 }
 0x6a7   : > { %3414 = vrcp.f32 %v1943_v26  ;;  %v1948_v30 = vadd.f32 1.0, %v3401_v27 }
 0x6a8   : > { %v3403_v28 = vpop.eup %3402 }
 0x6a9   : > { %v1946_v29 = vadd.f32 1.0, %v3403_v28 }
 0x6aa   : > { %v3405_v31 = vpop.eup %3404 }
 0x6ab   : > { %3416 = vrcp.f32 %v1946_v29  ;;  %v1949_v46 = vadd.f32 1.0, %v3405_v31 }
 0x6ac   : > { %v3407_v32 = vpop.eup %3406  ;;  %3418 = vrcp.f32 %v1948_v30 }
 0x6ad   : > { %v1947_v33 = vadd.f32 1.0, %v3407_v32 }
 0x6ae   : > { %v3409_v34 = vpop.eup %3408 }
 0x6af   : > { %3420 = vrcp.f32 %v1947_v33  ;;  %1978 = vrot.lane.b32.xlu1 %v3409_v34, %s3495_s6 }
 0x6b0   : > { %v3411_v10 = vpop.eup %3410  ;;  %3422 = vrcp.f32 %v1949_v46 }
 0x6b1   : > { %1974 = vrot.lane.b32.xlu0 %v3411_v10, %s3495_s6 }
 0x6b2   : > { %v3413_v49 = vpop.eup %3412 }
 0x6b3   : > { %1980 = vrot.lane.b32.xlu1 %v3413_v49, %s3495_s6 }
 0x6b4   : > { %v3415_v50 = vpop.eup %3414 }
 0x6b5   : > { %1976 = vrot.lane.b32.xlu0 %v3415_v50, %s3495_s6  ;;  %v3373_v50 = vld [vmem:[%s4315_s16] sm:$0xff]  }
 0x6b6   : > { %3224 = vmatpush3.bf16.msra.mxu1 %v3373_v50 }
 0x6b7   : > { %3235 = vmatprep.subr.bf16.mxu1 %v3489_v48 }
 0x6b8   : > { %v3417_v51 = vpop.eup %3416 }
 0x6b9   : > { %1982 = vrot.lane.b32.xlu0 %v3417_v51, %s3495_s6  ;;  %v3419_v52 = vpop.eup %3418 }
 0x6bc   : > { %v3421_v53 = vpop.eup %3420 }
 0x6bd   : > { %1984 = vrot.lane.b32.xlu1 %v3421_v53, %s3495_s6  ;;  %1986 = vrot.lane.b32.xlu0 %v3419_v52, %s3495_s6  ;;  %v3423_v35 = vpop.eup %3422 }
 0x6c1   : > { %1988 = vrot.lane.b32.xlu1 %v3423_v35, %s3495_s6 }
 0x721   : > { %v1979_v37 = vpop.permute.xlu1 %1978 }
 0x722   : > { %v3977_v40 = vmul.f32 %v1979_v37, %v3926_v59 }
 0x723   : > { %v1975_v38 = vpop.permute.xlu0 %1974 }
 0x724   : > { %v3983_v43 = vmul.f32 %v1975_v38, %v3929_v62  ;;  %v2007_v62 = vsel %vm822_vm0, %v3977_v40, 0.0  ;;  %v2023_v28 = vsel %vm822_vm0, %v3977_v40, -inf }
 0x725   : > { %v1981_v39 = vpop.permute.xlu1 %1980 }
 0x726   : > { %v3980_v41 = vmul.f32 %v1981_v39, %v3932_v1  ;;  %v2006_v61 = vsel %vm822_vm0, %v3983_v43, 0.0  ;;  %v2022_v33 = vsel %vm822_vm0, %v3983_v43, -inf }
 0x727   : > { %v1977_v42 = vpop.permute.xlu0 %1976  ;;  %v2008_v5 = vadd.f32 %v2007_v62, %v2006_v61 }
 0x728   : > { %v2343_v44 = vpack.c.bf16 %v3980_v41, %v3977_v40  ;;  %v3988_v45 = vmul.f32 %v1977_v42, %v3935_v4  ;;  %v2014_v6 = vsel %vm822_vm0, %v3980_v41, 0.0  ;;  %v3055_v40 = vld [vmem:[%s4316_s17] ss:$0 sm:$0xff] }
 0x72a   : > { %v2342_v57 = vpack.c.bf16 %v3988_v45, %v3983_v43  ;;  %v2013_v1 = vsel %vm822_vm0, %v3988_v45, 0.0  ;;  %v2029_v29 = vsel %vm822_vm0, %v3988_v45, -inf }
 0x72b   : > { %v1983_v60 = vpop.permute.xlu0 %1982 }
 0x72c   : > { %v3993_v59 = vmul.f32 %v1983_v60, %v3941_v11  ;;  %v2015_v11 = vadd.f32 %v2014_v6, %v2013_v1 }
 0x72e   : > { %v2009_v2 = vsel %vm822_vm0, %v3993_v59, 0.0  ;;  %v2024_v30 = vsel %vm822_vm0, %v3993_v59, -inf }
 0x72f   : > { %v1985_v63 = vpop.permute.xlu1 %1984  ;;  %v1987_v0 = vpop.permute.xlu0 %1986  ;;  %v2010_v12 = vadd.f32 %v2009_v2, %v2008_v5  ;;  %v2025_v34 = vmax.f32 %v2022_v33, %v2024_v30  ;;  %v3374_v2 = vld [vmem:[%s4319_s20] sm:$0xff]  }
 0x730   : > { %v4004_v3 = vmul.f32 %v1985_v63, %v3947_v17  ;;  %v4007_v4 = vmul.f32 %v1987_v0, %v3938_v7 }
 0x732   : > { %v2016_v8 = vsel %vm822_vm0, %v4004_v3, 0.0  ;;  %v2011_v9 = vsel %vm822_vm0, %v4007_v4, 0.0  ;;  %v2344_v7 = vpack.c.bf16 %v4004_v3, %v3993_v59  ;;  %v2031_v24 = vsel %vm822_vm0, %v4004_v3, -inf }
 0x733   : > { %v1989_v13 = vpop.permute.xlu1 %1988  ;;  %v2017_v16 = vadd.f32 %v2016_v8, %v2015_v11  ;;  %v2012_v17 = vadd.f32 %v2011_v9, %v2010_v12  ;;  %v2026_v25 = vsel %vm822_vm0, %v4007_v4, -inf  ;;  %v2032_v31 = vmax.f32 %v2029_v29, %v2031_v24 }
 0x734   : > { %v4016_v15 = vmul.f32 %v1989_v13, %v3944_v14  ;;  %v2030_v14 = vsel %vm822_vm0, %v3980_v41, -inf  ;;  %v2027_v32 = vmax.f32 %v2023_v28, %v2026_v25 }
 0x735   : > { %v2020_v22 = vmul.f32 0.25, %v2012_v17  ;;  %v3061_v17 = vld [vmem:[%s4318_s19] ss:$0 sm:$0xff] }
 0x736   : > { %v2018_v18 = vsel %vm822_vm0, %v4016_v15, 0.0  ;;  %v2345_v19 = vpack.c.bf16 %v4016_v15, %v4007_v4  ;;  %v2033_v21 = vsel %vm822_vm0, %v4016_v15, -inf  ;;  %v2028_v10 = vmax.f32 %v2025_v34, %v2027_v32 }
 0x737   : > { %v2019_v20 = vadd.f32 %v2018_v18, %v2017_v16  ;;  %v2034_v26 = vmax.f32 %v2030_v14, %v2033_v21 }
 0x739   : > { %v2021_v23 = vmul.f32 0.25, %v2019_v20  ;;  %v2035_v46 = vmax.f32 %v2032_v31, %v2034_v26 }
 0x73b   : > { %v2036_v27 = vpack.c.bf16 %v2021_v23, %v2020_v22  ;;  %v2166_v49 = vpack.c.bf16 %v2035_v46, %v2028_v10 }
 0x73d   : > { %3218 = vmatmul.mubr.msk.bf16.vlgmr.msra.gmra.mxu0 %vm822_vm0, %v2036_v27 }
 0x73e   : > { %3230 = vmatpush3.bf16.msra.mxu0 %v3954_v47  ;;  %3231 = vmatprep.mubr.msk.bf16.mxu0 %vm3496_vm5, %v3489_v48  ;;  %v3052_v47 = vld [vmem:[%s4314_s15] ss:$0 sm:$0xff] }
 0x73f   : > { %3243 = vmatprep.subr.bf16.mxu0 %v3489_v48 }
 0x745   : > { %3232 = vmatmul.mubr.msk.bf16.vlgmr.msra.gmra.mxu0 %vm822_vm0, %v2166_v49  ;;  %v3066_v49 = vld [vmem:[%s4320_s21] ss:$0 sm:$0xff] }
 0x746   : > { %3245 = vmatprep.mubr.msk.bf16.mxu0 %vm3496_vm5, %v3489_v48 }
 0x7fd   : > { %v2089_v51 = vpop.f32.mrf.mxu0 }
 0x7fe   : > { %v2090_v53 = vadd.f32 %v3052_v47, %v2089_v51 }
 0x7ff   : > { %v3219_v52 = vpop.f32.mrf.mxu0 }
 0x800   : > { %v2096_v39 = vmax.f32 %v2090_v53, 0.0 }
 0x801   : > { %v2092_v35 = vpop.f32.mrf.mxu0 }
 0x802   : > { %v2093_v37 = vadd.f32 %v3052_v47, %v2092_v35 }
 0x803   : > { %v3220_v38 = vpop.f32.mrf.mxu0 }
 0x804   : > { %v2097_v42 = vmax.f32 %v2093_v37, 0.0 }
 0x805   : > { %v2204_v60 = vpop.f32.mrf.mxu0 }
 0x806   : > { %v2098_v61 = vpack.c.bf16 %v2097_v42, %v2096_v39  ;;  %v2205_v63 = vadd.f32 %v3052_v47, %v2204_v60 }
 0x807   : > { %v3233_v62 = vpop.f32.mrf.mxu0 }
 0x808   : > { %3226 = vmatmul.mubr.msk.bf16.vlgmr.msra.gmra.mxu1 %vm1116_vm2, %v2098_v61  ;;  %v2211_v5 = vmax.f32 %v2205_v63, 0.0 }
 0x809   : > { %3236 = vmatpush3.bf16.msra.mxu1 %v3972_v36  ;;  %v2207_v0 = vpop.f32.mrf.mxu0  ;;  %3239 = vmatprep.mubr.msk.bf16.mxu1 %vm3496_vm5, %v3489_v48 }
 0x80a   : > { %v2208_v1 = vadd.f32 %v3052_v47, %v2207_v0  ;;  %3237 = vmatprep.subr.bf16.mxu1 %v3489_v48  ;;  %v3375_v48 = vld [vmem:[%s4317_s18] sm:$0xff]  }
 0x80b   : > { %v3234_v4 = vpop.f32.mrf.mxu0  ;;  %3244 = vmatpush3.bf16.msra.mxu0 %v3375_v48 }
 0x80c   : > { %v2212_v6 = vmax.f32 %v2208_v1, 0.0 }
 0x80d   : > { %3238 = vmatpush3.bf16.msra.mxu1 %v3373_v50 }
 0x80e   : > { %v2213_v8 = vpack.c.bf16 %v2212_v6, %v2211_v5  ;;  %3249 = vmatprep.subr.bf16.mxu1 %v3374_v2 }
 0x810   : > { %3240 = vmatmul.mubr.msk.bf16.vlgmr.msra.gmra.mxu1 %vm1116_vm2, %v2213_v8 }
 0x811   : > { %3251 = vmatprep.mubr.msk.bf16.mxu1 %vm822_vm0, %v2342_v57  ;;  %3250 = vmatpush3.bf16.msra.mxu1 %v3374_v2 }
 0x818   : > { %3252 = vmatmul.mubr.msk.bf16.vlgmr.msra.gmra.mxu1 %vm822_vm0, %v2343_v44 }
 0x819   : > { %3255 = vmatprep.mubr.msk.bf16.mxu1 %vm822_vm0, %v2344_v7 }
 0x820   : > { %3256 = vmatmul.mubr.msk.bf16.gmra.mxu1 %vm822_vm0, %v2345_v19 }
 0x8c8   : > { %v2159_v36 = vpop.f32.mrf.mxu1 }
 0x8c9   : > { %v2160_v3 = vadd.f32 %v3055_v40, %v2159_v36 }
 0x8ca   : > { %v3227_v43 = vpop.f32.mrf.mxu1 }
 0x8cc   : > { %v2162_v45 = vpop.f32.mrf.mxu1 }
 0x8cd   : > { %v2163_v11 = vadd.f32 %v3055_v40, %v2162_v45 }
 0x8ce   : > { %v3228_v57 = vpop.f32.mrf.mxu1 }
 0x8d0   : > { %v2251_v9 = vpop.f32.mrf.mxu1 }
 0x8d1   : > { %v2252_v44 = vadd.f32 %v3055_v40, %v2251_v9 }
 0x8d2   : > { %v3241_v41 = vpop.f32.mrf.mxu1 }
 0x8d3   : > { %v2258_v15 = vadd.f32 %v2252_v44, %v2160_v3 }
 0x8d4   : > { %v2254_v59 = vpop.f32.mrf.mxu1 }
 0x8d5   : > { %v2255_v12 = vadd.f32 %v3055_v40, %v2254_v59 }
 0x8d6   : > { %v3242_v13 = vpop.f32.mrf.mxu1 }
 0x8d7   : > { %v2259_v7 = vadd.f32 %v2255_v12, %v2163_v11 }
 0x8d8   : > { %v3253_v31 = vpop.f32.mrf.mxu1 }
 0x8d9   : > { %v2260_v16 = vpack.c.bf16 %v2259_v7, %v2258_v15  ;;  %v2416_v53 = vadd.f32 %v3253_v31, %v3066_v49 }
 0x8da   : > { %v2407_v32 = vpop.f32.mrf.mxu1 }
 0x8db   : > { %3246 = vmatmul.mubr.msk.bf16.vlgmr.msra.gmra.mxu0 %vm822_vm0, %v2260_v16  ;;  %v2408_v47 = vadd.f32 %v3066_v49, %v2407_v32 }
 0x8dc   : > { %v3254_v33 = vpop.f32.mrf.mxu1 }
 0x8dd   : > { %v2419_v1 = vadd.f32 %v3254_v33, %v3066_v49 }
 0x8de   : > { %v2410_v34 = vpop.f32.mrf.mxu1 }
 0x8df   : > { %v2411_v45 = vadd.f32 %v3066_v49, %v2410_v34 }
 0x8e0   : > { %v3257_v46 = vpop.f32.mrf.mxu1 }
 0x8e1   : > { %v2432_v35 = vadd.f32 %v3257_v46, %v3066_v49 }
 0x8e2   : > { %v2423_v10 = vpop.f32.mrf.mxu1 }
 0x8e3   : > { %v2424_v51 = vadd.f32 %v3066_v49, %v2423_v10 }
 0x8e4   : > { %v3258_v39 = vpop.f32.mrf.mxu1 }
 0x8e5   : > { %v2435_v57 = vadd.f32 %v3258_v39, %v3066_v49 }
 0x8e6   : > { %v2426_v2 = vpop.f32.mrf.mxu1 }
 0x8e7   : > { %v2427_v8 = vadd.f32 %v3066_v49, %v2426_v2 }
 0x99b   : > { %v2313_v18 = vpop.f32.mrf.mxu0 }
 0x99c   : > { %v2314_v19 = vadd.f32 %v3061_v17, %v2313_v18 }
 0x99d   : > { %v3247_v20 = vpop.f32.mrf.mxu0 }
 0x99e   : > { %v3064_v21 = vmul.f32 -1.442695, %v2314_v19 }
 0x99f   : > { %v2316_v22 = vpop.f32.mrf.mxu0 }
 0x9a0   : > { %3424 = vpow2.f32 %v3064_v21  ;;  %v2317_v23 = vadd.f32 %v3061_v17, %v2316_v22  ;;  %v2512_v21 = vand.u32 127, %v967_v54 }
 0x9a1   : > { %v3248_v14 = vpop.f32.mrf.mxu0 }
 0x9a2   : > { %v3065_v24 = vmul.f32 -1.442695, %v2317_v23  ;;  %v2517_v14 = vadd.s32 4294967288, %v2512_v21 }
 0x9a4   : > { %3426 = vpow2.f32 %v3065_v24 }
 0x9ad   : > { %v3425_v25 = vpop.eup %3424 }
 0x9ae   : > { %v2326_v26 = vadd.f32 1.0, %v3425_v25 }
 0x9b0   : > { %3428 = vrcp.f32 %v2326_v26  ;;  %v4144_v26 = vsub.s32 %v2517_v14, %v3807_v55 }
 0x9b1   : > { %v3427_v27 = vpop.eup %3426 }
 0x9b2   : > { %v2327_v28 = vadd.f32 1.0, %v3427_v27 }
 0x9b4   : > { %3430 = vrcp.f32 %v2327_v28 }
 0x9bd   : > { %v3429_v29 = vpop.eup %3428 }
 0x9be   : > { %2334 = vrot.lane.b32.xlu0 %v3429_v29, %s3495_s6  ;;  %v4147_v29 = vsub.s32 %v2512_v21, %v3807_v55 }
 0x9c1   : > { %v3431_v30 = vpop.eup %3430 }
 0x9c2   : > { %2336 = vrot.lane.b32.xlu1 %v3431_v30, %s3495_s6  ;;  %s4162_s6 = sld [smem:[#allocation13]] }
 0xa30   : > { %v2335_v50 = vpop.permute.xlu0 %2334 }
 0xa31   : > { %v2340_v52 = vmul.f32 %v2335_v50, %v2314_v19 }
 0xa33   : > { %v4092_v37 = vmul.f32 %v2408_v47, %v2340_v52  ;;  %v4094_v38 = vmul.f32 %v2424_v51, %v2340_v52  ;;  %v4096_v60 = vmul.f32 %v2416_v53, %v2340_v52  ;;  %v4102_v0 = vmul.f32 %v2432_v35, %v2340_v52 }
 0xa34   : > { %v2337_v42 = vpop.permute.xlu1 %2336 }
 0xa35   : > { %v2341_v61 = vmul.f32 %v2337_v42, %v2317_v23  ;;  %v2446_v62 = vsel %vm822_vm0, %v4092_v37, 0.0  ;;  %v2458_v63 = vsel %vm822_vm0, %v4094_v38, 0.0  ;;  %v2452_v4 = vsel %vm822_vm0, %v4096_v60, 0.0 }
 0xa36   : > { %2447 = vadd.xlane.f32.xlu0 %v2446_v62  ;;  %2459 = vadd.xlane.f32.xlu1 %v2458_v63  ;;  %v2464_v5 = vsel %vm822_vm0, %v4102_v0, 0.0  ;;  %v2479_v48 = vsel %vm822_vm0, %v4092_v37, -inf  ;;  %v2485_v9 = vsel %vm822_vm0, %v4096_v60, -inf  ;;  %v2491_v12 = vsel %vm822_vm0, %v4094_v38, -inf }
 0xa37   : > { %v4108_v6 = vmul.f32 %v2419_v1, %v2341_v61  ;;  %v4114_v43 = vmul.f32 %v2427_v8, %v2341_v61  ;;  %v4120_v41 = vmul.f32 %v2435_v57, %v2341_v61  ;;  %v4122_v44 = vmul.f32 %v2411_v45, %v2341_v61 }
 0xa38   : > { %v2497_v15 = vsel %vm822_vm0, %v4102_v0, -inf }
 0xa39   : > { %v2455_v36 = vsel %vm822_vm0, %v4108_v6, 0.0  ;;  %v2461_v40 = vsel %vm822_vm0, %v4114_v43, 0.0  ;;  %v2467_v59 = vsel %vm822_vm0, %v4120_v41, 0.0  ;;  %v2449_v3 = vsel %vm822_vm0, %v4122_v44, 0.0 }
 0xa3a   : > { %2453 = vadd.xlane.f32.xlu0 %v2452_v4  ;;  %2465 = vadd.xlane.f32.xlu1 %v2464_v5  ;;  %v2482_v11 = vsel %vm822_vm0, %v4122_v44, -inf  ;;  %v2488_v13 = vsel %vm822_vm0, %v4108_v6, -inf  ;;  %v2494_v7 = vsel %vm822_vm0, %v4114_v43, -inf  ;;  %v2500_v16 = vsel %vm822_vm0, %v4120_v41, -inf }
 0xa3e   : > { %2480 = vmax.xlane.f32.xlu1 %v2479_v48  ;;  %2456 = vadd.xlane.f32.xlu0 %v2455_v36 }
 0xa42   : > { %2486 = vmax.xlane.f32.xlu1 %v2485_v9  ;;  %2462 = vadd.xlane.f32.xlu0 %v2461_v40 }
 0xa46   : > { %2468 = vadd.xlane.f32.xlu0 %v2467_v59  ;;  %2450 = vadd.xlane.f32.xlu1 %v2449_v3 }
 0xa4a   : > { %2483 = vmax.xlane.f32.xlu0 %v2482_v11  ;;  %2492 = vmax.xlane.f32.xlu1 %v2491_v12 }
 0xa4e   : > { %2489 = vmax.xlane.f32.xlu0 %v2488_v13  ;;  %2498 = vmax.xlane.f32.xlu1 %v2497_v15 }
 0xa52   : > { %2495 = vmax.xlane.f32.xlu0 %v2494_v7  ;;  %v2617_v7 = vstv %s4162_s6  ;;  %s4211_s6 = sld [smem:[#allocation13 + $0x4]] }
 0xa56   : > { %2501 = vmax.xlane.f32.xlu0 %v2500_v16 }
 0xabf   : > { %v2448_v17 = vpop.xlane.xlu0 %2447  ;;  %v2460_v18 = vpop.xlane.xlu1 %2459 }
 0xac0   : > { %v2471_v30 = vmul.f32 0.0625, %v2448_v17  ;;  %v2475_v32 = vmul.f32 0.0625, %v2460_v18 }
 0xac2   : > { %v2516_v50 = vrot.slane %v2471_v30, %v4147_v29  ;;  %v2536_v53 = vrot.slane %v2475_v32, %v4147_v29 }
 0xac3   : > { %v2454_v19 = vpop.xlane.xlu0 %2453  ;;  %v2466_v20 = vpop.xlane.xlu1 %2465 }
 0xac4   : > { %v2473_v31 = vmul.f32 0.0625, %v2454_v19  ;;  %v2477_v51 = vmul.f32 0.0625, %v2466_v20 }
 0xac6   : > { %v2527_v47 = vrot.slane %v2473_v31, %v4147_v29  ;;  %v2545_v1 = vrot.slane %v2477_v51, %v4147_v29  ;;  %v2639_v31 = vstv %s4180_s5  ;;  %s4224_s5 = sld [smem:[#allocation13 + $0x86]] }
 0xac7   : > { %v2457_v22 = vpop.xlane.xlu0 %2456  ;;  %v4141_v23 = vpop.xlane.xlu1 %2480 }
 0xac8   : > { %v2474_v27 = vmul.f32 0.0625, %v2457_v22  ;;  %v2573_v12 = vrot.slane %v4141_v23, %v4147_v29  ;;  %v2625_v22 = vstv %s4165_s27  ;;  %s4214_s27 = sld [smem:[#allocation13 + $0x5]] }
 0xaca   : > { %v2531_v54 = vrot.slane %v2474_v27, %v4144_v26  ;;  %v2620_v27 = vstv %s4171_s25  ;;  %s4217_s25 = sld [smem:[#allocation13 + $0x85]] }
 0xacb   : > { %v2463_v24 = vpop.xlane.xlu0 %2462  ;;  %v2487_v25 = vpop.xlane.xlu1 %2486 }
 0xacc   : > { %v2476_v28 = vmul.f32 0.0625, %v2463_v24  ;;  %v2532_v39 = vsel %vm2522_vm6, %v2531_v54, %v2527_v47  ;;  %v2582_v57 = vrot.slane %v2487_v25, %v4147_v29  ;;  %v2613_v25 = vstv %s4167_s2  ;;  %s3080_s2 = sld [smem:[#allocation13 + $0x84]] }
 0xacd   : > { %v2653_v47 = vstv %s4197_s0 }
 0xace   : > { %v2540_v49 = vrot.slane %v2476_v28, %v4144_v26  ;;  %v2631_v28 = vstv %s4173_s22  ;;  %s4221_s22 = sld [smem:[#allocation13 + $0x6]] }
 0xacf   : > { %v2469_v33 = vpop.xlane.xlu0 %2468  ;;  %v2451_v34 = vpop.xlane.xlu1 %2450 }
 0xad0   : > { %v2478_v46 = vmul.f32 0.0625, %v2469_v33  ;;  %v2472_v10 = vmul.f32 0.0625, %v2451_v34  ;;  %v2541_v62 = vsel %vm2522_vm6, %v2540_v49, %v2536_v53 }
 0xad2   : > { %v2521_v52 = vrot.slane %v2472_v10, %v4144_v26  ;;  %v2549_v42 = vrot.slane %v2478_v46, %v4144_v26  ;;  %v2645_v46 = vstv %s4187_s26 }
 0xad3   : > { %v2484_v35 = vpop.xlane.xlu0 %2483  ;;  %v2493_v4 = vpop.xlane.xlu1 %2492 }
 0xad4   : > { %v2523_v61 = vsel %vm2522_vm6, %v2521_v52, %v2516_v50  ;;  %v2550_v8 = vsel %vm2522_vm6, %v2549_v42, %v2545_v1  ;;  %v2577_v9 = vrot.slane %v2484_v35, %v4144_v26  ;;  %v2591_v3 = vrot.slane %v2493_v4, %v4147_v29 }
 0xad5   : > { %v2552_v63 = vsel %vm2551_vm7, %v2532_v39, %v2523_v61  ;;  %v2659_v35 = vstv %s4205_s8 }
 0xad6   : > { %v2554_v2 = vsel %vm2553_vm8, %v2541_v62, %v2552_v63  ;;  %v2578_v18 = vsel %vm2522_vm6, %v2577_v9, %v2573_v12  ;;  %v2667_v62 = vstv %s4211_s6  ;;  %v2681_v63 = vstv %s4214_s27 }
 0xad7   : > { %v2490_v5 = vpop.xlane.xlu0 %2489  ;;  %v2556_v48 = vsel %vm2555_vm9, %v2550_v8, %v2554_v2  ;;  %v2499_v11 = vpop.xlane.xlu1 %2498  ;;  %v2691_v8 = vstv %s4217_s25 }
 0xad8   : > { %v2586_v36 = vrot.slane %v2490_v5, %v4144_v26  ;;  %v2559_v59 = vsel %vm2558_vm10, 0.0, %v2556_v48  ;;  %v2600_v19 = vrot.slane %v2499_v11, %v4147_v29  ;;  %v2673_v5 = vstv %s3080_s2 }
 0xad9   : > { %v4190_v17 = vsel %vm2560_vm11, %v2559_v59, 0.0  ;;  %v2693_v12 = vmul.f32 0.0, %v2691_v8 }
 0xada   : > { %v2587_v13 = vsel %vm2522_vm6, %v2586_v36, %v2582_v57  ;;  %v2618_v24 = vmul.f32 %v2617_v7, %v4190_v17  ;;  %v2626_v30 = vmul.f32 %v2625_v22, %v4190_v17  ;;  %v2640_v50 = vmul.f32 %v2639_v31, %v4190_v17 }
 0xadb   : > { %v2496_v45 = vpop.xlane.xlu0 %2495  ;;  %v2606_v21 = vsel %vm2551_vm7, %v2587_v13, %v2578_v18  ;;  %v2654_v61 = vmul.f32 %v2653_v47, %v4190_v17  ;;  %v2683_v57 = vmul.f32 0.0, %v2681_v63  ;;  %v2682_v9 = vmul.f32 %v2681_v63, %v4190_v17 }
 0xadc   : > { %v2595_v40 = vrot.slane %v2496_v45, %v4144_v26  ;;  %v2619_v33 = vadd.f32 %v2618_v24, %v2613_v25  ;;  %v2628_v49 = vrot.slane %v2626_v30, 1  ;;  %v2642_v42 = vrot.slane %v2640_v50, 2 }
 0xadd   : > { %v2656_v36 = vrot.slane %v2654_v61, 3  ;;  %v2668_v45 = vmul.f32 %v2667_v62, %v4190_v17  ;;  %v2687_v18 = vrot.slane %v2683_v57, 5  ;;  %v2765_v61 = vsub.s32 3, %v3807_v55 }
 0xade   : > { %v2596_v15 = vsel %vm2522_vm6, %v2595_v40, %v2591_v3  ;;  %v2703_v40 = vstv %s4221_s22 }
 0xadf   : > { %v2502_v16 = vpop.xlane.xlu0 %2501  ;;  %v2607_v23 = vsel %vm2553_vm8, %v2596_v15, %v2606_v21  ;;  %v2714_v15 = vstv %s4224_s5  ;;  %v2704_v21 = vmul.f32 %v2703_v40, %v4190_v17 }
 0xae0   : > { %v2604_v20 = vrot.slane %v2502_v16, %v4144_v26  ;;  %v2670_v16 = vrot.slane %v2668_v45, 4  ;;  %v2716_v24 = vmul.f32 0.0, %v2714_v15 }
 0xae1   : > { %v2709_v30 = vrot.slane %v2704_v21, 6 }
 0xae2   : > { %v2605_v14 = vsel %vm2522_vm6, %v2604_v20, %v2600_v19  ;;  %v2705_v19 = vmul.f32 0.0, %v2703_v40  ;;  %v2686_v20 = vrot.slane %v2682_v9, 5  ;;  %v2788_v40 = vld [vmem:[%s3692_s7 + $0x30] sm:$0xff] }
 0xae3   : > { %v2608_v29 = vsel %vm2555_vm9, %v2605_v14, %v2607_v23  ;;  %v2697_v14 = vrot.slane %v2693_v12, 5 }
 0xae4   : > { %v2610_v26 = vsel %vm2558_vm10, 0.0, %v2608_v29  ;;  %v2710_v29 = vrot.slane %v2705_v19, 6  ;;  %v2789_v19 = vld [vmem:[%s3692_s7 + $0x38] sm:$0xff] }
 0xae5   : > { %v2611_v32 = vsel %vm2560_vm11, %v2610_v26, 0.0  ;;  %v2688_v26 = vsel %vm2558_vm10, %v2686_v20, %v2687_v18 }
 0xae6   : > { %v2621_v34 = vmul.f32 %v2620_v27, %v2611_v32  ;;  %v2632_v54 = vmul.f32 %v2631_v28, %v2611_v32  ;;  %v2646_v53 = vmul.f32 %v2645_v46, %v2611_v32  ;;  %v2660_v4 = vmul.f32 %v2659_v35, %v2611_v32 }
 0xae7   : > { %v2674_v11 = vmul.f32 %v2673_v5, %v2611_v32  ;;  %v2692_v13 = vmul.f32 %v2691_v8, %v2611_v32  ;;  %v2715_v27 = vmul.f32 %v2714_v15, %v2611_v32  ;;  %v2754_v35 = vsub.s32 2, %v3807_v55  ;;  %v2786_v8 = vld [vmem:[%s3692_s7 + $0x20] sm:$0xff]  ;;  %v2787_v15 = vld [vmem:[%s3692_s7 + $0x28] sm:$0xff] }
 0xae8   : > { %v2622_v10 = vadd.f32 %v2621_v34, %v2619_v33  ;;  %v2634_v52 = vrot.slane %v2632_v54, 1  ;;  %v2648_v2 = vrot.slane %v2646_v53, 2  ;;  %v2662_v3 = vrot.slane %v2660_v4, 3 }
 0xae9   : > { %v2676_v23 = vrot.slane %v2674_v11, 4  ;;  %v2696_v25 = vrot.slane %v2692_v13, 5  ;;  %v2720_v33 = vrot.slane %v2716_v24, 6  ;;  %v2719_v54 = vrot.slane %v2715_v27, 6 }
 0xaea   : > { %v2630_v51 = vadd.f32 %v2628_v49, %v2622_v10  ;;  %v2711_v10 = vsel %vm2708_vm12, %v2709_v30, %v2710_v29 }
 0xaeb   : > { %v2698_v34 = vsel %vm2558_vm10, %v2696_v25, %v2697_v14  ;;  %v2721_v49 = vsel %vm2708_vm12, %v2719_v54, %v2720_v33 }
 0xaec   : > { %v2636_v39 = vadd.f32 %v2634_v52, %v2630_v51 }
 0xaee   : > { %v2644_v1 = vadd.f32 %v2642_v42, %v2636_v39 }
 0xaf0   : > { %v2650_v48 = vadd.f32 %v2648_v2, %v2644_v1  ;;  %v2782_v1 = vld [vmem:[%s3692_s7] sm:$0xff] }
 0xaf2   : > { %v2658_v59 = vadd.f32 %v2656_v36, %v2650_v48  ;;  %v2784_v36 = vld [vmem:[%s3692_s7 + $0x10] sm:$0xff] }
 0xaf4   : > { %v2664_v7 = vadd.f32 %v2662_v3, %v2658_v59  ;;  %v2785_v3 = vld [vmem:[%s3692_s7 + $0x18] sm:$0xff] }
 0xaf6   : > { %v2672_v22 = vadd.f32 %v2670_v16, %v2664_v7 }
 0xaf8   : > { %v2678_v28 = vadd.f32 %v2676_v23, %v2672_v22 }
 0xafa   : > { %v2690_v31 = vadd.f32 %v2688_v26, %v2678_v28 }
 0xafc   : > { %v2700_v46 = vadd.f32 %v2698_v34, %v2690_v31 }
 0xafe   : > { %v2713_v17 = vadd.f32 %v2711_v10, %v2700_v46 }
 0xb00   : > { %v2723_v50 = vadd.f32 %v2721_v49, %v2713_v17 }
 0xb02   : > { %v3085_v47 = vmul.f32 -1.442695, %v2723_v50 }
 0xb04   : > { %3432 = vpow2.f32 %v3085_v47 }
 0xb11   : > { %v3433_v51 = vpop.eup %3432 }
 0xb12   : > { %v2727_v32 = vadd.f32 1.0, %v3433_v51 }
 0xb14   : > { %3434 = vrcp.f32 %v2727_v32 }
 0xb21   : > { %v3435_v52 = vpop.eup %3434 }
 0xb22   : > { %v2733_v53 = vrot.slane %v3435_v52, %v969_v56  ;;  %v2755_v39 = vrot.slane %v3435_v52, %v2754_v35  ;;  %v2744_v42 = vrot.slane %v3435_v52, %v973_v58  ;;  %v2766_v62 = vrot.slane %v3435_v52, %v2765_v61  ;;  %v2783_v56 = vld [vmem:[%s3692_s7 + $0x8] sm:$0xff]  ;;  %s3106_s7 = sshll.u32 (%p4358_p5), %s3641_s23, 4 }
 0xb23   : > { %s2815_s8 = scalar_lea.vmem (%p4358_p5), %s4323_s24, %s3106_s7 }
 0xb24   : > { %2739 = vbcast.lane.b32.xlu0 %v2733_v53, 264  ;;  %2735 = vbcast.lane.b32.xlu1 %v2733_v53, 256 }
 0xb28   : > { %2757 = vbcast.lane.b32.xlu0 %v2755_v39, 256  ;;  %2746 = vbcast.lane.b32.xlu1 %v2744_v42, 256 }
 0xb2c   : > { %2768 = vbcast.lane.b32.xlu0 %v2766_v62, 256  ;;  %2750 = vbcast.lane.b32.xlu1 %v2744_v42, 264 }
 0xb30   : > { %2761 = vbcast.lane.b32.xlu1 %v2755_v39, 264 }
 0xb34   : > { %2772 = vbcast.lane.b32.xlu1 %v2766_v62, 264 }
 0xb96   : > { %v2740_v63 = vpop.permute.xlu0 %2739  ;;  %v2736_v2 = vpop.permute.xlu1 %2735 }
 0xb97   : > { %v2775_v58 = vmul.f32 %v2740_v63, %v4122_v44  ;;  %v2774_v55 = vmul.f32 %v2736_v2, %v4092_v37 }
 0xb99   : > { %v2791_v4 = vadd.f32 %v2783_v56, %v2775_v58  ;;  %v2790_v5 = vadd.f32 %v2782_v1, %v2774_v55 }
 0xb9a   : > { %v2758_v48 = vpop.permute.xlu0 %2757  ;;  %v2747_v45 = vpop.permute.xlu1 %2746 }
 0xb9b   : > { %2799 = vst.msk [vmem:[%s3819_s1 + $0x8] sm:$0xff] %vm822_vm0, %v2791_v4  ;;  %2798 = vst.msk [vmem:[%s3819_s1] sm:$0xff] %vm822_vm0, %v2790_v5  ;;  %v2778_v57 = vmul.f32 %v2758_v48, %v4094_v38  ;;  %v2776_v44 = vmul.f32 %v2747_v45, %v4096_v60 }
 0xb9d   : > { %v2794_v37 = vadd.f32 %v2786_v8, %v2778_v57  ;;  %v2792_v9 = vadd.f32 %v2784_v36, %v2776_v44 }
 0xb9e   : > { %v2769_v59 = vpop.permute.xlu0 %2768  ;;  %v2751_v11 = vpop.permute.xlu1 %2750 }
 0xb9f   : > { %2802 = vst.msk [vmem:[%s3819_s1 + $0x20] sm:$0xff] %vm822_vm0, %v2794_v37  ;;  %2800 = vst.msk [vmem:[%s3819_s1 + $0x10] sm:$0xff] %vm822_vm0, %v2792_v9  ;;  %v2780_v12 = vmul.f32 %v2769_v59, %v4102_v0  ;;  %v2777_v38 = vmul.f32 %v2751_v11, %v4108_v6 }
 0xba1   : > { %v2796_v13 = vadd.f32 %v2788_v40, %v2780_v12  ;;  %v2793_v60 = vadd.f32 %v2785_v3, %v2777_v38 }
 0xba2   : > { %v2762_v7 = vpop.permute.xlu1 %2761  ;;  %v2858_v6 = vld [vmem:[%s3819_s1] sm:$0xff] (%p4358_p5) }
 0xba3   : > { %2804 = vst.msk [vmem:[%s3819_s1 + $0x30] sm:$0xff] %vm822_vm0, %v2796_v13  ;;  %2801 = vst.msk [vmem:[%s3819_s1 + $0x18] sm:$0xff] %vm822_vm0, %v2793_v60  ;;  %v2779_v16 = vmul.f32 %v2762_v7, %v4114_v43  ;;  %v2860_v43 = vld [vmem:[%s3819_s1 + $0x8] sm:$0xff] (%p4358_p5) }
 0xba4   : > { %2859 = vst [vmem:[%s2815_s8] sm:$0xff] (%p4358_p5), %v2858_v6  ;;  %2861 = vst [vmem:[%s2815_s8 + $0x8] sm:$0xff] (%p4358_p5), %v2860_v43 }
 0xba5   : > { %v2795_v18 = vadd.f32 %v2787_v15, %v2779_v16 }
 0xba6   : > { %v2773_v20 = vpop.permute.xlu1 %2772  ;;  %v2862_v22 = vld [vmem:[%s3819_s1 + $0x10] sm:$0xff] (%p4358_p5)  ;;  %v2866_v23 = vld [vmem:[%s3819_s1 + $0x20] sm:$0xff] (%p4358_p5) }
 0xba7   : > { %2803 = vst.msk [vmem:[%s3819_s1 + $0x28] sm:$0xff] %vm822_vm0, %v2795_v18  ;;  %v2781_v21 = vmul.f32 %v2773_v20, %v4120_v41  ;;  %2812 = sbr.rel (!%p4358_p5) target bundleno = 2996 (0xbb4), region = 169  ;;  %2863 = vst [vmem:[%s2815_s8 + $0x20] sm:$0xff] (%p4358_p5), %v2862_v22 }
 0xba8   : > { %2867 = vst [vmem:[%s2815_s8 + $0x40] sm:$0xff] (%p4358_p5), %v2866_v23 }
 0xba9   : > { %v2797_v0 = vadd.f32 %v2789_v19, %v2781_v21 }
 0xbaa   : > { %v2864_v41 = vld [vmem:[%s3819_s1 + $0x18] sm:$0xff] (%p4358_p5)  ;;  %v2870_v24 = vld [vmem:[%s3819_s1 + $0x30] sm:$0xff] (%p4358_p5) }
 0xbab   : > { %2805 = vst.msk [vmem:[%s3819_s1 + $0x38] sm:$0xff] %vm822_vm0, %v2797_v0  ;;  %2865 = vst [vmem:[%s2815_s8 + $0x28] sm:$0xff] (%p4358_p5), %v2864_v41 }
 0xbac   : > { %2871 = vst [vmem:[%s2815_s8 + $0x60] sm:$0xff] %v2870_v24 }
 0xbae   : > { %v2868_v14 = vld [vmem:[%s3819_s1 + $0x28] sm:$0xff] }
 0xbaf   : > { %2869 = vst [vmem:[%s2815_s8 + $0x48] sm:$0xff] %v2868_v14 }
 0xbb2   : > { %v2872_v25 = vld [vmem:[%s3819_s1 + $0x38] sm:$0xff] }
 0xbb3   : > { %2873 = vst [vmem:[%s2815_s8 + $0x68] sm:$0xff] %v2872_v25 }
 0xbb4 PF: > { %s4359_s6 = sld [smem:[#allocation17_spill]]  ;;  %s4361_s27 = smov %s3477_s28 }
 0xbb5   : > { %s4360_s23 = sld [smem:[#allocation18_spill]] }
 0xbba   : > { %p33_p8 = scmp.ge.s32.totalorder %s4359_s6, 4  }
 0xbbb   : > { %s4362_s28 = smov %s4360_s23 }
 0xbbc   :  { %35 = sbr.rel (!%p33_p8) target bundleno = 14 (0xe), region = 254 }
 0xbc1   :  { %2889 = vsyncpa [#allocation14], 1 }
 0xbc2   :  { %2891 = vsyncpa [#allocation14 + $0x1], 1 }

// kernel: band_sequence_model.4
= control target key start
LH: loop header
LB: loop body
LE: loop exit
PB: predicated region body
PF: predicated region fallthrough
CT: control target
= control target key end

     0   :  { %s4962_s0 = inlined_call_operand.vmem [shape: f32[16,8,16], index: 0, kind: input, shape index: {}]   ;;  %s4963_s1 = inlined_call_operand.vmem [shape: f32[1,16], index: 1, kind: input, shape index: {}]   ;;  %s4964_s2 = inlined_call_operand.vmem [shape: f32[1,16], index: 2, kind: input, shape index: {}]   ;;  %s4965_s3 = inlined_call_operand.vmem [shape: bf16[16,256], index: 3, kind: input, shape index: {}]   ;;  %s4966_s4 = inlined_call_operand.vmem [shape: f32[1,256], index: 4, kind: input, shape index: {}]   ;;  %s4967_s5 = inlined_call_operand.vmem [shape: bf16[32,128], index: 5, kind: input, shape index: {}]   ;;  %s4968_s6 = inlined_call_operand.vmem [shape: bf16[32,128], index: 6, kind: input, shape index: {}]   ;;  %s4969_s7 = inlined_call_operand.vmem [shape: bf16[32,32], index: 7, kind: input, shape index: {}]   ;;  %s4970_s8 = inlined_call_operand.vmem [shape: bf16[32,32], index: 8, kind: input, shape index: {}]   ;;  %s4971_s9 = inlined_call_operand.vmem [shape: f32[1,32], index: 9, kind: input, shape index: {}]   ;;  %s4972_s10 = inlined_call_operand.vmem [shape: bf16[32,16], index: 10, kind: input, shape index: {}]   ;;  %s4973_s11 = inlined_call_operand.vmem [shape: f32[1,16], index: 11, kind: input, shape index: {}]   ;;  %s4974_s12 = inlined_call_operand.vmem [shape: bf16[16,32], index: 12, kind: input, shape index: {}]   ;;  %s4975_s13 = inlined_call_operand.vmem [shape: f32[1,32], index: 13, kind: input, shape index: {}]   ;;  %s4976_s14 = inlined_call_operand.vmem [shape: bf16[16,32], index: 14, kind: input, shape index: {}]   ;;  %s4977_s15 = inlined_call_operand.vmem [shape: f32[1,32], index: 15, kind: input, shape index: {}]   ;;  %s4978_s16 = inlined_call_operand.vmem [shape: bf16[32,16], index: 16, kind: input, shape index: {}]   ;;  %s4979_s17 = inlined_call_operand.vmem [shape: f32[1,16], index: 17, kind: input, shape index: {}]   ;;  %s4980_s18 = inlined_call_operand.vmem [shape: bf16[16,32], index: 18, kind: input, shape index: {}]   ;;  %s4981_s19 = inlined_call_operand.vmem [shape: f32[1,32], index: 19, kind: input, shape index: {}]   ;;  %s4982_s20 = inlined_call_operand.vmem [shape: bf16[16,16], index: 20, kind: input, shape index: {}]   ;;  %s4983_s21 = inlined_call_operand.vmem [shape: f32[1,16], index: 21, kind: input, shape index: {}]   ;;  %s4984_s22 = inlined_call_operand.vmem [shape: f32[2,7], index: 22, kind: input, shape index: {}]   ;;  %s4985_s23 = inlined_call_operand.<no memory space> [shape: f32[1,1], index: 23, kind: input, shape index: {}]   ;;  %s4986_s24 = inlined_call_operand.vmem [shape: f32[16,8,16], index: 24, kind: output, shape index: {}]  }
   0x1   :  { %4996 = sst [smem:[#allocation17_spill]] %s4962_s0 }
   0x2   :  { %4997 = sst [smem:[#allocation18_spill]] %s4963_s1 }
   0x3   :  { %4998 = sst [smem:[#allocation19_spill]] %s4964_s2 }
   0x4   :  { %4999 = sst [smem:[#allocation20_spill]] %s4965_s3 }
   0x5   :  { %5000 = sst [smem:[#allocation21_spill]] %s4966_s4 }
   0x6   :  { %5001 = sst [smem:[#allocation22_spill]] %s4967_s5 }
   0x7   :  { %5002 = sst [smem:[#allocation23_spill]] %s4968_s6 }
   0x8   :  { %5003 = sst [smem:[#allocation24_spill]] %s4969_s7 }
   0x9   :  { %5004 = sst [smem:[#allocation25_spill]] %s4970_s8 }
   0xa   :  { %29 = sst [smem:[#allocation11]] %s4985_s23 }
   0xb   :  { %30 = vsyncpa [#allocation13], 0  ;;  %s81_s6 = sshll.u32 %s4984_s22, 4  ;;  %s82_s6 = int_to_ptr.vmem [resolvable:$true] %s81_s6 }
   0xc   :  { %s3497_s2 = scalar_lea.vmem %s82_s6, 32  ;;  %p3502_p1 = scmp.lt.s32.totalorder %s82_s6, %s82_s6 }
   0xd   :  { %p3498_p0 = scmp.ne.s32.totalorder %s82_s6, %s3497_s2  ;;  %p3503_p2 = scmp.lt.s32.totalorder %s3497_s2, %s3497_s2 }
   0xf   :  { %p3504_p3 = por %p3503_p2, %p3502_p1 }
  0x11   :  { %p3505_p4 = pnand %p3504_p3, %p3498_p0 }
  0x13   :  { %3508 = shalt.err (!%p3505_p4)
}
  0x14   :  { %s3519_s29 = smov [#allocation12]  }
  0x15   :  { %84 = dma.vmem_to_smem %s82_s6, 32, %s3519_s29, [#allocation13]  }
  0x16   :  { %3513 = dma.done.wait [#allocation13], 32  }
  0x17   :  { %3514 = vsyncadd [#allocation13], 4294967264 }
  0x18   :  { %90 = sfence }
  0x19   :  { %s5005_s7 = sld [smem:[#allocation20_spill]]  ;;  %vm108_vm0 = vcmask 130048   ;;  %v3520_v2 = vmov 0   ;;  %vm286_vm1 = vcmask 125952   ;;  %vm560_vm2 = vcmask 261120   ;;  %s3942_s2 = smov 0  }
  0x1a   :  { %439 = vmatprep.mubr.bf16.mxu0 %v3520_v2  ;;  %479 = vmatprep.mubr.bf16.mxu1 %v3520_v2  ;;  %s5006_s8 = sld [smem:[#allocation17_spill]] }
  0x1b   :  { %s5007_s25 = sld [smem:[#allocation18_spill]] }
  0x1c   :  { %s5008_s5 = sld [smem:[#allocation19_spill]] }
  0x1d   :  { %s5009_s28 = sld [smem:[#allocation22_spill]] }
  0x1e   :  { %s5011_s6 = sld [smem:[#allocation21_spill]] }
  0x1f   :  { %v3332_v0 = vld [vmem:[%s5005_s7 + $0x4] ss:$8 sps:$4 sm:$0xff]   ;;  %v3334_v1 = vld [vmem:[%s5005_s7] ss:$8 sps:$4 sm:$0xff]  }
  0x20   :  { %v92_v3 = vld [vmem:[%s5006_s8] sm:$0xff]  ;;  %v93_v4 = vld [vmem:[%s5006_s8 + $0x8] sm:$0xff]  ;;  %421 = vmatprep.subr.bf16.mxu0 %v3332_v0  ;;  %3308 = vmatprep.subr.bf16.mxu1 %v3332_v0  ;;  %v94_v5 = vld [vmem:[%s5006_s8 + $0x10] sm:$0xff] }
  0x21   :  { %v95_v6 = vld [vmem:[%s5006_s8 + $0x18] sm:$0xff]  ;;  %v109_v7 = vsel %vm108_vm0, %v92_v3, 0.0  ;;  %v110_v8 = vsel %vm108_vm0, %v93_v4, 0.0  ;;  %422 = vmatpush1.bf16.msra.mxu0 %v3334_v1  ;;  %3309 = vmatpush1.bf16.msra.mxu1 %v3334_v1  ;;  %v96_v9 = vld [vmem:[%s5006_s8 + $0x20] sm:$0xff]  ;;  %v112_v11 = vsel %vm108_vm0, %v94_v5, 0.0  ;;  %v97_v13 = vld [vmem:[%s5006_s8 + $0x28] sm:$0xff] }
  0x22   :  { %v111_v10 = vadd.f32 %v110_v8, %v109_v7  ;;  %v114_v12 = vsel %vm108_vm0, %v95_v6, 0.0  ;;  %v116_v15 = vsel %vm108_vm0, %v96_v9, 0.0  ;;  %v98_v16 = vld [vmem:[%s5006_s8 + $0x30] sm:$0xff]  ;;  %v118_v18 = vsel %vm108_vm0, %v97_v13, 0.0  ;;  %v99_v19 = vld [vmem:[%s5006_s8 + $0x38] sm:$0xff]  ;;  %v100_v22 = vld [vmem:[%s5006_s8 + $0x40] sm:$0xff] }
  0x23   :  { %v120_v21 = vsel %vm108_vm0, %v98_v16, 0.0  ;;  %v122_v24 = vsel %vm108_vm0, %v99_v19, 0.0  ;;  %v101_v25 = vld [vmem:[%s5006_s8 + $0x48] sm:$0xff]  ;;  %v124_v27 = vsel %vm108_vm0, %v100_v22, 0.0  ;;  %v102_v28 = vld [vmem:[%s5006_s8 + $0x50] sm:$0xff]  ;;  %v103_v31 = vld [vmem:[%s5006_s8 + $0x58] sm:$0xff] }
  0x24   :  { %v113_v14 = vadd.f32 %v112_v11, %v111_v10  ;;  %v126_v30 = vsel %vm108_vm0, %v101_v25, 0.0  ;;  %v128_v33 = vsel %vm108_vm0, %v102_v28, 0.0  ;;  %v104_v34 = vld [vmem:[%s5006_s8 + $0x60] sm:$0xff]  ;;  %v130_v36 = vsel %vm108_vm0, %v103_v31, 0.0  ;;  %v105_v37 = vld [vmem:[%s5006_s8 + $0x68] sm:$0xff]  ;;  %v106_v40 = vld [vmem:[%s5006_s8 + $0x70] sm:$0xff] }
  0x25   :  { %v132_v39 = vsel %vm108_vm0, %v104_v34, 0.0  ;;  %v134_v42 = vsel %vm108_vm0, %v105_v37, 0.0  ;;  %v107_v43 = vld [vmem:[%s5006_s8 + $0x78] sm:$0xff]  ;;  %v136_v45 = vsel %vm108_vm0, %v106_v40, 0.0  ;;  %s5010_s8 = sld [smem:[#allocation23_spill]] }
  0x26   :  { %v115_v17 = vadd.f32 %v114_v12, %v113_v14  ;;  %v138_v47 = vsel %vm108_vm0, %v107_v43, 0.0 }
  0x28   :  { %v117_v20 = vadd.f32 %v116_v15, %v115_v17 }
  0x2a   :  { %v119_v23 = vadd.f32 %v118_v18, %v117_v20 }
  0x2c   :  { %v121_v26 = vadd.f32 %v120_v21, %v119_v23 }
  0x2e   :  { %v123_v29 = vadd.f32 %v122_v24, %v121_v26 }
  0x30   :  { %v125_v32 = vadd.f32 %v124_v27, %v123_v29 }
  0x32   :  { %v127_v35 = vadd.f32 %v126_v30, %v125_v32 }
  0x34   :  { %v129_v38 = vadd.f32 %v128_v33, %v127_v35 }
  0x36   :  { %v131_v41 = vadd.f32 %v130_v36, %v129_v38 }
  0x38   :  { %v133_v44 = vadd.f32 %v132_v39, %v131_v41 }
  0x3a   :  { %v135_v46 = vadd.f32 %v134_v42, %v133_v44 }
  0x3c   :  { %v137_v48 = vadd.f32 %v136_v45, %v135_v46 }
  0x3e   :  { %v139_v49 = vadd.f32 %v138_v47, %v137_v48 }
  0x40   :  { %v141_v50 = vmul.f32 0.0625, %v139_v49 }
  0x42   :  { %v3732_v51 = vsub.f32 %v92_v3, %v141_v50  ;;  %v3734_v52 = vsub.f32 %v93_v4, %v141_v50  ;;  %v3736_v53 = vsub.f32 %v94_v5, %v141_v50  ;;  %v3738_v54 = vsub.f32 %v95_v6, %v141_v50 }
  0x43   :  { %v3740_v55 = vsub.f32 %v96_v9, %v141_v50  ;;  %v3748_v59 = vsub.f32 %v97_v13, %v141_v50  ;;  %v3752_v61 = vsub.f32 %v98_v16, %v141_v50  ;;  %v3759_v4 = vsub.f32 %v99_v19, %v141_v50 }
  0x44   :  { %v158_v56 = vmul.f32 %v3732_v51, %v3732_v51  ;;  %v159_v57 = vmul.f32 %v3734_v52, %v3734_v52  ;;  %v160_v58 = vmul.f32 %v3736_v53, %v3736_v53  ;;  %v161_v60 = vmul.f32 %v3738_v54, %v3738_v54 }
  0x45   :  { %v162_v62 = vmul.f32 %v3740_v55, %v3740_v55  ;;  %v163_v5 = vmul.f32 %v3748_v59, %v3748_v59  ;;  %v150_v8 = vsub.f32 %v100_v22, %v141_v50  ;;  %v164_v9 = vmul.f32 %v3752_v61, %v3752_v61 }
  0x46   :  { %v174_v63 = vsel %vm108_vm0, %v158_v56, 0.0  ;;  %v175_v0 = vsel %vm108_vm0, %v159_v57, 0.0  ;;  %v177_v1 = vsel %vm108_vm0, %v160_v58, 0.0  ;;  %v179_v6 = vsel %vm108_vm0, %v161_v60, 0.0  ;;  %v2948_v60 = vld [vmem:[%s5007_s25] ss:$0 sm:$0xff] }
  0x47   :  { %v176_v3 = vadd.f32 %v175_v0, %v174_v63  ;;  %v181_v10 = vsel %vm108_vm0, %v162_v62, 0.0  ;;  %v151_v12 = vsub.f32 %v101_v25, %v141_v50  ;;  %v165_v13 = vmul.f32 %v3759_v4, %v3759_v4 }
  0x48   :  { %v183_v14 = vsel %vm108_vm0, %v163_v5, 0.0  ;;  %v152_v16 = vsub.f32 %v102_v28, %v141_v50  ;;  %v166_v17 = vmul.f32 %v150_v8, %v150_v8  ;;  %v185_v18 = vsel %vm108_vm0, %v164_v9, 0.0 }
  0x49   :  { %v178_v7 = vadd.f32 %v177_v1, %v176_v3  ;;  %v153_v20 = vsub.f32 %v103_v31, %v141_v50  ;;  %v167_v21 = vmul.f32 %v151_v12, %v151_v12  ;;  %v187_v22 = vsel %vm108_vm0, %v165_v13, 0.0  ;;  %v2949_v3 = vld [vmem:[%s5008_s5] ss:$0 sm:$0xff] }
  0x4a   :  { %v3772_v24 = vsub.f32 %v104_v34, %v141_v50  ;;  %v168_v26 = vmul.f32 %v152_v16, %v152_v16  ;;  %v189_v25 = vsel %vm108_vm0, %v166_v17, 0.0  ;;  %v3775_v29 = vsub.f32 %v105_v37, %v141_v50 }
  0x4b   :  { %v180_v11 = vadd.f32 %v179_v6, %v178_v7  ;;  %v169_v30 = vmul.f32 %v153_v20, %v153_v20  ;;  %v191_v28 = vsel %vm108_vm0, %v167_v21, 0.0  ;;  %v3778_v33 = vsub.f32 %v106_v40, %v141_v50 }
  0x4c   :  { %v170_v31 = vmul.f32 %v3772_v24, %v3772_v24  ;;  %v193_v35 = vsel %vm108_vm0, %v168_v26, 0.0  ;;  %v3783_v34 = vsub.f32 %v107_v43, %v141_v50  ;;  %v171_v38 = vmul.f32 %v3775_v29, %v3775_v29 }
  0x4d   :  { %v182_v15 = vadd.f32 %v181_v10, %v180_v11  ;;  %v195_v37 = vsel %vm108_vm0, %v169_v30, 0.0  ;;  %v172_v41 = vmul.f32 %v3778_v33, %v3778_v33 }
  0x4e   :  { %v197_v40 = vsel %vm108_vm0, %v170_v31, 0.0  ;;  %v173_v44 = vmul.f32 %v3783_v34, %v3783_v34  ;;  %v199_v45 = vsel %vm108_vm0, %v171_v38, 0.0 }
  0x4f   :  { %v184_v19 = vadd.f32 %v183_v14, %v182_v15  ;;  %v201_v43 = vsel %vm108_vm0, %v172_v41, 0.0 }
  0x50   :  { %v203_v48 = vsel %vm108_vm0, %v173_v44, 0.0 }
  0x51   :  { %v186_v23 = vadd.f32 %v185_v18, %v184_v19 }
  0x53   :  { %v188_v27 = vadd.f32 %v187_v22, %v186_v23 }
  0x55   :  { %v190_v32 = vadd.f32 %v189_v25, %v188_v27 }
  0x57   :  { %v192_v36 = vadd.f32 %v191_v28, %v190_v32 }
  0x59   :  { %v194_v39 = vadd.f32 %v193_v35, %v192_v36 }
  0x5b   :  { %v196_v42 = vadd.f32 %v195_v37, %v194_v39 }
  0x5d   :  { %v198_v46 = vadd.f32 %v197_v40, %v196_v42 }
  0x5f   :  { %v200_v47 = vadd.f32 %v199_v45, %v198_v46 }
  0x61   :  { %v202_v49 = vadd.f32 %v201_v43, %v200_v47 }
  0x63   :  { %v204_v50 = vadd.f32 %v203_v48, %v202_v49 }
  0x65   :  { %v205_v56 = vmul.f32 0.0625, %v204_v50 }
  0x67   :  { %v206_v57 = vadd.f32 1e-05, %v205_v56 }
  0x69   :  { %3343 = vrsqrt.f32 %v206_v57 }
  0x76   :  { %v3344_v58 = vpop.eup %3343 }
  0x77   :  { %v208_v62 = vmul.f32 %v3344_v58, %v3732_v51  ;;  %v209_v63 = vmul.f32 %v3344_v58, %v3734_v52  ;;  %v216_v0 = vmul.f32 %v3344_v58, %v150_v8  ;;  %v217_v1 = vmul.f32 %v3344_v58, %v151_v12 }
  0x78   :  { %v210_v5 = vmul.f32 %v3344_v58, %v3736_v53  ;;  %v211_v6 = vmul.f32 %v3344_v58, %v3738_v54  ;;  %v218_v7 = vmul.f32 %v3344_v58, %v152_v16  ;;  %v219_v9 = vmul.f32 %v3344_v58, %v153_v20 }
  0x79   :  { %v231_v10 = vmul.f32 %v2948_v60, %v208_v62  ;;  %v232_v11 = vmul.f32 %v2948_v60, %v209_v63  ;;  %v239_v13 = vmul.f32 %v2948_v60, %v216_v0  ;;  %v240_v14 = vmul.f32 %v2948_v60, %v217_v1 }
  0x7a   :  { %v233_v15 = vmul.f32 %v2948_v60, %v210_v5  ;;  %v234_v51 = vmul.f32 %v2948_v60, %v211_v6  ;;  %v241_v17 = vmul.f32 %v2948_v60, %v218_v7  ;;  %v242_v52 = vmul.f32 %v2948_v60, %v219_v9 }
  0x7b   :  { %v254_v8 = vadd.f32 %v2949_v3, %v231_v10  ;;  %v255_v12 = vadd.f32 %v2949_v3, %v232_v11  ;;  %v262_v18 = vadd.f32 %v2949_v3, %v239_v13  ;;  %v263_v19 = vadd.f32 %v2949_v3, %v240_v14  ;;  %v3847_v11 = vld [vmem:[%s5009_s28] sm:$0xf]  ;;  %v3852_v13 = vld [vmem:[%s5009_s28 + $0x4] sm:$0xf] }
  0x7c   :  { %v256_v21 = vadd.f32 %v2949_v3, %v233_v15  ;;  %v257_v22 = vadd.f32 %v2949_v3, %v234_v51  ;;  %v264_v23 = vadd.f32 %v2949_v3, %v241_v17  ;;  %v265_v53 = vadd.f32 %v2949_v3, %v242_v52  ;;  %v3870_v15 = vld [vmem:[%s5009_s28 + $0xc] sm:$0xf]  ;;  %v3875_v51 = vld [vmem:[%s5010_s8] sm:$0xf]  ;;  %v3880_v17 = vld [vmem:[%s5010_s8 + $0x4] sm:$0xf] }
  0x7d   :  { %v270_v26 = vpack.c.bf16 %v254_v8, %v254_v8  ;;  %v271_v54 = vpack.c.bf16 %v255_v12, %v255_v12  ;;  %v278_v16 = vpack.c.bf16 %v262_v18, %v262_v18  ;;  %v279_v20 = vpack.c.bf16 %v263_v19, %v263_v19  ;;  %v3885_v52 = vld [vmem:[%s5010_s8 + $0x8] sm:$0xf]  ;;  %v3890_v8 = vld [vmem:[%s5010_s8 + $0xc] sm:$0xf] }
  0x7e   :  { %v272_v25 = vpack.c.bf16 %v256_v21, %v256_v21  ;;  %v273_v27 = vpack.c.bf16 %v257_v22, %v257_v22  ;;  %v280_v30 = vpack.c.bf16 %v264_v23, %v264_v23  ;;  %v281_v28 = vpack.c.bf16 %v265_v53, %v265_v53  ;;  %v321_v21 = vld [vmem:[%s5011_s6] sm:$0x3] }
  0x7f   :  { %287 = vst.msk [vmem:[#allocation2] sm:$0xf] %vm286_vm1, %v270_v26  ;;  %288 = vst.msk [vmem:[#allocation2 + $0x4] sm:$0xf] %vm286_vm1, %v271_v54  ;;  %v212_v32 = vmul.f32 %v3344_v58, %v3740_v55  ;;  %v213_v31 = vmul.f32 %v3344_v58, %v3748_v59  ;;  %v220_v35 = vmul.f32 %v3344_v58, %v3772_v24  ;;  %v3521_v14 = vmov 0.0  }
  0x80   :  { %295 = vst.msk [vmem:[#allocation2 + $0x20] sm:$0xf] %vm286_vm1, %v278_v16  ;;  %296 = vst.msk [vmem:[#allocation2 + $0x24] sm:$0xf] %vm286_vm1, %v279_v20  ;;  %v221_v36 = vmul.f32 %v3344_v58, %v3775_v29  ;;  %v214_v38 = vmul.f32 %v3344_v58, %v3752_v61  ;;  %v215_v37 = vmul.f32 %v3344_v58, %v3759_v4  ;;  %v323_v12 = vlaneseq }
  0x81   :  { %289 = vst.msk [vmem:[#allocation2 + $0x8] sm:$0xf] %vm286_vm1, %v272_v25  ;;  %290 = vst.msk [vmem:[#allocation2 + $0xc] sm:$0xf] %vm286_vm1, %v273_v27  ;;  %v222_v55 = vmul.f32 %v3344_v58, %v3778_v33  ;;  %v223_v59 = vmul.f32 %v3344_v58, %v3783_v34  ;;  %v235_v39 = vmul.f32 %v2948_v60, %v212_v32 }
  0x82   :  { %297 = vst.msk [vmem:[#allocation2 + $0x28] sm:$0xf] %vm286_vm1, %v280_v30  ;;  %298 = vst.msk [vmem:[#allocation2 + $0x2c] sm:$0xf] %vm286_vm1, %v281_v28  ;;  %v236_v24 = vmul.f32 %v2948_v60, %v213_v31  ;;  %v243_v41 = vmul.f32 %v2948_v60, %v220_v35  ;;  %v244_v29 = vmul.f32 %v2948_v60, %v221_v36  ;;  %v3893_v18 = vshrl.u32 %v323_v12, 7 }
  0x83   :  { %v237_v40 = vmul.f32 %v2948_v60, %v214_v38  ;;  %v238_v42 = vmul.f32 %v2948_v60, %v215_v37  ;;  %v245_v44 = vmul.f32 %v2948_v60, %v222_v55  ;;  %v246_v45 = vmul.f32 %v2948_v60, %v223_v59  ;;  %561 = vst.msk [vmem:[#allocation7] sm:$0xff] %vm560_vm2, %v3521_v14 }
  0x84   :  { %v258_v46 = vadd.f32 %v2949_v3, %v235_v39  ;;  %v259_v43 = vadd.f32 %v2949_v3, %v236_v24  ;;  %v266_v47 = vadd.f32 %v2949_v3, %v243_v41  ;;  %v267_v48 = vadd.f32 %v2949_v3, %v244_v29  ;;  %562 = vst.msk [vmem:[#allocation8] sm:$0xff] %vm560_vm2, %v3521_v14 }
  0x85   :  { %v260_v49 = vadd.f32 %v2949_v3, %v237_v40  ;;  %v261_v61 = vadd.f32 %v2949_v3, %v238_v42  ;;  %v268_v50 = vadd.f32 %v2949_v3, %v245_v44  ;;  %v269_v4 = vadd.f32 %v2949_v3, %v246_v45  ;;  %563 = vst.msk [vmem:[#allocation9] sm:$0xff] %vm560_vm2, %v3521_v14 }
  0x86   :  { %v274_v56 = vpack.c.bf16 %v258_v46, %v258_v46  ;;  %v275_v33 = vpack.c.bf16 %v259_v43, %v259_v43  ;;  %v282_v57 = vpack.c.bf16 %v266_v47, %v266_v47  ;;  %v283_v34 = vpack.c.bf16 %v267_v48, %v267_v48  ;;  %v3335_v58 = vld [vmem:[#allocation2] sm:$0xff]   ;;  %564 = vst.msk [vmem:[#allocation10] sm:$0xff] %vm560_vm2, %v3521_v14 }
  0x87   :  { %v276_v62 = vpack.c.bf16 %v260_v49, %v260_v49  ;;  %v277_v63 = vpack.c.bf16 %v261_v61, %v261_v61  ;;  %v284_v0 = vpack.c.bf16 %v268_v50, %v268_v50  ;;  %v285_v1 = vpack.c.bf16 %v269_v4, %v269_v4  ;;  %v3336_v5 = vld [vmem:[#allocation2 + $0x20] sm:$0xff]   ;;  %2960 = vmatmul.mubr.msk.bf16.vlgmr.msra.gmra.mxu0 %vm108_vm0, %v3335_v58 }
  0x88   :  { %291 = vst.msk [vmem:[#allocation2 + $0x10] sm:$0xf] %vm286_vm1, %v274_v56  ;;  %292 = vst.msk [vmem:[#allocation2 + $0x14] sm:$0xf] %vm286_vm1, %v275_v33  ;;  %2964 = vmatmul.mubr.msk.bf16.vlgmr.msra.gmra.mxu1 %vm108_vm0, %v3336_v5  ;;  %449 = vmatprep.mubr.bf16.mxu0 %v3520_v2  ;;  %v3337_v60 = vld [vmem:[#allocation2 + $0x8] sm:$0xff]   ;;  %v3896_v19 = vsub.s32 0, %v3893_v18 }
  0x89   :  { %299 = vst.msk [vmem:[#allocation2 + $0x30] sm:$0xf] %vm286_vm1, %v282_v57  ;;  %300 = vst.msk [vmem:[#allocation2 + $0x34] sm:$0xf] %vm286_vm1, %v283_v34  ;;  %489 = vmatprep.mubr.bf16.mxu1 %v3520_v2  ;;  %v3338_v3 = vld [vmem:[#allocation2 + $0x28] sm:$0xff]   ;;  %v3902_v22 = vsub.s32 1, %v3893_v18 }
  0x8a   :  { %293 = vst.msk [vmem:[#allocation2 + $0x18] sm:$0xf] %vm286_vm1, %v276_v62  ;;  %294 = vst.msk [vmem:[#allocation2 + $0x1c] sm:$0xf] %vm286_vm1, %v277_v63  ;;  %v3905_v23 = vrot.slane %v321_v21, %v3896_v19 }
  0x8b   :  { %301 = vst.msk [vmem:[#allocation2 + $0x38] sm:$0xf] %vm286_vm1, %v284_v0  ;;  %302 = vst.msk [vmem:[#allocation2 + $0x3c] sm:$0xf] %vm286_vm1, %v285_v1  ;;  %v3908_v53 = vrot.slane %v321_v21, %v3902_v22 }
  0x8f   :  { %2961 = vmatmul.mubr.msk.bf16.gmra.mxu0 %vm108_vm0, %v3337_v60  ;;  %v3339_v6 = vld [vmem:[#allocation2 + $0x10] sm:$0xff]  }
  0x90   :  { %2965 = vmatmul.mubr.msk.bf16.gmra.mxu1 %vm108_vm0, %v3338_v3  ;;  %459 = vmatprep.mubr.bf16.mxu0 %v3520_v2  ;;  %v3340_v7 = vld [vmem:[#allocation2 + $0x30] sm:$0xff]  }
  0x91   :  { %499 = vmatprep.mubr.bf16.mxu1 %v3520_v2  ;;  %v3341_v9 = vld [vmem:[#allocation2 + $0x18] sm:$0xff]  }
  0x92   :  { %v3342_v10 = vld [vmem:[#allocation2 + $0x38] sm:$0xff]  }
  0x97   :  { %2962 = vmatmul.mubr.msk.bf16.gmra.mxu0 %vm108_vm0, %v3339_v6 }
  0x98   :  { %2966 = vmatmul.mubr.msk.bf16.gmra.mxu1 %vm108_vm0, %v3340_v7  ;;  %469 = vmatprep.mubr.bf16.mxu0 %v3520_v2 }
  0x99   :  { %509 = vmatprep.mubr.bf16.mxu1 %v3520_v2  ;;  %v3857_v2 = vld [vmem:[%s5009_s28 + $0x8] sm:$0xf] }
  0x9f   :  { %2963 = vmatmul.mubr.msk.bf16.gmra.mxu0 %vm108_vm0, %v3341_v9 }
  0xa0   :  { %2967 = vmatmul.mubr.msk.bf16.gmra.mxu1 %vm108_vm0, %v3342_v10 }
 0x147   :  { %v441_v26 = vpop.f32.mrf.mxu0 }
 0x148   :  { %v442_v54 = vadd.f32 %v441_v26, %v3905_v23  ;;  %v481_v16 = vpop.f32.mrf.mxu1 }
 0x149   :  { %v482_v20 = vadd.f32 %v481_v16, %v3905_v23  ;;  %v443_v25 = vpop.f32.mrf.mxu0 }
 0x14a   :  { %520 = vst [vmem:[#allocation3] sm:$0xff] %v442_v54  ;;  %v444_v27 = vadd.f32 %v443_v25, %v3908_v53  ;;  %v483_v30 = vpop.f32.mrf.mxu1 }
 0x14b   :  { %528 = vst [vmem:[#allocation3 + $0x40] sm:$0xff] %v482_v20  ;;  %v484_v28 = vadd.f32 %v483_v30, %v3908_v53  ;;  %v445_v32 = vpop.f32.mrf.mxu0 }
 0x14c   :  { %536 = vst [vmem:[#allocation4] sm:$0xff] %v444_v27  ;;  %v446_v31 = vadd.f32 %v445_v32, %v3905_v23  ;;  %v485_v35 = vpop.f32.mrf.mxu1 }
 0x14d   :  { %544 = vst [vmem:[#allocation4 + $0x40] sm:$0xff] %v484_v28  ;;  %v486_v36 = vadd.f32 %v485_v35, %v3905_v23  ;;  %v447_v38 = vpop.f32.mrf.mxu0 }
 0x14e   :  { %521 = vst [vmem:[#allocation3 + $0x8] sm:$0xff] %v446_v31  ;;  %v448_v37 = vadd.f32 %v447_v38, %v3908_v53  ;;  %v487_v55 = vpop.f32.mrf.mxu1 }
 0x14f   :  { %529 = vst [vmem:[#allocation3 + $0x48] sm:$0xff] %v486_v36  ;;  %v488_v59 = vadd.f32 %v487_v55, %v3908_v53  ;;  %v451_v39 = vpop.f32.mrf.mxu0 }
 0x150   :  { %537 = vst [vmem:[#allocation4 + $0x8] sm:$0xff] %v448_v37  ;;  %v452_v24 = vadd.f32 %v451_v39, %v3905_v23  ;;  %v491_v41 = vpop.f32.mrf.mxu1 }
 0x151   :  { %545 = vst [vmem:[#allocation4 + $0x48] sm:$0xff] %v488_v59  ;;  %v492_v29 = vadd.f32 %v491_v41, %v3905_v23  ;;  %v453_v40 = vpop.f32.mrf.mxu0 }
 0x152   :  { %522 = vst [vmem:[#allocation3 + $0x10] sm:$0xff] %v452_v24  ;;  %v454_v42 = vadd.f32 %v453_v40, %v3908_v53  ;;  %v493_v44 = vpop.f32.mrf.mxu1 }
 0x153   :  { %530 = vst [vmem:[#allocation3 + $0x50] sm:$0xff] %v492_v29  ;;  %v494_v45 = vadd.f32 %v493_v44, %v3908_v53  ;;  %v455_v46 = vpop.f32.mrf.mxu0 }
 0x154   :  { %538 = vst [vmem:[#allocation4 + $0x10] sm:$0xff] %v454_v42  ;;  %v456_v43 = vadd.f32 %v455_v46, %v3905_v23  ;;  %v495_v47 = vpop.f32.mrf.mxu1 }
 0x155   :  { %546 = vst [vmem:[#allocation4 + $0x50] sm:$0xff] %v494_v45  ;;  %v496_v48 = vadd.f32 %v495_v47, %v3905_v23  ;;  %v457_v49 = vpop.f32.mrf.mxu0 }
 0x156   :  { %523 = vst [vmem:[#allocation3 + $0x18] sm:$0xff] %v456_v43  ;;  %v458_v61 = vadd.f32 %v457_v49, %v3908_v53  ;;  %v497_v50 = vpop.f32.mrf.mxu1 }
 0x157   :  { %531 = vst [vmem:[#allocation3 + $0x58] sm:$0xff] %v496_v48  ;;  %v498_v4 = vadd.f32 %v497_v50, %v3908_v53  ;;  %v461_v56 = vpop.f32.mrf.mxu0 }
 0x158   :  { %539 = vst [vmem:[#allocation4 + $0x18] sm:$0xff] %v458_v61  ;;  %v462_v33 = vadd.f32 %v461_v56, %v3905_v23  ;;  %v501_v57 = vpop.f32.mrf.mxu1 }
 0x159   :  { %547 = vst [vmem:[#allocation4 + $0x58] sm:$0xff] %v498_v4  ;;  %v502_v34 = vadd.f32 %v501_v57, %v3905_v23  ;;  %v463_v58 = vpop.f32.mrf.mxu0 }
 0x15a   :  { %524 = vst [vmem:[#allocation3 + $0x20] sm:$0xff] %v462_v33  ;;  %v464_v62 = vadd.f32 %v463_v58, %v3908_v53  ;;  %v503_v63 = vpop.f32.mrf.mxu1 }
 0x15b   :  { %532 = vst [vmem:[#allocation3 + $0x60] sm:$0xff] %v502_v34  ;;  %v504_v0 = vadd.f32 %v503_v63, %v3908_v53  ;;  %v465_v1 = vpop.f32.mrf.mxu0 }
 0x15c   :  { %540 = vst [vmem:[#allocation4 + $0x20] sm:$0xff] %v464_v62  ;;  %v466_v5 = vadd.f32 %v465_v1, %v3905_v23  ;;  %v505_v60 = vpop.f32.mrf.mxu1 }
 0x15d   :  { %548 = vst [vmem:[#allocation4 + $0x60] sm:$0xff] %v504_v0  ;;  %v506_v3 = vadd.f32 %v505_v60, %v3905_v23  ;;  %v467_v6 = vpop.f32.mrf.mxu0 }
 0x15e   :  { %525 = vst [vmem:[#allocation3 + $0x28] sm:$0xff] %v466_v5  ;;  %v468_v7 = vadd.f32 %v467_v6, %v3908_v53  ;;  %v507_v9 = vpop.f32.mrf.mxu1 }
 0x15f   :  { %533 = vst [vmem:[#allocation3 + $0x68] sm:$0xff] %v506_v3  ;;  %v508_v10 = vadd.f32 %v507_v9, %v3908_v53  ;;  %v471_v21 = vpop.f32.mrf.mxu0 }
 0x160   :  { %541 = vst [vmem:[#allocation4 + $0x28] sm:$0xff] %v468_v7  ;;  %v472_v26 = vadd.f32 %v471_v21, %v3905_v23  ;;  %v511_v54 = vpop.f32.mrf.mxu1 }
 0x161   :  { %549 = vst [vmem:[#allocation4 + $0x68] sm:$0xff] %v508_v10  ;;  %v512_v16 = vadd.f32 %v511_v54, %v3905_v23  ;;  %v473_v20 = vpop.f32.mrf.mxu0 }
 0x162   :  { %526 = vst [vmem:[#allocation3 + $0x30] sm:$0xff] %v472_v26  ;;  %v474_v25 = vadd.f32 %v473_v20, %v3908_v53  ;;  %v513_v27 = vpop.f32.mrf.mxu1 }
 0x163   :  { %534 = vst [vmem:[#allocation3 + $0x70] sm:$0xff] %v512_v16  ;;  %v514_v30 = vadd.f32 %v513_v27, %v3908_v53  ;;  %v475_v28 = vpop.f32.mrf.mxu0 }
 0x164   :  { %542 = vst [vmem:[#allocation4 + $0x30] sm:$0xff] %v474_v25  ;;  %v476_v32 = vadd.f32 %v475_v28, %v3905_v23  ;;  %v515_v31 = vpop.f32.mrf.mxu1 }
 0x165   :  { %550 = vst [vmem:[#allocation4 + $0x70] sm:$0xff] %v514_v30  ;;  %v516_v35 = vadd.f32 %v515_v31, %v3905_v23  ;;  %v477_v36 = vpop.f32.mrf.mxu0 }
 0x166   :  { %527 = vst [vmem:[#allocation3 + $0x38] sm:$0xff] %v476_v32  ;;  %v478_v38 = vadd.f32 %v477_v36, %v3908_v53  ;;  %v517_v37 = vpop.f32.mrf.mxu1 }
 0x167   :  { %535 = vst [vmem:[#allocation3 + $0x78] sm:$0xff] %v516_v35  ;;  %v518_v55 = vadd.f32 %v517_v37, %v3908_v53 }
 0x168   :  { %543 = vst [vmem:[#allocation4 + $0x38] sm:$0xff] %v478_v38 }
 0x169   :  { %551 = vst [vmem:[#allocation4 + $0x78] sm:$0xff] %v518_v55 }
 0x16a LB: > { %v2970_v23 = vcombine.low %v3857_v2, %v3870_v15  ;;  %v2975_v59 = vcombine.low %v3885_v52, %v3890_v8  ;;  %v3522_v39 = vmov 0.0   ;;  %v2969_v53 = vcombine.low %v3847_v11, %v3852_v13  ;;  %v575_v41 = vld [vmem:[#allocation7] sm:$0xff]  ;;  %v665_v29 = vld [vmem:[#allocation9] sm:$0xff]  ;;  %v576_v40 = vld [vmem:[#allocation8] sm:$0xff]  ;;  %s3524_s29 = smov 32   ;;  %s571_s0 = ssub.s32 15, %s3517_s2  ;;  %s3517_s2 = sphi %s3942_s2, %s570_s2  }
 0x16b   : > { %3162 = vmatprep.subr.bf16.mxu0 %v3522_v39  ;;  %3170 = vmatprep.subr.bf16.mxu1 %v3522_v39  ;;  %v2974_v24 = vcombine.low %v3875_v51, %v3880_v17  ;;  %vm3523_vm3 = vmmov 0   ;;  %v577_v42 = vpack.c.bf16 %v575_v41, %v575_v41  ;;  %v667_v44 = vpack.c.bf16 %v665_v29, %v665_v29  ;;  %v666_v45 = vld [vmem:[#allocation10] sm:$0xff]  ;;  %s2968_s23 = sshll.u32 %s3517_s2, 3  ;;  %s2973_s7 = sshll.u32 %s571_s0, 3 }
 0x16c   : > { %3163 = vmatpush3.bf16.msra.mxu0 %v2970_v23  ;;  %3171 = vmatpush3.bf16.msra.mxu1 %v2975_v59  ;;  %s573_s30 = scalar_lea.vmem [#allocation3], %s2968_s23  ;;  %s663_s22 = scalar_lea.vmem [#allocation4], %s2973_s7  ;;  %vm781_vm4 = vcmask 257024  }
 0x16d   : > { %3164 = vmatprep.subr.bf16.mxu0 %v3522_v39  ;;  %3172 = vmatprep.subr.bf16.mxu1 %v3522_v39  ;;  %s3525_s8 = smov 64   ;;  %s3526_s3 = smov 96  }
 0x16e   : > { %3166 = vmatprep.mubr.msk.bf16.mxu0 %vm3523_vm3, %v3522_v39  ;;  %3174 = vmatprep.mubr.msk.bf16.mxu1 %vm3523_vm3, %v3522_v39  ;;  %v574_v46 = vld [vmem:[%s573_s30] sm:$0xff]  ;;  %s2981_s25 = sshll.u32 %s571_s0, 2  ;;  %s2979_s4 = sshll.u32 %s3517_s2, 2 }
 0x16f   : > { %642 = vrot.lane.b32.xlu1 %v576_v40, %s3524_s29  ;;  %s791_s1 = scalar_lea.vmem [#allocation6], %s2981_s25  ;;  %s780_s5 = scalar_lea.vmem [#allocation5], %s2979_s4 }
 0x170   : > { %3165 = vmatpush3.bf16.msra.mxu0 %v2969_v53  ;;  %3173 = vmatpush3.bf16.msra.mxu1 %v2974_v24  ;;  %v664_v43 = vld [vmem:[%s663_s22] sm:$0xff]  ;;  %s570_s2 = sadd.s32 1, %s3517_s2  }
 0x171   : > { %p567_p5 = scmp.ge.s32.totalorder %s570_s2, 16  }
 0x172   :  { %s5012_s28 = sld [smem:[#allocation25_spill]] (%p567_p5)  ;;  %vm3528_vm5 = vmmov (%p567_p5), 0   ;;  %vm2402_vm6 = vcmask (%p567_p5), 1041409   ;;  %vm2404_vm7 = vcmask (%p567_p5), 1042434   ;;  %vm2394_vm8 = vcmask (%p567_p5), 1044484  }
 0x173   : > { %3167 = vmatmul.mubr.msk.bf16.vlgmr.msra.gmra.mxu0 %vm560_vm2, %v577_v42  ;;  %3175 = vmatmul.mubr.msk.bf16.vlgmr.msra.gmra.mxu1 %vm560_vm2, %v667_v44  ;;  %s5013_s7 = sld [smem:[#allocation24_spill]] (%p567_p5)  ;;  %vm2406_vm9 = vcmask (%p567_p5), 1043459   ;;  %vm2396_vm10 = vcmask (%p567_p5), 1045509   ;;  %vm2398_vm11 = vcmask (%p567_p5), 1046534   ;;  %vm2400_vm12 = vcmask (%p567_p5), 1047559  }
 0x174   : > { %732 = vrot.lane.b32.xlu1 %v666_v45, %s3524_s29  ;;  %s4504_s25 = sld [smem:[#allocation12 + $0x2]] (%p567_p5)  ;;  %vm2417_vm13 = vcmask (%p567_p5), 1042432   ;;  %vm2542_vm14 = vcmask (%p567_p5), 1046528   ;;  %vm2577_vm15 = vcmask (%p567_p5), 1045504   ;;  %vm2612_vm1 = vcmask (%p567_p5), 1044480  }
 0x175   :  { %s4511_s4 = sld [smem:[#allocation12 + $0x3]] (%p567_p5)  ;;  %vm2716_vm3 = vcmask (%p567_p5), 1041408  }
 0x176   :  { %s4533_s26 = sld [smem:[#allocation12 + $0x82]] (%p567_p5) }
 0x177   :  { %s4549_s27 = sld [smem:[#allocation12 + $0x84]] (%p567_p5) }
 0x178   :  { %v3361_v42 = vld [vmem:[%s5012_s28 + $0x8] sm:$0xff] (%p567_p5)   ;;  %v3362_v44 = vld [vmem:[%s5012_s28] sm:$0xff] (%p567_p5)   ;;  %s4554_s28 = sld [smem:[#allocation12 + $0x85]] (%p567_p5) }
 0x179   :  { %3178 = vmatprep.subr.bf16.mxu0 (%p567_p5), %v3361_v42  ;;  %v3366_v11 = vld [vmem:[%s5013_s7] sm:$0xff] (%p567_p5)   ;;  %s5029_s0 = sld [smem:[#allocation17_spill]] (%p567_p5) }
 0x17a   :  { %3179 = vmatpush3.bf16.msra.mxu0 (%p567_p5), %v3361_v42 }
 0x17b   :  { %3180 = vmatprep.subr.bf16.mxu0 (%p567_p5), %v3362_v44 }
 0x17e   :  { %3181 = vmatpush3.bf16.msra.mxu0 (%p567_p5), %v3362_v44 }
 0x1e1   : > { %v643_v54 = vpop.permute.xlu1 %642 }
 0x1e6   : > { %v733_v20 = vpop.permute.xlu1 %732 }
 0x233   : > { %v627_v47 = vpop.f32.mrf.mxu0  ;;  %v717_v48 = vpop.f32.mrf.mxu1 }
 0x234   : > { %v633_v49 = vadd.f32 %v627_v47, %v574_v46  ;;  %v723_v61 = vadd.f32 %v717_v48, %v664_v43  ;;  %v3365_v46 = vld [vmem:[%s5013_s7 + $0x8] sm:$0xff] (%p567_p5)  }
 0x235   : > { %v3168_v50 = vpop.f32.mrf.mxu0  ;;  %v3176_v4 = vpop.f32.mrf.mxu1  ;;  %3310 = vmatprep.subr.bf16.mxu1 (%p567_p5), %v3365_v46  ;;  %3198 = vmatprep.subr.bf16.mxu0 (%p567_p5), %v3365_v46 }
 0x236   : > { %3345 = vtanh.f32 %v633_v49  ;;  %v2972_v63 = vmul.f32 -1.442695, %v633_v49  ;;  %v2977_v0 = vmul.f32 -1.442695, %v723_v61  ;;  %3312 = vmatpush3.bf16.msra.mxu1 (%p567_p5), %v3365_v46 }
 0x237   : > { %v630_v56 = vpop.f32.mrf.mxu0  ;;  %v720_v33 = vpop.f32.mrf.mxu1  ;;  %3347 = vtanh.f32 %v723_v61  ;;  %3311 = vmatprep.subr.bf16.mxu1 (%p567_p5), %v3366_v11 }
 0x238   : > { %3349 = vpow2.f32 %v2972_v63  ;;  %v3381_v33 = vld [vmem:[%s4972_s10 + $0x8] sm:$0xff] (%p567_p5)  }
 0x239   : > { %v3169_v57 = vpop.f32.mrf.mxu0  ;;  %v3177_v34 = vpop.f32.mrf.mxu1  ;;  %3351 = vpow2.f32 %v2977_v0 }
 0x23a   :  { %3313 = vmatpush3.bf16.msra.mxu1 (%p567_p5), %v3366_v11  ;;  %v3382_v57 = vld [vmem:[%s4972_s10] sm:$0xff] (%p567_p5)   ;;  %s4515_s10 = sld [smem:[#allocation12 + $0x5]] (%p567_p5) }
 0x23b   :  { %v3383_v34 = vld [vmem:[%s4974_s12] sm:$0xff] (%p567_p5)   ;;  %s4517_s12 = sld [smem:[#allocation12 + $0x6]] (%p567_p5) }
 0x23c   :  { %3238 = vmatprep.subr.bf16.mxu1 (%p567_p5), %v3383_v34 }
 0x243   : > { %v3346_v58 = vpop.eup %3345 }
 0x244   : > { %647 = vrot.lane.b32.xlu0 %v3346_v58, %s3525_s8  ;;  %v3348_v62 = vpop.eup %3347 }
 0x245   : > { %v3350_v1 = vpop.eup %3349 }
 0x246   : > { %v637_v5 = vadd.f32 1.0, %v3350_v1  ;;  %v3352_v60 = vpop.eup %3351 }
 0x247   : > { %v727_v3 = vadd.f32 1.0, %v3352_v60 }
 0x248   : > { %737 = vrot.lane.b32.xlu0 %v3348_v62, %s3525_s8  ;;  %3353 = vrcp.f32 %v637_v5 }
 0x249   : > { %3355 = vrcp.f32 %v727_v3 }
 0x255   : > { %v3354_v6 = vpop.eup %3353 }
 0x256   : > { %v3356_v10 = vpop.eup %3355  ;;  %v645_v16 = vmul.f32 %v3354_v6, %v643_v54 }
 0x257   : > { %v735_v30 = vmul.f32 %v3356_v10, %v733_v20 }
 0x2b6   : > { %v648_v7 = vpop.permute.xlu0 %647 }
 0x2b7   : > { %v650_v9 = vmul.f32 %v3354_v6, %v648_v7 }
 0x2b9   : > { %652 = vrot.lane.b32.xlu0 %v650_v9, %s3524_s29 }
 0x2ba   : > { %v738_v21 = vpop.permute.xlu0 %737 }
 0x2bb   : > { %v740_v26 = vmul.f32 %v3356_v10, %v738_v21 }
 0x2bd   : > { %742 = vrot.lane.b32.xlu1 %v740_v26, %s3524_s29 }
 0x32b   : > { %v653_v25 = vpop.permute.xlu0 %652 }
 0x32c   : > { %v655_v27 = vadd.f32 %v653_v25, %v645_v16 }
 0x32e   : > { %3357 = vtanh.f32 %v655_v27 }
 0x32f   : > { %v743_v28 = vpop.permute.xlu1 %742 }
 0x330   : > { %v745_v32 = vadd.f32 %v743_v28, %v735_v30 }
 0x332   : > { %3359 = vtanh.f32 %v745_v32 }
 0x33b   : > { %v3358_v31 = vpop.eup %3357 }
 0x33c   : > { %658 = vrot.lane.b32.xlu0 %v3358_v31, %s3525_s8 }
 0x33f   : > { %v3360_v35 = vpop.eup %3359 }
 0x340   : > { %748 = vrot.lane.b32.xlu1 %v3360_v35, %s3525_s8 }
 0x344   : > { %758 = vrot.lane.b32.xlu1 %v655_v27, %s3526_s3 }
 0x348   : > { %768 = vrot.lane.b32.xlu1 %v745_v32, %s3526_s3  ;;  %s4502_s3 = sld [smem:[#allocation12 + $0x1]] (%p567_p5) }
 0x3ae   : > { %v659_v36 = vpop.permute.xlu0 %658 }
 0x3af   : > { %v661_v38 = vmul.f32 %v3354_v6, %v659_v36 }
 0x3b1   : > { %753 = vrot.lane.b32.xlu0 %v661_v38, %s3524_s29  ;;  %v3094_v39 = vpack.c.bf16 %v661_v38, %v661_v38 }
 0x3b2   : > { %v749_v37 = vpop.permute.xlu1 %748 }
 0x3b3   : > { %v751_v55 = vmul.f32 %v3356_v10, %v749_v37 }
 0x3b5   : > { %v3095_v23 = vpack.c.bf16 %v751_v55, %v751_v55  ;;  %763 = vrot.lane.b32.xlu0 %v751_v55, %s3524_s29  ;;  %v4027_v55 = vld [vmem:[%s4971_s9] ss:$0 sm:$0xff] (%p567_p5)  ;;  %s4526_s9 = sld [smem:[#allocation11]] (%p567_p5) }
 0x3b6   : > { %v759_v59 = vpop.permute.xlu1 %758 }
 0x3b7   : > { %761 = vst.msk [vmem:[#allocation8] sm:$0xff] %vm560_vm2, %v759_v59  ;;  %787 = vrot.lane.b32.xlu1 %v3095_v23, %s3524_s29 }
 0x3b9   : > { %776 = vrot.lane.b32.xlu0 %v3094_v39, %s3524_s29 }
 0x3ba   : > { %v769_v53 = vpop.permute.xlu1 %768 }
 0x3bb   : > { %771 = vst.msk [vmem:[#allocation10] sm:$0xff] %vm560_vm2, %v769_v53 }
 0x423   : > { %v754_v24 = vpop.permute.xlu0 %753 }
 0x424   : > { %756 = vst.msk [vmem:[#allocation7] sm:$0xff] %vm560_vm2, %v754_v24 }
 0x427   : > { %v764_v41 = vpop.permute.xlu0 %763 }
 0x428   : > { %766 = vst.msk [vmem:[#allocation9] sm:$0xff] %vm560_vm2, %v764_v41 }
 0x429   : > { %v788_v29 = vpop.permute.xlu1 %787 }
 0x42a   : > { %792 = vst.msk [vmem:[%s791_s1] sm:$0xf] %vm781_vm4, %v788_v29  ;;  %s4513_s1 = sld [smem:[#allocation12 + $0x4]] (%p567_p5) }
 0x42b   : > { %v777_v40 = vpop.permute.xlu0 %776 }
 0x42c   : > { %782 = vst.msk [vmem:[%s780_s5] sm:$0xf] %vm781_vm4, %v777_v40  ;;  %s4528_s5 = sld [smem:[#allocation12 + $0x80]] (%p567_p5) }
 0x42d   :  { %569 = sbr.rel (!%p567_p5) target bundleno = 362 (0x16a), region = 131 }
 0x431   :  { %v3363_v45 = vld [vmem:[#allocation6] sm:$0xff] (%p567_p5)   ;;  %v3364_v13 = vld [vmem:[#allocation6 + $0x8] sm:$0xff] (%p567_p5)   ;;  %v3367_v15 = vld [vmem:[#allocation6 + $0x10] sm:$0xff] (%p567_p5)  }
 0x432   :  { %3182 = vmatprep.mubr.msk.bf16.mxu0 %vm560_vm2, %v3363_v45  ;;  %v3369_v52 = vld [vmem:[#allocation6 + $0x18] sm:$0xff]   ;;  %v3371_v8 = vld [vmem:[#allocation6 + $0x20] sm:$0xff]   ;;  %v3373_v48 = vld [vmem:[#allocation6 + $0x28] sm:$0xff]  }
 0x433   :  { %v3368_v2 = vld [vmem:[#allocation5 + $0x10] sm:$0xff]   ;;  %3183 = vmatmul.mubr.msk.bf16.vlgmr.msra.gmra.mxu0 %vm560_vm2, %v3364_v13  ;;  %v3370_v51 = vld [vmem:[#allocation5 + $0x18] sm:$0xff]   ;;  %v3372_v17 = vld [vmem:[#allocation5 + $0x20] sm:$0xff]  }
 0x434   :  { %3206 = vmatprep.mubr.msk.bf16.mxu1 %vm560_vm2, %v3368_v2  ;;  %3199 = vmatpush3.bf16.msra.mxu0 %v3365_v46  ;;  %v3374_v43 = vld [vmem:[#allocation5 + $0x28] sm:$0xff]   ;;  %v3376_v47 = vld [vmem:[#allocation5 + $0x30] sm:$0xff]   ;;  %v3378_v61 = vld [vmem:[#allocation5 + $0x38] sm:$0xff]  }
 0x435   :  { %3186 = vmatprep.mubr.msk.bf16.mxu0 %vm560_vm2, %v3367_v15  ;;  %3200 = vmatprep.subr.bf16.mxu0 %v3366_v11  ;;  %v3375_v49 = vld [vmem:[#allocation6 + $0x30] sm:$0xff]   ;;  %v3377_v50 = vld [vmem:[#allocation6 + $0x38] sm:$0xff]   ;;  %v3379_v4 = vld [vmem:[#allocation5] sm:$0xff]  }
 0x436   :  { %3207 = vmatmul.mubr.msk.bf16.vlgmr.msra.gmra.mxu1 %vm560_vm2, %v3370_v51  ;;  %v3380_v56 = vld [vmem:[#allocation5 + $0x8] sm:$0xff]  }
 0x437   :  { %3210 = vmatprep.mubr.msk.bf16.mxu1 %vm560_vm2, %v3372_v17  ;;  %3239 = vmatpush3.bf16.msra.mxu1 %v3383_v34 }
 0x438   :  { %3201 = vmatpush3.bf16.msra.mxu0 %v3366_v11  ;;  %3262 = vmatprep.subr.bf16.mxu1 %v3521_v14 }
 0x439   :  { %3218 = vmatprep.subr.bf16.mxu0 %v3381_v33 }
 0x43b   :  { %3187 = vmatmul.mubr.msk.bf16.gmra.mxu0 %vm560_vm2, %v3369_v52 }
 0x43c   :  { %3190 = vmatprep.mubr.msk.bf16.mxu0 %vm560_vm2, %v3371_v8 }
 0x43e   :  { %3211 = vmatmul.mubr.msk.bf16.gmra.mxu1 %vm560_vm2, %v3374_v43 }
 0x43f   :  { %3214 = vmatprep.mubr.msk.bf16.mxu1 %vm560_vm2, %v3376_v47 }
 0x443   :  { %3191 = vmatmul.mubr.msk.bf16.gmra.mxu0 %vm560_vm2, %v3373_v48 }
 0x444   :  { %3194 = vmatprep.mubr.msk.bf16.mxu0 %vm560_vm2, %v3375_v49 }
 0x446   :  { %3215 = vmatmul.mubr.msk.bf16.gmra.mxu1 %vm560_vm2, %v3378_v61 }
 0x44b   :  { %3195 = vmatmul.mubr.msk.bf16.gmra.mxu0 %vm560_vm2, %v3377_v50 }
 0x44c   :  { %3202 = vmatprep.mubr.msk.bf16.mxu0 %vm560_vm2, %v3379_v4 }
 0x453   :  { %3203 = vmatmul.mubr.msk.bf16.vlgmr.msra.gmra.mxu0 %vm560_vm2, %v3380_v56 }
 0x454   :  { %3219 = vmatpush3.bf16.msra.mxu0 %v3381_v33 }
 0x455   :  { %3220 = vmatprep.subr.bf16.mxu0 %v3382_v57 }
 0x458   :  { %3221 = vmatpush3.bf16.msra.mxu0 %v3382_v57 }
 0x459   :  { %3256 = vmatprep.subr.bf16.mxu0 %v3521_v14 }
 0x4f3   :  { %v3184_v58 = vpop.f32.mrf.mxu0 }
 0x4f5   :  { %v943_v62 = vpop.f32.mrf.mxu0 }
 0x4f6   :  { %v3208_v0 = vpop.f32.mrf.mxu1 }
 0x4f7   :  { %v3185_v63 = vpop.f32.mrf.mxu0 }
 0x4f8   :  { %v1132_v60 = vpop.f32.mrf.mxu1 }
 0x4f9   :  { %v946_v1 = vpop.f32.mrf.mxu0 }
 0x4fa   :  { %v3209_v7 = vpop.f32.mrf.mxu1 }
 0x4fb   :  { %v3188_v5 = vpop.f32.mrf.mxu0 }
 0x4fc   :  { %v1135_v10 = vpop.f32.mrf.mxu1  ;;  %v1141_v17 = vadd.f32 %v3208_v0, %v3188_v5 }
 0x4fd   :  { %v959_v3 = vpop.f32.mrf.mxu0 }
 0x4fe   :  { %v3212_v54 = vpop.f32.mrf.mxu1  ;;  %v1133_v41 = vadd.f32 %v1132_v60, %v959_v3  ;;  %v1192_v48 = vadd.f32 %v4027_v55, %v1141_v17 }
 0x4ff   :  { %v3189_v6 = vpop.f32.mrf.mxu0 }
 0x500   :  { %v1148_v25 = vpop.f32.mrf.mxu1  ;;  %v1190_v13 = vadd.f32 %v4027_v55, %v1133_v41  ;;  %v1144_v15 = vadd.f32 %v3209_v7, %v3189_v6  ;;  %v3019_v41 = vld [vmem:[%s4973_s11] ss:$0 sm:$0xff]  ;;  %s4530_s11 = sld [smem:[#allocation12 + $0x81]] }
 0x501   :  { %v962_v9 = vpop.f32.mrf.mxu0 }
 0x502   :  { %v3213_v28 = vpop.f32.mrf.mxu1  ;;  %v1136_v35 = vadd.f32 %v1135_v10, %v962_v9  ;;  %v1193_v43 = vadd.f32 %v4027_v55, %v1144_v15 }
 0x503   :  { %v3192_v21 = vpop.f32.mrf.mxu0 }
 0x504   :  { %v1151_v36 = vpop.f32.mrf.mxu1  ;;  %v1191_v59 = vadd.f32 %v4027_v55, %v1136_v35  ;;  %v1157_v56 = vadd.f32 %v3212_v54, %v3192_v21 }
 0x505   :  { %v975_v26 = vpop.f32.mrf.mxu0 }
 0x506   :  { %v3216_v39 = vpop.f32.mrf.mxu1  ;;  %3389 = vtanh.f32 %v1191_v59  ;;  %v1149_v8 = vadd.f32 %v1148_v25, %v975_v26 }
 0x507   :  { %v3193_v16 = vpop.f32.mrf.mxu0 }
 0x508   :  { %v1164_v46 = vpop.f32.mrf.mxu1  ;;  %v1194_v61 = vadd.f32 %v4027_v55, %v1149_v8  ;;  %v1160_v50 = vadd.f32 %v3213_v28, %v3193_v16 }
 0x509   :  { %v978_v20 = vpop.f32.mrf.mxu0 }
 0x50a   :  { %v1152_v51 = vadd.f32 %v1151_v36, %v978_v20  ;;  %v3217_v52 = vpop.f32.mrf.mxu1 }
 0x50b   :  { %v4022_v27 = vpop.f32.mrf.mxu0 }
 0x50c   :  { %v1195_v47 = vadd.f32 %v4027_v55, %v1152_v51  ;;  %v1167_v49 = vpop.f32.mrf.mxu1  ;;  %v1173_v21 = vadd.f32 %v3216_v39, %v4022_v27 }
 0x50d   :  { %v991_v30 = vpop.f32.mrf.mxu0 }
 0x50e   :  { %v1165_v57 = vadd.f32 %v1164_v46, %v991_v30  ;;  %v1200_v20 = vadd.f32 %v4027_v55, %v1173_v21  ;;  %v4068_v21 = vld [vmem:[%s4975_s13] ss:$0 sm:$0xff]  ;;  %s3527_s13 = smov 112  }
 0x50f   :  { %v3197_v32 = vpop.f32.mrf.mxu0 }
 0x510   :  { %v1198_v60 = vadd.f32 %v4027_v55, %v1165_v57  ;;  %v1176_v7 = vadd.f32 %v3217_v52, %v3197_v32 }
 0x511   :  { %v994_v31 = vpop.f32.mrf.mxu0 }
 0x512   :  { %v1168_v4 = vadd.f32 %v1167_v49, %v994_v31  ;;  %v1201_v26 = vadd.f32 %v4027_v55, %v1176_v7 }
 0x513   :  { %v3204_v38 = vpop.f32.mrf.mxu0  ;;  %v3390_v33 = vpop.eup %3389 }
 0x514   :  { %v1125_v53 = vadd.f32 %v3204_v38, %v3184_v58  ;;  %v1197_v58 = vadd.f32 %v4027_v55, %v1160_v50 }
 0x515   :  { %v1116_v37 = vpop.f32.mrf.mxu0 }
 0x516   :  { %v1117_v23 = vadd.f32 %v1116_v37, %v943_v62  ;;  %v1188_v11 = vadd.f32 %v4027_v55, %v1125_v53 }
 0x517   :  { %v3205_v24 = vpop.f32.mrf.mxu0 }
 0x518   :  { %v1186_v29 = vadd.f32 %v4027_v55, %v1117_v23  ;;  %v1128_v40 = vadd.f32 %v3205_v24, %v3185_v63  ;;  %v1199_v63 = vadd.f32 %v4027_v55, %v1168_v4 }
 0x519   :  { %v1119_v42 = vpop.f32.mrf.mxu0 }
 0x51a   :  { %v1189_v44 = vadd.f32 %v4027_v55, %v1128_v40  ;;  %v1120_v45 = vadd.f32 %v1119_v42, %v946_v1  ;;  %3391 = vtanh.f32 %v1186_v29  ;;  %v1196_v1 = vadd.f32 %v4027_v55, %v1157_v56 }
 0x51c   :  { %v1187_v2 = vadd.f32 %v4027_v55, %v1120_v45  ;;  %3393 = vtanh.f32 %v1189_v44 }
 0x51e   :  { %3395 = vtanh.f32 %v1187_v2 }
 0x51f   :  { %3397 = vtanh.f32 %v1188_v11 }
 0x520   :  { %3399 = vtanh.f32 %v1190_v13 }
 0x521   :  { %3401 = vtanh.f32 %v1193_v43 }
 0x522   :  { %3403 = vtanh.f32 %v1195_v47 }
 0x523   :  { %3405 = vtanh.f32 %v1192_v48 }
 0x524   :  { %3407 = vtanh.f32 %v1194_v61 }
 0x525   :  { %3409 = vtanh.f32 %v1197_v58 }
 0x526   :  { %3411 = vtanh.f32 %v1199_v63 }
 0x527   :  { %v3392_v34 = vpop.eup %3391  ;;  %3413 = vtanh.f32 %v1196_v1 }
 0x528   :  { %3415 = vtanh.f32 %v1198_v60 }
 0x529   :  { %v3394_v62 = vpop.eup %3393  ;;  %3417 = vtanh.f32 %v1201_v26 }
 0x52a   :  { %3419 = vtanh.f32 %v1200_v20 }
 0x52b   :  { %v3396_v0 = vpop.eup %3395 }
 0x52c   :  { %v3398_v5 = vpop.eup %3397  ;;  %v1218_v3 = vpack.c.bf16 %v3396_v0, %v3392_v34 }
 0x52d   :  { %v3400_v6 = vpop.eup %3399  ;;  %v1219_v9 = vpack.c.bf16 %v3394_v62, %v3398_v5 }
 0x52e   :  { %3222 = vmatprep.mubr.msk.bf16.mxu0 %vm560_vm2, %v1218_v3  ;;  %v1220_v10 = vpack.c.bf16 %v3390_v33, %v3400_v6  ;;  %v3402_v54 = vpop.eup %3401 }
 0x52f   :  { %3223 = vmatmul.mubr.msk.bf16.vlgmr.msra.gmra.mxu0 %vm560_vm2, %v1219_v9  ;;  %v3404_v16 = vpop.eup %3403 }
 0x530   :  { %3226 = vmatprep.mubr.msk.bf16.mxu0 %vm560_vm2, %v1220_v10  ;;  %v3406_v25 = vpop.eup %3405 }
 0x531   :  { %v3408_v30 = vpop.eup %3407  ;;  %v1221_v28 = vpack.c.bf16 %v3402_v54, %v3406_v25 }
 0x532   :  { %v1222_v32 = vpack.c.bf16 %v3404_v16, %v3408_v30  ;;  %v3410_v27 = vpop.eup %3409 }
 0x533   :  { %v3412_v31 = vpop.eup %3411 }
 0x534   :  { %v3414_v35 = vpop.eup %3413 }
 0x535   :  { %v3416_v36 = vpop.eup %3415  ;;  %v1223_v38 = vpack.c.bf16 %v3410_v27, %v3414_v35 }
 0x536   :  { %v1224_v37 = vpack.c.bf16 %v3412_v31, %v3416_v36  ;;  %v3418_v55 = vpop.eup %3417 }
 0x537   :  { %3227 = vmatmul.mubr.msk.bf16.gmra.mxu0 %vm560_vm2, %v1221_v28  ;;  %v3420_v23 = vpop.eup %3419 }
 0x538   :  { %3230 = vmatprep.mubr.msk.bf16.mxu0 %vm560_vm2, %v1222_v32  ;;  %v1225_v59 = vpack.c.bf16 %v3418_v55, %v3420_v23 }
 0x53f   :  { %3231 = vmatmul.mubr.msk.bf16.gmra.mxu0 %vm560_vm2, %v1223_v38 }
 0x540   :  { %3234 = vmatprep.mubr.msk.bf16.mxu0 %vm560_vm2, %v1224_v37 }
 0x547   :  { %3235 = vmatmul.mubr.msk.bf16.gmra.mxu0 %vm560_vm2, %v1225_v59 }
 0x548   :  { %3258 = vmatprep.mubr.msk.bf16.mxu0 %vm3528_vm5, %v3521_v14 }
 0x5ef   :  { %v3224_v39 = vpop.f32.mrf.mxu0 }
 0x5f0   :  { %v1316_v45 = vadd.f32 %v3224_v39, %v3019_v41 }
 0x5f1   :  { %v1307_v53 = vpop.f32.mrf.mxu0 }
 0x5f2   :  { %v1308_v42 = vadd.f32 %v3019_v41, %v1307_v53 }
 0x5f3   :  { %v3225_v24 = vpop.f32.mrf.mxu0 }
 0x5f4   :  { %v1319_v29 = vadd.f32 %v3225_v24, %v3019_v41 }
 0x5f5   :  { %v1310_v40 = vpop.f32.mrf.mxu0 }
 0x5f6   :  { %v1311_v44 = vadd.f32 %v3019_v41, %v1310_v40  ;;  %v1371_v13 = vpack.c.bf16 %v1319_v29, %v1316_v45 }
 0x5f7   :  { %v3228_v46 = vpop.f32.mrf.mxu0 }
 0x5f8   :  { %v1370_v11 = vpack.c.bf16 %v1311_v44, %v1308_v42  ;;  %v1332_v43 = vadd.f32 %v3228_v46, %v3019_v41 }
 0x5f9   :  { %v1323_v2 = vpop.f32.mrf.mxu0 }
 0x5fa   :  { %3240 = vmatprep.mubr.msk.bf16.mxu1 %vm108_vm0, %v1370_v11  ;;  %v1324_v52 = vadd.f32 %v3019_v41, %v1323_v2 }
 0x5fb   :  { %v3229_v15 = vpop.f32.mrf.mxu0  ;;  %3241 = vmatmul.mubr.msk.bf16.vlgmr.msra.gmra.mxu1 %vm108_vm0, %v1371_v13 }
 0x5fc   :  { %v1335_v51 = vadd.f32 %v3229_v15, %v3019_v41 }
 0x5fd   :  { %v1326_v17 = vpop.f32.mrf.mxu0 }
 0x5fe   :  { %v1327_v8 = vadd.f32 %v3019_v41, %v1326_v17  ;;  %v1373_v49 = vpack.c.bf16 %v1335_v51, %v1332_v43 }
 0x5ff   :  { %v3232_v47 = vpop.f32.mrf.mxu0 }
 0x600   :  { %v1372_v48 = vpack.c.bf16 %v1327_v8, %v1324_v52  ;;  %v1348_v34 = vadd.f32 %v3232_v47, %v3019_v41 }
 0x601   :  { %v1339_v61 = vpop.f32.mrf.mxu0 }
 0x602   :  { %3244 = vmatprep.mubr.msk.bf16.mxu1 %vm108_vm0, %v1372_v48  ;;  %v1340_v33 = vadd.f32 %v3019_v41, %v1339_v61 }
 0x603   :  { %v3233_v50 = vpop.f32.mrf.mxu0  ;;  %3245 = vmatmul.mubr.msk.bf16.gmra.mxu1 %vm108_vm0, %v1373_v49 }
 0x604   :  { %v1351_v4 = vadd.f32 %v3233_v50, %v3019_v41 }
 0x605   :  { %v1342_v56 = vpop.f32.mrf.mxu0 }
 0x606   :  { %v1343_v57 = vadd.f32 %v3019_v41, %v1342_v56  ;;  %v1375_v63 = vpack.c.bf16 %v1351_v4, %v1348_v34 }
 0x607   :  { %v3236_v58 = vpop.f32.mrf.mxu0 }
 0x608   :  { %v1374_v62 = vpack.c.bf16 %v1343_v57, %v1340_v33  ;;  %v1364_v7 = vadd.f32 %v3236_v58, %v3019_v41 }
 0x609   :  { %v1355_v0 = vpop.f32.mrf.mxu0 }
 0x60a   :  { %3248 = vmatprep.mubr.msk.bf16.mxu1 %vm108_vm0, %v1374_v62  ;;  %v1356_v3 = vadd.f32 %v3019_v41, %v1355_v0 }
 0x60b   :  { %v3237_v1 = vpop.f32.mrf.mxu0  ;;  %3249 = vmatmul.mubr.msk.bf16.gmra.mxu1 %vm108_vm0, %v1375_v63 }
 0x60c   :  { %v1367_v5 = vadd.f32 %v3237_v1, %v3019_v41 }
 0x60d   :  { %v1358_v60 = vpop.f32.mrf.mxu0 }
 0x60e   :  { %v1359_v6 = vadd.f32 %v3019_v41, %v1358_v60  ;;  %v1377_v10 = vpack.c.bf16 %v1367_v5, %v1364_v7 }
 0x610   :  { %v1376_v9 = vpack.c.bf16 %v1359_v6, %v1356_v3 }
 0x612   :  { %3252 = vmatprep.mubr.msk.bf16.mxu1 %vm108_vm0, %v1376_v9 }
 0x613   :  { %3253 = vmatmul.mubr.msk.bf16.gmra.mxu1 %vm108_vm0, %v1377_v10 }
 0x614   :  { %3266 = vmatprep.mubr.msk.bf16.mxu1 %vm3528_vm5, %v3521_v14 }
 0x6bb   :  { %v3242_v26 = vpop.f32.mrf.mxu1 }
 0x6bc   :  { %v4071_v54 = vadd.f32 %v3242_v26, %v4068_v21 }
 0x6bd   :  { %v1451_v16 = vpop.f32.mrf.mxu1 }
 0x6be   :  { %v3042_v20 = vmul.f32 -1.442695, %v4071_v54  ;;  %v4075_v25 = vadd.f32 %v4068_v21, %v1451_v16 }
 0x6bf   :  { %v3243_v30 = vpop.f32.mrf.mxu1 }
 0x6c0   :  { %3421 = vpow2.f32 %v3042_v20  ;;  %v3040_v28 = vmul.f32 -1.442695, %v4075_v25  ;;  %v4079_v32 = vadd.f32 %v3243_v30, %v4068_v21 }
 0x6c1   :  { %v1454_v27 = vpop.f32.mrf.mxu1 }
 0x6c2   :  { %3423 = vpow2.f32 %v3040_v28  ;;  %v3043_v31 = vmul.f32 -1.442695, %v4079_v32  ;;  %v4083_v35 = vadd.f32 %v4068_v21, %v1454_v27 }
 0x6c3   :  { %v3246_v36 = vpop.f32.mrf.mxu1 }
 0x6c4   :  { %3425 = vpow2.f32 %v3043_v31  ;;  %v3041_v38 = vmul.f32 -1.442695, %v4083_v35  ;;  %v4087_v37 = vadd.f32 %v3246_v36, %v4068_v21 }
 0x6c5   :  { %v1467_v55 = vpop.f32.mrf.mxu1 }
 0x6c6   :  { %3427 = vpow2.f32 %v3041_v38  ;;  %v3046_v23 = vmul.f32 -1.442695, %v4087_v37  ;;  %v4091_v59 = vadd.f32 %v4068_v21, %v1467_v55 }
 0x6c7   :  { %v3247_v39 = vpop.f32.mrf.mxu1 }
 0x6c8   :  { %3429 = vpow2.f32 %v3046_v23  ;;  %v3044_v53 = vmul.f32 -1.442695, %v4091_v59  ;;  %v4095_v24 = vadd.f32 %v3247_v39, %v4068_v21 }
 0x6c9   :  { %v1470_v41 = vpop.f32.mrf.mxu1 }
 0x6ca   :  { %3431 = vpow2.f32 %v3044_v53  ;;  %v3047_v29 = vmul.f32 -1.442695, %v4095_v24  ;;  %v4099_v40 = vadd.f32 %v4068_v21, %v1470_v41 }
 0x6cb   :  { %v3250_v42 = vpop.f32.mrf.mxu1 }
 0x6cc   :  { %v3045_v44 = vmul.f32 -1.442695, %v4099_v40  ;;  %v4103_v45 = vadd.f32 %v3250_v42, %v4068_v21  ;;  %3433 = vpow2.f32 %v3047_v29 }
 0x6cd   :  { %v3422_v46 = vpop.eup %3421  ;;  %v1483_v11 = vpop.f32.mrf.mxu1 }
 0x6ce   :  { %v1564_v13 = vadd.f32 1.0, %v3422_v46  ;;  %3435 = vpow2.f32 %v3045_v44  ;;  %v3050_v2 = vmul.f32 -1.442695, %v4103_v45  ;;  %v4107_v15 = vadd.f32 %v4068_v21, %v1483_v11 }
 0x6cf   :  { %v3424_v51 = vpop.eup %3423  ;;  %v3251_v17 = vpop.f32.mrf.mxu1 }
 0x6d0   :  { %3437 = vrcp.f32 %v1564_v13  ;;  %v1562_v52 = vadd.f32 1.0, %v3424_v51  ;;  %v3048_v8 = vmul.f32 -1.442695, %v4107_v15  ;;  %v4111_v43 = vadd.f32 %v3251_v17, %v4068_v21 }
 0x6d1   :  { %v3426_v47 = vpop.eup %3425  ;;  %3439 = vpow2.f32 %v3050_v2  ;;  %v1486_v48 = vpop.f32.mrf.mxu1 }
 0x6d2   :  { %3441 = vrcp.f32 %v1562_v52  ;;  %v1565_v49 = vadd.f32 1.0, %v3426_v47  ;;  %v3051_v61 = vmul.f32 -1.442695, %v4111_v43  ;;  %v4115_v50 = vadd.f32 %v4068_v21, %v1486_v48 }
 0x6d3   :  { %v3428_v4 = vpop.eup %3427  ;;  %3443 = vpow2.f32 %v3048_v8  ;;  %v3254_v56 = vpop.f32.mrf.mxu1 }
 0x6d4   :  { %3445 = vrcp.f32 %v1565_v49  ;;  %v1563_v33 = vadd.f32 1.0, %v3428_v4  ;;  %v3049_v57 = vmul.f32 -1.442695, %v4115_v50  ;;  %v4119_v34 = vadd.f32 %v3254_v56, %v4068_v21 }
 0x6d5   :  { %v3430_v58 = vpop.eup %3429  ;;  %3447 = vpow2.f32 %v3051_v61  ;;  %v1499_v62 = vpop.f32.mrf.mxu1 }
 0x6d6   :  { %3449 = vrcp.f32 %v1563_v33  ;;  %v3054_v63 = vmul.f32 -1.442695, %v4119_v34  ;;  %v4123_v0 = vadd.f32 %v4068_v21, %v1499_v62  ;;  %v1568_v60 = vadd.f32 1.0, %v3430_v58 }
 0x6d7   :  { %v3432_v1 = vpop.eup %3431  ;;  %3451 = vpow2.f32 %v3049_v57  ;;  %v3255_v5 = vpop.f32.mrf.mxu1 }
 0x6d8   :  { %v1566_v3 = vadd.f32 1.0, %v3432_v1  ;;  %v3052_v6 = vmul.f32 -1.442695, %v4123_v0  ;;  %v4127_v7 = vadd.f32 %v3255_v5, %v4068_v21  ;;  %3453 = vpow2.f32 %v3054_v63 }
 0x6d9   :  { %v1502_v9 = vpop.f32.mrf.mxu1  ;;  %v3434_v10 = vpop.eup %3433 }
 0x6da   :  { %3455 = vrcp.f32 %v1566_v3  ;;  %v3055_v26 = vmul.f32 -1.442695, %v4127_v7  ;;  %v4131_v16 = vadd.f32 %v4068_v21, %v1502_v9  ;;  %v1569_v36 = vadd.f32 1.0, %v3434_v10  ;;  %v4139_v21 = vld [vmem:[%s4976_s14] sm:$0xff]   ;;  %s4563_s14 = sld [smem:[#allocation12 + $0x86]] }
 0x6db   :  { %v3436_v20 = vpop.eup %3435  ;;  %3457 = vpow2.f32 %v3052_v6  ;;  %3257 = vmatpush3.bf16.msra.mxu0 %v4139_v21  ;;  %v4170_v3 = vld [vmem:[%s4978_s16] sm:$0xff]  }
 0x6dc   :  { %3459 = vrcp.f32 %v1568_v60  ;;  %v1567_v30 = vadd.f32 1.0, %v3436_v20  ;;  %v3053_v28 = vmul.f32 -1.442695, %v4131_v16  ;;  %3270 = vmatprep.subr.bf16.mxu0 %v3521_v14  ;;  %v4164_v60 = vld [vmem:[%s4978_s16 + $0x8] sm:$0xff]  }
 0x6dd   :  { %v3438_v27 = vpop.eup %3437  ;;  %3461 = vpow2.f32 %v3055_v26  ;;  %3263 = vmatpush3.bf16.msra.mxu1 %v4164_v60 }
 0x6de   :  { %v3440_v31 = vpop.eup %3439  ;;  %3463 = vrcp.f32 %v1567_v30  ;;  %1630 = vrot.lane.b32.xlu1 %v3438_v27, %s3527_s13  ;;  %3264 = vmatprep.subr.bf16.mxu1 %v3521_v14 }
 0x6df   :  { %v3442_v38 = vpop.eup %3441  ;;  %3465 = vpow2.f32 %v3053_v28  ;;  %v1572_v41 = vadd.f32 1.0, %v3440_v31 }
 0x6e0   :  { %v3444_v55 = vpop.eup %3443  ;;  %1626 = vrot.lane.b32.xlu0 %v3442_v38, %s3527_s13  ;;  %3467 = vrcp.f32 %v1569_v36 }
 0x6e1   :  { %v3446_v23 = vpop.eup %3445  ;;  %v1570_v39 = vadd.f32 1.0, %v3444_v55  ;;  %3265 = vmatpush3.bf16.msra.mxu1 %v4170_v3 }
 0x6e2   :  { %v3448_v53 = vpop.eup %3447  ;;  %1632 = vrot.lane.b32.xlu1 %v3446_v23, %s3527_s13  ;;  %3276 = vmatprep.subr.bf16.mxu1 %v3521_v14 }
 0x6e3   :  { %v3450_v29 = vpop.eup %3449  ;;  %3469 = vrcp.f32 %v1570_v39  ;;  %v1573_v11 = vadd.f32 1.0, %v3448_v53 }
 0x6e4   :  { %v3452_v42 = vpop.eup %3451  ;;  %1628 = vrot.lane.b32.xlu0 %v3450_v29, %s3527_s13  ;;  %3471 = vrcp.f32 %v1572_v41 }
 0x6e5   :  { %v1571_v44 = vadd.f32 1.0, %v3452_v42  ;;  %v3454_v46 = vpop.eup %3453 }
 0x6e6   :  { %v1576_v8 = vadd.f32 1.0, %v3454_v46 }
 0x6e7   :  { %v3456_v13 = vpop.eup %3455  ;;  %3473 = vrcp.f32 %v1571_v44 }
 0x6e8   :  { %v3458_v2 = vpop.eup %3457  ;;  %1634 = vrot.lane.b32.xlu0 %v3456_v13, %s3527_s13  ;;  %3475 = vrcp.f32 %v1573_v11 }
 0x6e9   :  { %v3460_v51 = vpop.eup %3459  ;;  %v1574_v17 = vadd.f32 1.0, %v3458_v2 }
 0x6ea   :  { %v3462_v52 = vpop.eup %3461 }
 0x6eb   :  { %v3464_v47 = vpop.eup %3463  ;;  %3477 = vrcp.f32 %v1574_v17  ;;  %v1577_v4 = vadd.f32 1.0, %v3462_v52 }
 0x6ec   :  { %v3466_v48 = vpop.eup %3465  ;;  %1636 = vrot.lane.b32.xlu1 %v3464_v47, %s3527_s13  ;;  %1638 = vrot.lane.b32.xlu0 %v3460_v51, %s3527_s13  ;;  %3479 = vrcp.f32 %v1576_v8 }
 0x6ed   :  { %v1575_v49 = vadd.f32 1.0, %v3466_v48  ;;  %v3468_v61 = vpop.eup %3467 }
 0x6ef   :  { %3481 = vrcp.f32 %v1575_v49 }
 0x6f0   :  { %v3470_v56 = vpop.eup %3469  ;;  %1640 = vrot.lane.b32.xlu1 %v3468_v61, %s3527_s13  ;;  %3483 = vrcp.f32 %v1577_v4 }
 0x6f1   :  { %1642 = vrot.lane.b32.xlu0 %v3470_v56, %s3527_s13  ;;  %v3472_v33 = vpop.eup %3471 }
 0x6f4   :  { %v3474_v57 = vpop.eup %3473 }
 0x6f5   :  { %1644 = vrot.lane.b32.xlu1 %v3474_v57, %s3527_s13  ;;  %1646 = vrot.lane.b32.xlu0 %v3472_v33, %s3527_s13  ;;  %v3476_v58 = vpop.eup %3475 }
 0x6f8   :  { %v3478_v62 = vpop.eup %3477 }
 0x6f9   :  { %1648 = vrot.lane.b32.xlu1 %v3476_v58, %s3527_s13  ;;  %1650 = vrot.lane.b32.xlu0 %v3478_v62, %s3527_s13  ;;  %v3480_v63 = vpop.eup %3479 }
 0x6fc   :  { %v3482_v1 = vpop.eup %3481 }
 0x6fd   :  { %1652 = vrot.lane.b32.xlu1 %v3482_v1, %s3527_s13  ;;  %1654 = vrot.lane.b32.xlu0 %v3480_v63, %s3527_s13  ;;  %v3484_v5 = vpop.eup %3483 }
 0x701   :  { %1656 = vrot.lane.b32.xlu1 %v3484_v5, %s3527_s13 }
 0x750   :  { %v1631_v6 = vpop.permute.xlu1 %1630 }
 0x751   :  { %v4176_v26 = vmul.f32 %v1631_v6, %v4071_v54 }
 0x752   :  { %v1627_v9 = vpop.permute.xlu0 %1626 }
 0x753   :  { %v4179_v20 = vmul.f32 %v1627_v9, %v4075_v25  ;;  %v1724_v9 = vsel %vm108_vm0, %v4176_v26, -inf }
 0x754   :  { %v1633_v10 = vpop.permute.xlu1 %1632 }
 0x755   :  { %v4182_v30 = vmul.f32 %v1633_v10, %v4079_v32  ;;  %v1690_v36 = vsel %vm108_vm0, %v4179_v20, 0.0  ;;  %v1693_v32 = vsel %vm108_vm0, %v4176_v26, 0.0 }
 0x756   :  { %v1629_v28 = vpop.permute.xlu0 %1628 }
 0x757   :  { %v2041_v27 = vpack.c.bf16 %v4182_v30, %v4176_v26  ;;  %v4187_v31 = vmul.f32 %v1629_v28, %v4083_v35  ;;  %v1695_v35 = vsel %vm108_vm0, %v4182_v30, 0.0 }
 0x759   :  { %v1691_v54 = vsel %vm108_vm0, %v4187_v31, 0.0  ;;  %v2040_v25 = vpack.c.bf16 %v4187_v31, %v4179_v20 }
 0x75a   :  { %v1692_v38 = vadd.f32 %v1691_v54, %v1690_v36  ;;  %v1635_v55 = vpop.permute.xlu0 %1634 }
 0x75b   :  { %v4198_v23 = vmul.f32 %v1635_v55, %v4091_v59 }
 0x75c   :  { %v1694_v39 = vadd.f32 %v1693_v32, %v1692_v38 }
 0x75d   :  { %v1697_v42 = vsel %vm108_vm0, %v4198_v23, 0.0  ;;  %v1726_v10 = vsel %vm108_vm0, %v4198_v23, -inf }
 0x75e   :  { %v1696_v53 = vadd.f32 %v1695_v35, %v1694_v39  ;;  %v1637_v41 = vpop.permute.xlu1 %1636  ;;  %v1639_v29 = vpop.permute.xlu0 %1638 }
 0x75f   :  { %v4205_v44 = vmul.f32 %v1637_v41, %v4099_v40  ;;  %v4208_v46 = vmul.f32 %v1639_v29, %v4087_v37  ;;  %v1722_v41 = vsel %vm108_vm0, %v4179_v20, -inf  ;;  %v1725_v29 = vsel %vm108_vm0, %v4182_v30, -inf  ;;  %v3059_v20 = vld [vmem:[%s4979_s17] ss:$0 sm:$0xff] }
 0x760   :  { %v1698_v11 = vadd.f32 %v1697_v42, %v1696_v53  ;;  %v1723_v42 = vsel %vm108_vm0, %v4187_v31, -inf }
 0x761   :  { %v1699_v59 = vsel %vm108_vm0, %v4205_v44, 0.0  ;;  %v2042_v51 = vpack.c.bf16 %v4205_v44, %v4198_v23  ;;  %v1701_v17 = vsel %vm108_vm0, %v4208_v46, 0.0  ;;  %v1728_v36 = vsel %vm108_vm0, %v4205_v44, -inf }
 0x762   :  { %v1700_v13 = vadd.f32 %v1699_v59, %v1698_v11  ;;  %v1641_v2 = vpop.permute.xlu1 %1640  ;;  %v1727_v59 = vmax.f32 %v1722_v41, %v1726_v10 }
 0x763   :  { %v4217_v52 = vmul.f32 %v1641_v2, %v4095_v24  ;;  %v1643_v40 = vpop.permute.xlu0 %1642 }
 0x764   :  { %v1702_v8 = vadd.f32 %v1701_v17, %v1700_v13  ;;  %v4220_v37 = vmul.f32 %v1643_v40, %v4107_v15  ;;  %v1729_v13 = vmax.f32 %v1723_v42, %v1728_v36 }
 0x765   :  { %v1703_v47 = vsel %vm108_vm0, %v4217_v52, 0.0  ;;  %v2043_v48 = vpack.c.bf16 %v4217_v52, %v4208_v46  ;;  %v1732_v32 = vsel %vm108_vm0, %v4217_v52, -inf }
 0x766   :  { %v1704_v49 = vadd.f32 %v1703_v47, %v1702_v8  ;;  %v1705_v61 = vsel %vm108_vm0, %v4220_v37, 0.0  ;;  %v1733_v17 = vmax.f32 %v1725_v29, %v1732_v32 }
 0x767   :  { %v1645_v4 = vpop.permute.xlu1 %1644  ;;  %v1647_v56 = vpop.permute.xlu0 %1646 }
 0x768   :  { %v1706_v33 = vadd.f32 %v1705_v61, %v1704_v49  ;;  %v4229_v24 = vmul.f32 %v1645_v4, %v4115_v50  ;;  %v4232_v57 = vmul.f32 %v1647_v56, %v4103_v45 }
 0x76a   :  { %v1707_v15 = vsel %vm108_vm0, %v4229_v24, 0.0  ;;  %v2044_v1 = vpack.c.bf16 %v4229_v24, %v4220_v37  ;;  %v1709_v5 = vsel %vm108_vm0, %v4232_v57, 0.0  ;;  %v1736_v49 = vsel %vm108_vm0, %v4229_v24, -inf }
 0x76b   :  { %v1708_v58 = vadd.f32 %v1707_v15, %v1706_v33  ;;  %v1649_v62 = vpop.permute.xlu1 %1648  ;;  %v1651_v63 = vpop.permute.xlu0 %1650  ;;  %v1738_v61 = vsel %vm108_vm0, %v4232_v57, -inf  ;;  %v1734_v33 = vsel %vm108_vm0, %v4220_v37, -inf  ;;  %v1737_v10 = vmax.f32 %v1729_v13, %v1736_v49  ;;  %v3065_v37 = vld [vmem:[%s4981_s19] ss:$0 sm:$0xff] }
 0x76c   :  { %v4241_v6 = vmul.f32 %v1649_v62, %v4111_v43  ;;  %v4244_v50 = vmul.f32 %v1651_v63, %v4123_v0  ;;  %v1730_v43 = vsel %vm108_vm0, %v4208_v46, -inf }
 0x76d   :  { %v1710_v45 = vadd.f32 %v1709_v5, %v1708_v58 }
 0x76e   :  { %v1711_v28 = vsel %vm108_vm0, %v4241_v6, 0.0  ;;  %v2045_v55 = vpack.c.bf16 %v4241_v6, %v4232_v57  ;;  %v1713_v39 = vsel %vm108_vm0, %v4244_v50, 0.0  ;;  %v1740_v2 = vsel %vm108_vm0, %v4241_v6, -inf }
 0x76f   :  { %v1712_v54 = vadd.f32 %v1711_v28, %v1710_v45  ;;  %v1653_v38 = vpop.permute.xlu1 %1652  ;;  %v1655_v0 = vpop.permute.xlu0 %1654  ;;  %v1741_v15 = vmax.f32 %v1733_v17, %v1740_v2 }
 0x770   :  { %v4263_v35 = vmul.f32 %v1653_v38, %v4131_v16  ;;  %v4266_v53 = vmul.f32 %v1655_v0, %v4119_v34  ;;  %v1731_v34 = vmax.f32 %v1724_v9, %v1730_v43  ;;  %v1742_v43 = vsel %vm108_vm0, %v4244_v50, -inf }
 0x771   :  { %v1714_v11 = vadd.f32 %v1713_v39, %v1712_v54  ;;  %v1735_v54 = vmax.f32 %v1727_v59, %v1734_v33  ;;  %v3056_v59 = vld [vmem:[%s4977_s15] ss:$0 sm:$0xff] }
 0x772   :  { %v1715_v16 = vsel %vm108_vm0, %v4263_v35, 0.0  ;;  %v2046_v47 = vpack.c.bf16 %v4263_v35, %v4244_v50  ;;  %v1717_v4 = vsel %vm108_vm0, %v4266_v53, 0.0  ;;  %v1744_v58 = vsel %vm108_vm0, %v4263_v35, -inf }
 0x773   :  { %v1716_v40 = vadd.f32 %v1715_v16, %v1714_v11  ;;  %v1657_v8 = vpop.permute.xlu1 %1656  ;;  %v1746_v63 = vsel %vm108_vm0, %v4266_v53, -inf  ;;  %v1739_v28 = vmax.f32 %v1731_v34, %v1738_v61  ;;  %v1745_v38 = vmax.f32 %v1737_v10, %v1744_v58  ;;  %v3387_v61 = vld [vmem:[%s4982_s20] sm:$0xff]  }
 0x774   :  { %v1689_v56 = vmul.f32 %v1657_v8, %v4127_v7  ;;  %v1743_v39 = vmax.f32 %v1735_v54, %v1742_v43  ;;  %v4362_v43 = vld [vmem:[%s4983_s21] ss:$0 sm:$0xff]  ;;  %s4500_s21 = sld [smem:[#allocation12]] }
 0x775   :  { %v1718_v62 = vadd.f32 %v1717_v4, %v1716_v40  ;;  %v1747_v0 = vmax.f32 %v1739_v28, %v1746_v63 }
 0x776   :  { %v1719_v5 = vsel %vm108_vm0, %v1689_v56, 0.0  ;;  %v1748_v45 = vsel %vm108_vm0, %v1689_v56, -inf  ;;  %v2047_v9 = vpack.c.bf16 %v1689_v56, %v4266_v53  ;;  %v1750_v42 = vmax.f32 %v1743_v39, %v1745_v38 }
 0x777   :  { %v1720_v7 = vadd.f32 %v1719_v5, %v1718_v62  ;;  %v1749_v36 = vmax.f32 %v1741_v15, %v1748_v45 }
 0x779   :  { %v1721_v32 = vmul.f32 0.0625, %v1720_v7  ;;  %v1751_v41 = vmax.f32 %v1747_v0, %v1749_v36 }
 0x77b   :  { %v1753_v29 = vpack.c.bf16 %v1721_v32, %v1721_v32  ;;  %v1752_v53 = vmax.f32 %v1750_v42, %v1751_v41 }
 0x77d   :  { %3259 = vmatmul.mubr.msk.bf16.vlgmr.msra.gmra.mxu0 %vm108_vm0, %v1753_v29  ;;  %v1880_v11 = vpack.c.bf16 %v1752_v53, %v1752_v53 }
 0x77e   :  { %3271 = vmatpush3.bf16.msra.mxu0 %v4139_v21  ;;  %3272 = vmatprep.mubr.msk.bf16.mxu0 %vm3528_vm5, %v3521_v14 }
 0x77f   :  { %3284 = vmatprep.subr.bf16.mxu0 %v3521_v14 }
 0x785   :  { %3273 = vmatmul.mubr.msk.bf16.vlgmr.msra.gmra.mxu0 %vm108_vm0, %v1880_v11 }
 0x786   :  { %3286 = vmatprep.mubr.msk.bf16.mxu0 %vm3528_vm5, %v3521_v14 }
 0x83d   :  { %v1806_v13 = vpop.f32.mrf.mxu0 }
 0x83e   :  { %v1807_v2 = vadd.f32 %v3056_v59, %v1806_v13 }
 0x83f   :  { %v3260_v16 = vpop.f32.mrf.mxu0 }
 0x840   :  { %v1812_v21 = vmax.f32 %v1807_v2, 0.0 }
 0x841   :  { %v1809_v34 = vpop.f32.mrf.mxu0 }
 0x842   :  { %v1813_v17 = vpack.c.bf16 %v1812_v21, %v1812_v21 }
 0x843   :  { %v3261_v40 = vpop.f32.mrf.mxu0 }
 0x844   :  { %3267 = vmatmul.mubr.msk.bf16.vlgmr.msra.gmra.mxu1 %vm560_vm2, %v1813_v17 }
 0x845   :  { %v1918_v8 = vpop.f32.mrf.mxu0  ;;  %3277 = vmatpush3.bf16.msra.mxu1 %v4164_v60  ;;  %3280 = vmatprep.mubr.msk.bf16.mxu1 %vm3528_vm5, %v3521_v14 }
 0x846   :  { %v1919_v49 = vadd.f32 %v3056_v59, %v1918_v8  ;;  %3278 = vmatprep.subr.bf16.mxu1 %v3521_v14  ;;  %v3388_v14 = vld [vmem:[%s4980_s18] sm:$0xff]  }
 0x847   :  { %v3274_v4 = vpop.f32.mrf.mxu0  ;;  %3285 = vmatpush3.bf16.msra.mxu0 %v3388_v14 }
 0x848   :  { %v1924_v56 = vmax.f32 %v1919_v49, 0.0 }
 0x849   :  { %v1921_v33 = vpop.f32.mrf.mxu0  ;;  %3279 = vmatpush3.bf16.msra.mxu1 %v4170_v3 }
 0x84a   :  { %v1925_v15 = vpack.c.bf16 %v1924_v56, %v1924_v56  ;;  %3290 = vmatprep.subr.bf16.mxu1 %v3387_v61 }
 0x84b   :  { %v3275_v58 = vpop.f32.mrf.mxu0 }
 0x84c   :  { %3281 = vmatmul.mubr.msk.bf16.vlgmr.msra.gmra.mxu1 %vm560_vm2, %v1925_v15  ;;  %vm2647_vm2 = vcmask 1043456  }
 0x84d   :  { %3292 = vmatprep.mubr.msk.bf16.mxu1 %vm108_vm0, %v2040_v25  ;;  %3291 = vmatpush3.bf16.msra.mxu1 %v3387_v61 }
 0x854   :  { %3293 = vmatmul.mubr.msk.bf16.vlgmr.msra.gmra.mxu1 %vm108_vm0, %v2041_v27 }
 0x855   :  { %3296 = vmatprep.mubr.msk.bf16.mxu1 %vm108_vm0, %v2042_v51 }
 0x85c   :  { %3297 = vmatmul.mubr.msk.bf16.gmra.mxu1 %vm108_vm0, %v2043_v48 }
 0x85d   :  { %3300 = vmatprep.mubr.msk.bf16.mxu1 %vm108_vm0, %v2044_v1 }
 0x864   :  { %3301 = vmatmul.mubr.msk.bf16.gmra.mxu1 %vm108_vm0, %v2045_v55 }
 0x865   :  { %3304 = vmatprep.mubr.msk.bf16.mxu1 %vm108_vm0, %v2046_v47 }
 0x86c   :  { %3305 = vmatmul.mubr.msk.bf16.gmra.mxu1 %vm108_vm0, %v2047_v9 }
 0x904   :  { %v1874_v60 = vpop.f32.mrf.mxu1 }
 0x905   :  { %v1875_v31 = vadd.f32 %v3059_v20, %v1874_v60 }
 0x906   :  { %v3268_v3 = vpop.f32.mrf.mxu1 }
 0x908   :  { %v1877_v26 = vpop.f32.mrf.mxu1 }
 0x90a   :  { %v3269_v30 = vpop.f32.mrf.mxu1 }
 0x90c   :  { %v1963_v27 = vpop.f32.mrf.mxu1 }
 0x90d   :  { %v1964_v25 = vadd.f32 %v3059_v20, %v1963_v27 }
 0x90e   :  { %v3282_v23 = vpop.f32.mrf.mxu1 }
 0x90f   :  { %v1969_v44 = vadd.f32 %v1964_v25, %v1875_v31 }
 0x910   :  { %v1966_v46 = vpop.f32.mrf.mxu1 }
 0x911   :  { %v1970_v51 = vpack.c.bf16 %v1969_v44, %v1969_v44 }
 0x912   :  { %v3283_v52 = vpop.f32.mrf.mxu1 }
 0x913   :  { %3287 = vmatmul.mubr.msk.bf16.vlgmr.msra.gmra.mxu0 %vm108_vm0, %v1970_v51 }
 0x914   :  { %v3294_v62 = vpop.f32.mrf.mxu1 }
 0x915   :  { %v2130_v4 = vadd.f32 %v3294_v62, %v4362_v43 }
 0x916   :  { %v2121_v63 = vpop.f32.mrf.mxu1 }
 0x917   :  { %v2122_v41 = vadd.f32 %v4362_v43, %v2121_v63 }
 0x918   :  { %v3295_v5 = vpop.f32.mrf.mxu1 }
 0x919   :  { %v2133_v3 = vadd.f32 %v3295_v5, %v4362_v43 }
 0x91a   :  { %v2124_v45 = vpop.f32.mrf.mxu1 }
 0x91b   :  { %v2125_v21 = vadd.f32 %v4362_v43, %v2124_v45 }
 0x91c   :  { %v3298_v9 = vpop.f32.mrf.mxu1 }
 0x91d   :  { %v2146_v0 = vadd.f32 %v3298_v9, %v4362_v43 }
 0x91e   :  { %v2137_v10 = vpop.f32.mrf.mxu1 }
 0x91f   :  { %v2138_v51 = vadd.f32 %v4362_v43, %v2137_v10 }
 0x920   :  { %v3299_v28 = vpop.f32.mrf.mxu1 }
 0x921   :  { %v2149_v29 = vadd.f32 %v3299_v28, %v4362_v43 }
 0x922   :  { %v2140_v7 = vpop.f32.mrf.mxu1 }
 0x923   :  { %v2141_v32 = vadd.f32 %v4362_v43, %v2140_v7 }
 0x924   :  { %v3302_v36 = vpop.f32.mrf.mxu1 }
 0x925   :  { %v2162_v26 = vadd.f32 %v3302_v36, %v4362_v43 }
 0x926   :  { %v2153_v54 = vpop.f32.mrf.mxu1 }
 0x927   :  { %v2154_v34 = vadd.f32 %v4362_v43, %v2153_v54 }
 0x928   :  { %v3303_v11 = vpop.f32.mrf.mxu1 }
 0x929   :  { %v2165_v52 = vadd.f32 %v3303_v11, %v4362_v43 }
 0x92a   :  { %v2156_v17 = vpop.f32.mrf.mxu1 }
 0x92b   :  { %v2157_v56 = vadd.f32 %v4362_v43, %v2156_v17 }
 0x92c   :  { %v3306_v33 = vpop.f32.mrf.mxu1 }
 0x92e   :  { %v2169_v20 = vpop.f32.mrf.mxu1 }
 0x92f   :  { %v2170_v63 = vadd.f32 %v4362_v43, %v2169_v20 }
 0x930   :  { %v3307_v23 = vpop.f32.mrf.mxu1 }
 0x931   :  { %v2181_v10 = vadd.f32 %v3307_v23, %v4362_v43 }
 0x9d3   :  { %v2023_v48 = vpop.f32.mrf.mxu0 }
 0x9d4   :  { %v2024_v24 = vadd.f32 %v3065_v37, %v2023_v48  ;;  %v2172_v37 = vpop.f32.mrf.mxu1 }
 0x9d5   :  { %v3288_v57 = vpop.f32.mrf.mxu0 }
 0x9d6   :  { %v3068_v1 = vmul.f32 -1.442695, %v2024_v24 }
 0x9d7   :  { %v2026_v6 = vpop.f32.mrf.mxu0 }
 0x9d8   :  { %3485 = vpow2.f32 %v3068_v1  ;;  %v2178_v6 = vadd.f32 %v3306_v33, %v4362_v43 }
 0x9d9   :  { %v3289_v50 = vpop.f32.mrf.mxu0 }
 0x9da   :  { %v2173_v50 = vadd.f32 %v4362_v43, %v2172_v37 }
 0x9e5   :  { %v3486_v55 = vpop.eup %3485 }
 0x9e6   :  { %v2032_v35 = vadd.f32 1.0, %v3486_v55 }
 0x9e8   :  { %3487 = vrcp.f32 %v2032_v35 }
 0x9f5   :  { %v3488_v47 = vpop.eup %3487 }
 0x9f6   :  { %2036 = vrot.lane.b32.xlu0 %v3488_v47, %s3527_s13  ;;  %s4542_s13 = sld [smem:[#allocation12 + $0x83]] }
 0xa68   :  { %v2037_v38 = vpop.permute.xlu0 %2036 }
 0xa69   :  { %v4366_v39 = vmul.f32 %v2037_v38, %v2024_v24 }
 0xa6b   :  { %v4371_v42 = vmul.f32 %v2146_v0, %v4366_v39  ;;  %v4374_v53 = vmul.f32 %v2141_v32, %v4366_v39  ;;  %v4381_v2 = vmul.f32 %v2149_v29, %v4366_v39  ;;  %v4384_v16 = vmul.f32 %v2122_v41, %v4366_v39 }
 0xa6c   :  { %v4393_v49 = vmul.f32 %v2125_v21, %v4366_v39  ;;  %v4396_v61 = vmul.f32 %v2154_v34, %v4366_v39  ;;  %v4405_v14 = vmul.f32 %v2130_v4, %v4366_v39  ;;  %v4408_v60 = vmul.f32 %v2157_v56, %v4366_v39 }
 0xa6d   :  { %v2218_v59 = vsel %vm108_vm0, %v4371_v42, 0.0  ;;  %v2215_v13 = vsel %vm108_vm0, %v4374_v53, 0.0  ;;  %v2221_v40 = vsel %vm108_vm0, %v4381_v2, 0.0  ;;  %v2200_v8 = vsel %vm108_vm0, %v4384_v16, 0.0 }
 0xa6e   :  { %2219 = vadd.xlane.f32.xlu0 %v2218_v59  ;;  %2216 = vadd.xlane.f32.xlu1 %v2215_v13  ;;  %v2203_v15 = vsel %vm108_vm0, %v4393_v49, 0.0  ;;  %v2224_v58 = vsel %vm108_vm0, %v4396_v61, 0.0  ;;  %v2206_v30 = vsel %vm108_vm0, %v4405_v14, 0.0  ;;  %v2227_v27 = vsel %vm108_vm0, %v4408_v60, 0.0 }
 0xa6f   :  { %v4417_v31 = vmul.f32 %v2133_v3, %v4366_v39  ;;  %v4420_v25 = vmul.f32 %v2162_v26, %v4366_v39  ;;  %v2279_v48 = vsel %vm108_vm0, %v4374_v53, -inf  ;;  %v2282_v24 = vsel %vm108_vm0, %v4371_v42, -inf }
 0xa70   :  { %v4433_v57 = vmul.f32 %v2138_v51, %v4366_v39  ;;  %v4436_v1 = vmul.f32 %v2165_v52, %v4366_v39  ;;  %v4445_v47 = vmul.f32 %v2173_v50, %v4366_v39  ;;  %v4448_v62 = vmul.f32 %v2178_v6, %v4366_v39 }
 0xa71   :  { %v2209_v44 = vsel %vm108_vm0, %v4417_v31, 0.0  ;;  %v2230_v46 = vsel %vm108_vm0, %v4420_v25, 0.0  ;;  %v4456_v9 = vmul.f32 %v2170_v63, %v4366_v39  ;;  %v2285_v28 = vsel %vm108_vm0, %v4381_v2, -inf }
 0xa72   :  { %2222 = vadd.xlane.f32.xlu0 %v2221_v40  ;;  %2201 = vadd.xlane.f32.xlu1 %v2200_v8  ;;  %v2212_v55 = vsel %vm108_vm0, %v4433_v57, 0.0  ;;  %v2233_v35 = vsel %vm108_vm0, %v4436_v1, 0.0  ;;  %5014 = vst [vmem:[#allocation15_spill] sm:$0xff] %v4448_v62  ;;  %v2239_v5 = vsel %vm108_vm0, %v4445_v47, 0.0  ;;  %v2242_v45 = vsel %vm108_vm0, %v4448_v62, 0.0 }
 0xa73   :  { %v2236_v7 = vsel %vm108_vm0, %v4456_v9, 0.0  ;;  %v4464_v36 = vmul.f32 %v2181_v10, %v4366_v39  ;;  %v2264_v38 = vsel %vm108_vm0, %v4384_v16, -inf  ;;  %v2267_v43 = vsel %vm108_vm0, %v4393_v49, -inf }
 0xa74   :  { %v2288_v0 = vsel %vm108_vm0, %v4396_v61, -inf  ;;  %v2270_v32 = vsel %vm108_vm0, %v4405_v14, -inf  ;;  %v2291_v39 = vsel %vm108_vm0, %v4408_v60, -inf  ;;  %v2273_v41 = vsel %vm108_vm0, %v4417_v31, -inf }
 0xa75   :  { %5015 = vst [vmem:[#allocation16_spill] sm:$0xff] %v4464_v36  ;;  %v2245_v54 = vsel %vm108_vm0, %v4464_v36, 0.0  ;;  %v2294_v29 = vsel %vm108_vm0, %v4420_v25, -inf  ;;  %v2276_v11 = vsel %vm108_vm0, %v4433_v57, -inf  ;;  %v2297_v59 = vsel %vm108_vm0, %v4436_v1, -inf }
 0xa76   :  { %2204 = vadd.xlane.f32.xlu0 %v2203_v15  ;;  %2225 = vadd.xlane.f32.xlu1 %v2224_v58  ;;  %v2303_v13 = vsel %vm108_vm0, %v4445_v47, -inf  ;;  %v2306_v21 = vsel %vm108_vm0, %v4448_v62, -inf  ;;  %v2300_v34 = vsel %vm108_vm0, %v4456_v9, -inf  ;;  %v2309_v17 = vsel %vm108_vm0, %v4464_v36, -inf }
 0xa7a   :  { %2207 = vadd.xlane.f32.xlu0 %v2206_v30  ;;  %2228 = vadd.xlane.f32.xlu1 %v2227_v27 }
 0xa7e   :  { %2210 = vadd.xlane.f32.xlu0 %v2209_v44  ;;  %2231 = vadd.xlane.f32.xlu1 %v2230_v46  ;;  %v2329_v46 = vand.u32 127, %v323_v12 }
 0xa82   :  { %2280 = vmax.xlane.f32.xlu0 %v2279_v48  ;;  %2283 = vmax.xlane.f32.xlu1 %v2282_v24  ;;  %v4520_v48 = vsub.s32 %v2329_v46, %v3893_v18 }
 0xa86   :  { %2213 = vadd.xlane.f32.xlu0 %v2212_v55  ;;  %2234 = vadd.xlane.f32.xlu1 %v2233_v35 }
 0xa8a   :  { %2240 = vadd.xlane.f32.xlu0 %v2239_v5  ;;  %2243 = vadd.xlane.f32.xlu1 %v2242_v45 }
 0xa8e   :  { %2286 = vmax.xlane.f32.xlu0 %v2285_v28  ;;  %2237 = vadd.xlane.f32.xlu1 %v2236_v7  ;;  %v2523_v7 = vstv %s4500_s21 }
 0xa92   :  { %2246 = vadd.xlane.f32.xlu0 %v2245_v54  ;;  %2265 = vmax.xlane.f32.xlu1 %v2264_v38  ;;  %v4538_v54 = vstv %s4502_s3 }
 0xa96   :  { %2268 = vmax.xlane.f32.xlu0 %v2267_v43  ;;  %2289 = vmax.xlane.f32.xlu1 %v2288_v0 }
 0xa9a   :  { %2271 = vmax.xlane.f32.xlu0 %v2270_v32  ;;  %2292 = vmax.xlane.f32.xlu1 %v2291_v39 }
 0xa9e   :  { %2274 = vmax.xlane.f32.xlu0 %v2273_v41  ;;  %2295 = vmax.xlane.f32.xlu1 %v2294_v29  ;;  %v4547_v41 = vstv %s4504_s25 }
 0xaa2   :  { %2277 = vmax.xlane.f32.xlu0 %v2276_v11  ;;  %2298 = vmax.xlane.f32.xlu1 %v2297_v59 }
 0xaa6   :  { %2304 = vmax.xlane.f32.xlu0 %v2303_v13  ;;  %2307 = vmax.xlane.f32.xlu1 %v2306_v21 }
 0xaaa   :  { %2301 = vmax.xlane.f32.xlu0 %v2300_v34  ;;  %2310 = vmax.xlane.f32.xlu1 %v2309_v17  ;;  %v4558_v17 = vstv %s4511_s4 }
 0xaf7   :  { %v2220_v40 = vpop.xlane.xlu0 %2219  ;;  %v2217_v8 = vpop.xlane.xlu1 %2216 }
 0xaf8   :  { %v2254_v35 = vmul.f32 0.0625, %v2220_v40  ;;  %v2253_v63 = vmul.f32 0.0625, %v2217_v8  ;;  %v4561_v40 = vstv %s4513_s1 }
 0xafa   :  { %v2357_v29 = vrot.slane %v2254_v35, %v4520_v48  ;;  %v2353_v11 = vrot.slane %v2253_v63, %v4520_v48 }
 0xafb   :  { %v2223_v4 = vpop.xlane.xlu0 %2222  ;;  %v2202_v56 = vpop.xlane.xlu1 %2201 }
 0xafc   :  { %v2248_v50 = vmul.f32 0.0625, %v2202_v56  ;;  %v2255_v10 = vmul.f32 0.0625, %v2223_v4  ;;  %v4568_v56 = vstv %s4515_s10  ;;  %v2403_v46 = vsel %vm2402_vm6, %v2357_v29, %v2353_v11 }
 0xafe   :  { %v2333_v0 = vrot.slane %v2248_v50, %v4520_v48  ;;  %v2361_v8 = vrot.slane %v2255_v10, %v4520_v48  ;;  %v4583_v50 = vstv %s4530_s11 }
 0xaff   :  { %v2205_v33 = vpop.xlane.xlu0 %2204  ;;  %v2226_v15 = vpop.xlane.xlu1 %2225 }
 0xb00   :  { %v2249_v37 = vmul.f32 0.0625, %v2205_v33  ;;  %v2256_v32 = vmul.f32 0.0625, %v2226_v15  ;;  %v4571_v33 = vstv %s4517_s12 }
 0xb02   :  { %v2337_v45 = vrot.slane %v2249_v37, %v4520_v48 }
 0xb03   :  { %v2208_v58 = vpop.xlane.xlu0 %2207  ;;  %v2229_v3 = vpop.xlane.xlu1 %2228 }
 0xb04   :  { %v2250_v24 = vmul.f32 0.0625, %v2208_v58  ;;  %v2257_v59 = vmul.f32 0.0625, %v2229_v3  ;;  %v2395_v21 = vsel %vm2394_vm8, %v2337_v45, %v2333_v0  ;;  %v2365_v3 = vrot.slane %v2256_v32, %v4520_v48 }
 0xb05   :  { %v2405_v45 = vsel %vm2404_vm7, %v2361_v8, %v2403_v46  ;;  %v4616_v8 = vstv %s4563_s14 }
 0xb06   :  { %v2341_v28 = vrot.slane %v2250_v24, %v4520_v48  ;;  %v2369_v37 = vrot.slane %v2257_v59, %v4520_v48  ;;  %v4604_v59 = vstv %s4542_s13 }
 0xb07   :  { %v2211_v26 = vpop.xlane.xlu0 %2210  ;;  %v2232_v20 = vpop.xlane.xlu1 %2231 }
 0xb08   :  { %v2251_v55 = vmul.f32 0.0625, %v2211_v26  ;;  %v2258_v34 = vmul.f32 0.0625, %v2232_v20  ;;  %v2397_v4 = vsel %vm2396_vm10, %v2341_v28, %v2395_v21 }
 0xb0a   :  { %v2345_v39 = vrot.slane %v2251_v55, %v4520_v48  ;;  %v2373_v55 = vrot.slane %v2258_v34, %v4520_v48 }
 0xb0b   :  { %v4494_v30 = vpop.xlane.xlu0 %2280  ;;  %v4496_v27 = vpop.xlane.xlu1 %2283 }
 0xb0c   :  { %v2399_v26 = vsel %vm2398_vm11, %v2345_v39, %v2397_v4  ;;  %v2459_v35 = vrot.slane %v4494_v30, %v4520_v48  ;;  %v2463_v63 = vrot.slane %v4496_v27, %v4520_v48  ;;  %v4597_v39 = vstv %s4533_s26 }
 0xb0d   :  { %v2407_v30 = vsel %vm2406_vm9, %v2365_v3, %v2405_v45 }
 0xb0e   :  { %v2504_v21 = vsel %vm2402_vm6, %v2463_v63, %v2459_v35 }
 0xb0f   :  { %v2214_v23 = vpop.xlane.xlu0 %2213  ;;  %v4498_v44 = vpop.xlane.xlu1 %2234 }
 0xb10   :  { %v2252_v5 = vmul.f32 0.0625, %v2214_v23 }
 0xb12   :  { %v2349_v13 = vrot.slane %v2252_v5, %v4520_v48  ;;  %v2259_v5 = vmul.f32 0.0625, %v4498_v44  ;;  %v2408_v44 = vsel %vm2394_vm8, %v2369_v37, %v2407_v30 }
 0xb13   :  { %v4507_v51 = vpop.xlane.xlu0 %2240  ;;  %v4509_v52 = vpop.xlane.xlu1 %2243 }
 0xb14   :  { %v2401_v24 = vsel %vm2400_vm12, %v2349_v13, %v2399_v26  ;;  %v2261_v10 = vmul.f32 0.0625, %v4507_v51  ;;  %v2262_v28 = vmul.f32 0.0625, %v4509_v52  ;;  %v4607_v51 = vstv %s4549_s27 }
 0xb15   :  { %v2418_v29 = vsel %vm2417_vm13, 0.0, %v2401_v24  ;;  %v4610_v13 = vstv %s4554_s28  ;;  %v2409_v52 = vsel %vm2396_vm10, %v2373_v55, %v2408_v44  ;;  %v2377_v34 = vrot.slane %v2259_v5, %v4520_v48 }
 0xb16   :  { %v4621_v4 = vmul.f32 %v4538_v54, %v2418_v29  ;;  %v4625_v37 = vmul.f32 %v4547_v41, %v2418_v29  ;;  %v4631_v63 = vmul.f32 %v4558_v17, %v2418_v29  ;;  %v4634_v5 = vmul.f32 %v4561_v40, %v2418_v29 }
 0xb17   :  { %v4522_v6 = vpop.xlane.xlu0 %2286  ;;  %v4524_v12 = vpop.xlane.xlu1 %2237  ;;  %v4650_v44 = vmul.f32 %v4571_v33, %v2418_v29 }
 0xb18   :  { %v2260_v27 = vmul.f32 0.0625, %v4524_v12  ;;  %v2385_v12 = vrot.slane %v2261_v10, %v4520_v48  ;;  %v2524_v10 = vmul.f32 %v2523_v7, %v2418_v29  ;;  %v2467_v30 = vrot.slane %v4522_v6, %v4520_v48 }
 0xb1a   :  { %v2381_v24 = vrot.slane %v2260_v27, %v4520_v48 }
 0xb1b   :  { %v2247_v38 = vpop.xlane.xlu0 %2246  ;;  %v4540_v43 = vpop.xlane.xlu1 %2265 }
 0xb1c   :  { %v2263_v11 = vmul.f32 0.0625, %v2247_v38  ;;  %v2389_v38 = vrot.slane %v2262_v28, %v4520_v48  ;;  %v2410_v28 = vsel %vm2398_vm11, %v2377_v34, %v2409_v52 }
 0xb1d   :  { %v2411_v20 = vsel %vm2400_vm12, %v2381_v24, %v2410_v28 }
 0xb1e   :  { %v2393_v55 = vrot.slane %v2263_v11, %v4520_v48  ;;  %v2412_v27 = vsel %vm2402_vm6, %v2389_v38, %v2385_v12  ;;  %v2537_v28 = vmul.f32 %v4538_v54, %v2411_v20  ;;  %v4699_v12 = vmul.f32 %v4568_v56, %v2411_v20 }
 0xb1f   :  { %v2269_v15 = vpop.xlane.xlu0 %2268  ;;  %v4573_v58 = vpop.xlane.xlu1 %2289 }
 0xb20   :  { %v2443_v3 = vrot.slane %v2269_v15, %v4520_v48  ;;  %v2439_v15 = vrot.slane %v4540_v43, %v4520_v48  ;;  %v2413_v52 = vsel %vm2404_vm7, %v2393_v55, %v2412_v27  ;;  %v2471_v55 = vrot.slane %v4573_v58, %v4520_v48 }
 0xb21   :  { %v4668_v27 = vsel %vm2417_vm13, %v2413_v52, 0.0  ;;  %v4678_v58 = vmul.f32 %v4547_v41, %v2411_v20  ;;  %v4684_v52 = vmul.f32 %v4558_v17, %v2411_v20  ;;  %v2544_v38 = vrot.slane %v2537_v28, 1 }
 0xb22   :  { %v2500_v43 = vsel %vm2394_vm8, %v2443_v3, %v2439_v15  ;;  %v2505_v15 = vsel %vm2404_vm7, %v2467_v30, %v2504_v21 }
 0xb23   :  { %v2272_v0 = vpop.xlane.xlu0 %2271  ;;  %v4594_v32 = vpop.xlane.xlu1 %2292 }
 0xb24   :  { %v2447_v35 = vrot.slane %v2272_v0, %v4520_v48  ;;  %v4645_v0 = vmul.f32 %v4568_v56, %v2418_v29  ;;  %v4690_v29 = vmul.f32 %v4561_v40, %v2411_v20 }
 0xb26   :  { %v2501_v6 = vsel %vm2396_vm10, %v2447_v35, %v2500_v43  ;;  %v2475_v43 = vrot.slane %v4594_v32, %v4520_v48 }
 0xb27   :  { %v2275_v26 = vpop.xlane.xlu0 %2274  ;;  %v2296_v46 = vpop.xlane.xlu1 %2295 }
 0xb28   :  { %v2451_v45 = vrot.slane %v2275_v26, %v4520_v48 }
 0xb2a   :  { %v2502_v3 = vsel %vm2398_vm11, %v2451_v45, %v2501_v6  ;;  %v2479_v6 = vrot.slane %v2296_v46, %v4520_v48  ;;  %v2506_v46 = vsel %vm2406_vm9, %v2471_v55, %v2505_v15 }
 0xb2b   :  { %v2278_v26 = vpop.xlane.xlu0 %2277  ;;  %v2299_v23 = vpop.xlane.xlu1 %2298 }
 0xb2c   :  { %v2455_v34 = vrot.slane %v2278_v26, %v4520_v48  ;;  %v2525_v26 = vmul.f32 %v2523_v7, %v2411_v20  ;;  %v2483_v32 = vrot.slane %v2299_v23, %v4520_v48  ;;  %v2538_v7 = vmul.f32 %v4538_v54, %v4668_v27 }
 0xb2d   :  { %v4702_v23 = vmul.f32 %v4571_v33, %v2411_v20  ;;  %v2579_v54 = vrot.slane %v4678_v58, 2 }
 0xb2e   :  { %v2503_v35 = vsel %vm2400_vm12, %v2455_v34, %v2502_v3  ;;  %v5016_v34 = vstv %s4526_s9 }
 0xb2f   :  { %v4673_v45 = vsel %vm2417_vm13, 0.0, %v2503_v35  ;;  %v2305_v21 = vpop.xlane.xlu0 %2304  ;;  %v2308_v30 = vpop.xlane.xlu1 %2307  ;;  %v2526_v3 = vadd.f32 %v2524_v10, %v5016_v34  ;;  %v5017_v10 = vstv %s4528_s5 }
 0xb30   :  { %v2491_v35 = vrot.slane %v2305_v21, %v4520_v48  ;;  %v2495_v24 = vrot.slane %v2308_v30, %v4520_v48  ;;  %v2529_v34 = vmul.f32 %v5017_v10, %v4673_v45  ;;  %v2507_v21 = vsel %vm2394_vm8, %v2475_v43, %v2506_v46 }
 0xb31   :  { %v2508_v15 = vsel %vm2396_vm10, %v2479_v6, %v2507_v21  ;;  %v2614_v10 = vrot.slane %v4684_v52, 3  ;;  %v2553_v43 = vmul.f32 %v4583_v50, %v4673_v45  ;;  %v2546_v46 = vrot.slane %v2538_v7, 1 }
 0xb32   :  { %v2509_v62 = vsel %vm2398_vm11, %v2483_v32, %v2508_v15  ;;  %v2511_v20 = vsel %vm2402_vm6, %v2495_v24, %v2491_v35  ;;  %v2531_v36 = vadd.f32 %v2529_v34, %v2526_v3  ;;  %v5018_v21 = vstv %s4526_s9 }
 0xb33   :  { %v2302_v30 = vpop.xlane.xlu0 %2301  ;;  %v2311_v11 = vpop.xlane.xlu1 %2310  ;;  %v2573_v3 = vmul.f32 %v4547_v41, %v4668_v27  ;;  %v2559_v15 = vrot.slane %v2553_v43, 1  ;;  %v2623_v35 = vmul.f32 %v4604_v59, %v4673_v45 }
 0xb34   :  { %v2487_v55 = vrot.slane %v2302_v30, %v4520_v48  ;;  %v2499_v28 = vrot.slane %v2311_v11, %v4520_v48  ;;  %v2527_v30 = vadd.f32 %v2525_v26, %v5018_v21  ;;  %v5019_v48 = vstv %s4528_s5 }
 0xb36   :  { %v4715_v58 = vsel %vm2400_vm12, %v2487_v55, %v2509_v62  ;;  %v2512_v6 = vsel %vm2404_vm7, %v2499_v28, %v2511_v20  ;;  %v5020_v62 = vrot.slane %v4621_v4, 1  ;;  %v2588_v28 = vmul.f32 %v4597_v39, %v4673_v45 }
 0xb37   :  { %v2530_v11 = vmul.f32 %v5019_v48, %v4715_v58  ;;  %v2554_v32 = vmul.f32 %v4583_v50, %v4715_v58  ;;  %v2589_v24 = vmul.f32 %v4597_v39, %v4715_v58  ;;  %v4734_v26 = vsel %vm2417_vm13, %v2512_v6, 0.0 }
 0xb38   :  { %v2545_v7 = vsel %vm2542_vm14, %v5020_v62, %v2544_v38  ;;  %v2624_v41 = vmul.f32 %v4604_v59, %v4715_v58  ;;  %v2555_v4 = vmul.f32 %v4583_v50, %v4734_v26  ;;  %v2547_v48 = vsel %vm2542_vm14, %v2544_v38, %v2546_v46 }
 0xb39   :  { %v2532_v34 = vadd.f32 %v2530_v11, %v2527_v30  ;;  %v2560_v55 = vrot.slane %v2554_v32, 1  ;;  %v2550_v21 = vadd.f32 %v2545_v7, %v2531_v36  ;;  %v2608_v6 = vmul.f32 %v4558_v17, %v4668_v27 }
 0xb3a   :  { %v2595_v30 = vrot.slane %v2589_v24, 2  ;;  %v2581_v11 = vrot.slane %v2573_v3, 2  ;;  %v5021_v20 = vrot.slane %v4625_v37, 2  ;;  %v2594_v7 = vrot.slane %v2588_v28, 2 }
 0xb3b   :  { %v2561_v43 = vsel %vm2542_vm14, %v2559_v15, %v2560_v55  ;;  %v2551_v32 = vadd.f32 %v2547_v48, %v2532_v34  ;;  %v2562_v50 = vrot.slane %v2555_v4, 1  ;;  %v2590_v38 = vmul.f32 %v4597_v39, %v4734_v26 }
 0xb3c   :  { %v2566_v62 = vadd.f32 %v2561_v43, %v2550_v21  ;;  %v2580_v36 = vsel %vm2577_vm15, %v5021_v20, %v2579_v54  ;;  %v2718_v17 = vrot.slane %v4702_v23, 6  ;;  %v2630_v15 = vrot.slane %v2624_v41, 3 }
 0xb3d   :  { %v2659_v24 = vmul.f32 %v4607_v51, %v4715_v58  ;;  %v2596_v3 = vsel %vm2577_vm15, %v2594_v7, %v2595_v30  ;;  %v2563_v37 = vsel %vm2542_vm14, %v2560_v55, %v2562_v50  ;;  %v2597_v34 = vrot.slane %v2590_v38, 2 }
 0xb3e   :  { %v2585_v46 = vadd.f32 %v2580_v36, %v2566_v62  ;;  %v2625_v28 = vmul.f32 %v4604_v59, %v4734_v26  ;;  %v2616_v20 = vrot.slane %v2608_v6, 3  ;;  %v2643_v21 = vmul.f32 %v4561_v40, %v4668_v27 }
 0xb3f   :  { %v2567_v4 = vadd.f32 %v2563_v37, %v2551_v32  ;;  %v2582_v48 = vsel %vm2577_vm15, %v2579_v54, %v2581_v11  ;;  %v5022_v41 = vrot.slane %v4631_v63, 3  ;;  %v2629_v62 = vrot.slane %v2623_v35, 3 }
 0xb40   :  { %v2601_v39 = vadd.f32 %v2596_v3, %v2585_v46  ;;  %v2658_v55 = vmul.f32 %v4607_v51, %v4673_v45  ;;  %v2665_v59 = vrot.slane %v2659_v24, 4  ;;  %v2693_v6 = vmul.f32 %v4610_v13, %v4715_v58 }
 0xb41   :  { %v2615_v43 = vsel %vm2612_vm1, %v5022_v41, %v2614_v10  ;;  %v2586_v40 = vadd.f32 %v2582_v48, %v2567_v4  ;;  %v2631_v32 = vsel %vm2612_vm1, %v2629_v62, %v2630_v15  ;;  %v2598_v54 = vsel %vm2577_vm15, %v2595_v30, %v2597_v34 }
 0xb42   :  { %v2620_v36 = vadd.f32 %v2615_v43, %v2601_v39  ;;  %v2632_v11 = vrot.slane %v2625_v28, 3  ;;  %v2660_v63 = vmul.f32 %v4607_v51, %v4734_v26  ;;  %v2651_v7 = vrot.slane %v2643_v21, 4 }
 0xb43   :  { %v2678_v35 = vmul.f32 %v4568_v56, %v4668_v27  ;;  %v2602_v38 = vadd.f32 %v2598_v54, %v2586_v40  ;;  %v2617_v46 = vsel %vm2612_vm1, %v2614_v10, %v2616_v20  ;;  %v5023_v24 = vrot.slane %v4690_v29, 4 }
 0xb44   :  { %v2636_v50 = vadd.f32 %v2631_v32, %v2620_v36  ;;  %v5024_v3 = vrot.slane %v4634_v5, 4  ;;  %v2664_v37 = vrot.slane %v2658_v55, 4  ;;  %v2692_v51 = vmul.f32 %v4610_v13, %v4673_v45 }
 0xb45   :  { %v2699_v28 = vrot.slane %v2693_v6, 5  ;;  %v2728_v56 = vmul.f32 %v4616_v8, %v4715_v58  ;;  %v2621_v21 = vadd.f32 %v2617_v46, %v2602_v38  ;;  %v2633_v10 = vsel %vm2612_vm1, %v2630_v15, %v2632_v11 }
 0xb46   :  { %v2650_v30 = vsel %vm2647_vm2, %v5024_v3, %v5023_v24  ;;  %v2666_v52 = vsel %vm2647_vm2, %v2664_v37, %v2665_v59  ;;  %v2667_v20 = vrot.slane %v2660_v63, 4  ;;  %v2694_v5 = vmul.f32 %v4610_v13, %v4734_v26 }
 0xb47   :  { %v2655_v34 = vadd.f32 %v2650_v30, %v2636_v50  ;;  %v5025_v39 = vrot.slane %v4699_v12, 5  ;;  %v5026_v4 = vrot.slane %v4645_v0, 5  ;;  %v2712_v41 = vmul.f32 %v4571_v33, %v4668_v27 }
 0xb48   :  { %v2637_v58 = vadd.f32 %v2633_v10, %v2621_v21  ;;  %v5027_v62 = vmov %v5023_v24  ;;  %v2685_v15 = vrot.slane %v2678_v35, 5  ;;  %v2698_v36 = vrot.slane %v2692_v51, 5 }
 0xb49   :  { %v2684_v48 = vsel %vm2417_vm13, %v5026_v4, %v5025_v39  ;;  %v2671_v43 = vadd.f32 %v2666_v52, %v2655_v34  ;;  %v2652_v55 = vsel %vm2647_vm2, %v5027_v62, %v2651_v7  ;;  %v2727_v13 = vmul.f32 %v4616_v8, %v4673_v45 }
 0xb4a   :  { %v2717_v6 = vrot.slane %v4650_v44, 6  ;;  %v2656_v40 = vadd.f32 %v2652_v55, %v2637_v58  ;;  %v2700_v32 = vsel %vm2417_vm13, %v2698_v36, %v2699_v28  ;;  %v2734_v54 = vrot.slane %v2728_v56, 6 }
 0xb4b   :  { %v2689_v0 = vadd.f32 %v2684_v48, %v2671_v43  ;;  %v2668_v33 = vsel %vm2647_vm2, %v2665_v59, %v2667_v20  ;;  %v2701_v27 = vrot.slane %v2694_v5, 5  ;;  %v2720_v11 = vrot.slane %v2712_v41, 6 }
 0xb4c   :  { %v2672_v63 = vadd.f32 %v2668_v33, %v2656_v40  ;;  %v5028_v7 = vmov %v5025_v39  ;;  %v2719_v44 = vsel %vm2716_vm3, %v2717_v6, %v2718_v17  ;;  %v2733_v45 = vrot.slane %v2727_v13, 6 }
 0xb4d   :  { %v2705_v29 = vadd.f32 %v2700_v32, %v2689_v0  ;;  %v2686_v35 = vsel %vm2417_vm13, %v5028_v7, %v2685_v15  ;;  %v2729_v50 = vmul.f32 %v4616_v8, %v4734_v26  ;;  %v2702_v24 = vsel %vm2417_vm13, %v2699_v28, %v2701_v27 }
 0xb4e   :  { %v2690_v46 = vadd.f32 %v2686_v35, %v2672_v63  ;;  %v2735_v59 = vsel %vm2716_vm3, %v2733_v45, %v2734_v54  ;;  %v2721_v12 = vsel %vm2716_vm3, %v2718_v17, %v2720_v11  ;;  %v2770_v5 = vsub.s32 2, %v3893_v18 }
 0xb4f   :  { %v2724_v38 = vadd.f32 %v2719_v44, %v2705_v29  ;;  %v2736_v37 = vrot.slane %v2729_v50, 6  ;;  %v2777_v39 = vsub.s32 3, %v3893_v18  ;;  %v2784_v41 = vsub.s32 4, %v3893_v18  ;;  %v2885_v50 = vld [vmem:[%s5029_s0 + $0x18] sm:$0xff] }
 0xb50   :  { %v2706_v30 = vadd.f32 %v2702_v24, %v2690_v46  ;;  %v2791_v43 = vsub.s32 5, %v3893_v18  ;;  %v2798_v55 = vsub.s32 6, %v3893_v18  ;;  %v2805_v15 = vsub.s32 7, %v3893_v18  ;;  %v2884_v46 = vld [vmem:[%s5029_s0 + $0x10] sm:$0xff] }
 0xb51   :  { %v2740_v3 = vadd.f32 %v2735_v59, %v2724_v38  ;;  %v2737_v56 = vsel %vm2716_vm3, %v2734_v54, %v2736_v37  ;;  %v2886_v37 = vld [vmem:[%s5029_s0 + $0x20] sm:$0xff] }
 0xb52   :  { %v2725_v34 = vadd.f32 %v2721_v12, %v2706_v30  ;;  %v2887_v30 = vld [vmem:[%s5029_s0 + $0x28] sm:$0xff] }
 0xb53   :  { %v3092_v51 = vmul.f32 -1.442695, %v2740_v3 }
 0xb54   :  { %v2741_v21 = vadd.f32 %v2737_v56, %v2725_v34 }
 0xb55   :  { %3489 = vpow2.f32 %v3092_v51 }
 0xb56   :  { %v3093_v8 = vmul.f32 -1.442695, %v2741_v21  ;;  %v2889_v21 = vld [vmem:[%s5029_s0 + $0x38] sm:$0xff] }
 0xb58   :  { %3491 = vpow2.f32 %v3093_v8 }
 0xb62   :  { %v3490_v26 = vpop.eup %3489 }
 0xb63   :  { %v2748_v52 = vadd.f32 1.0, %v3490_v26  ;;  %v2888_v26 = vld [vmem:[%s5029_s0 + $0x30] sm:$0xff] }
 0xb65   :  { %3493 = vrcp.f32 %v2748_v52  ;;  %v3492_v10 = vpop.eup %3491 }
 0xb66   :  { %v2749_v28 = vadd.f32 1.0, %v3492_v10 }
 0xb68   :  { %3495 = vrcp.f32 %v2749_v28 }
 0xb72   :  { %v3494_v20 = vpop.eup %3493 }
 0xb73   :  { %v2764_v23 = vrot.slane %v3494_v20, %v3902_v22  ;;  %v2757_v17 = vrot.slane %v3494_v20, %v3896_v19  ;;  %v2771_v4 = vrot.slane %v3494_v20, %v2770_v5  ;;  %v2778_v48 = vrot.slane %v3494_v20, %v2777_v39 }
 0xb74   :  { %v2785_v58 = vrot.slane %v3494_v20, %v2784_v41  ;;  %v2792_v62 = vrot.slane %v3494_v20, %v2791_v43  ;;  %v2799_v36 = vrot.slane %v3494_v20, %v2798_v55  ;;  %v2806_v13 = vrot.slane %v3494_v20, %v2805_v15  ;;  %v2891_v20 = vld [vmem:[%s5029_s0 + $0x48] sm:$0xff] }
 0xb75   :  { %2766 = vbcast.lane.b32.xlu1 %v2764_v23, 256  ;;  %2759 = vbcast.lane.b32.xlu0 %v2757_v17, 256  ;;  %v3496_v6 = vpop.eup %3495  ;;  %v2890_v23 = vld [vmem:[%s5029_s0 + $0x40] sm:$0xff] }
 0xb76   :  { %v2820_v0 = vrot.slane %v3496_v6, %v3902_v22  ;;  %v2813_v40 = vrot.slane %v3496_v6, %v3896_v19  ;;  %v2834_v32 = vrot.slane %v3496_v6, %v2777_v39  ;;  %v2827_v54 = vrot.slane %v3496_v6, %v2770_v5  ;;  %v2882_v22 = vld [vmem:[%s5029_s0] sm:$0xff]  ;;  %v2883_v19 = vld [vmem:[%s5029_s0 + $0x8] sm:$0xff] }
 0xb77   :  { %v2848_v33 = vrot.slane %v3496_v6, %v2791_v43  ;;  %v2841_v27 = vrot.slane %v3496_v6, %v2784_v41  ;;  %v2862_v18 = vrot.slane %v3496_v6, %v2805_v15  ;;  %v2855_v11 = vrot.slane %v3496_v6, %v2798_v55  ;;  %v2892_v43 = vld [vmem:[%s5029_s0 + $0x50] sm:$0xff]  ;;  %v2895_v15 = vld [vmem:[%s5029_s0 + $0x68] sm:$0xff] }
 0xb79   :  { %2773 = vbcast.lane.b32.xlu1 %v2771_v4, 256  ;;  %2780 = vbcast.lane.b32.xlu0 %v2778_v48, 256  ;;  %v2893_v48 = vld [vmem:[%s5029_s0 + $0x58] sm:$0xff] }
 0xb7d   :  { %2787 = vbcast.lane.b32.xlu1 %v2785_v58, 256  ;;  %2794 = vbcast.lane.b32.xlu0 %v2792_v62, 256 }
 0xb81   :  { %2801 = vbcast.lane.b32.xlu1 %v2799_v36, 256  ;;  %2808 = vbcast.lane.b32.xlu0 %v2806_v13, 256  ;;  %v2894_v13 = vld [vmem:[%s5029_s0 + $0x60] sm:$0xff] }
 0xb85   :  { %2822 = vbcast.lane.b32.xlu0 %v2820_v0, 256  ;;  %2815 = vbcast.lane.b32.xlu1 %v2813_v40, 256 }
 0xb89   :  { %2836 = vbcast.lane.b32.xlu0 %v2834_v32, 256  ;;  %2829 = vbcast.lane.b32.xlu1 %v2827_v54, 256  ;;  %v2897_v32 = vld [vmem:[%s5029_s0 + $0x78] sm:$0xff] }
 0xb8d   :  { %2850 = vbcast.lane.b32.xlu0 %v2848_v33, 256  ;;  %2843 = vbcast.lane.b32.xlu1 %v2841_v27, 256  ;;  %v2896_v33 = vld [vmem:[%s5029_s0 + $0x70] sm:$0xff] }
 0xb91   :  { %2864 = vbcast.lane.b32.xlu0 %v2862_v18, 256  ;;  %2857 = vbcast.lane.b32.xlu1 %v2855_v11, 256  ;;  %v5031_v18 = vld [vmem:[#allocation15_spill] sm:$0xff] }
 0xbe7   :  { %v2760_v29 = vpop.permute.xlu0 %2759  ;;  %v2767_v63 = vpop.permute.xlu1 %2766 }
 0xbe8   :  { %v2866_v7 = vmul.f32 %v2760_v29, %v4384_v16  ;;  %v2867_v35 = vmul.f32 %v2767_v63, %v4393_v49 }
 0xbea   :  { %v2898_v44 = vadd.f32 %v2882_v22, %v2866_v7  ;;  %v2899_v45 = vadd.f32 %v2883_v19, %v2867_v35 }
 0xbeb   :  { %v2781_v38 = vpop.permute.xlu0 %2780  ;;  %v2774_v59 = vpop.permute.xlu1 %2773 }
 0xbec   :  { %2914 = vst.msk [vmem:[%s4986_s24] sm:$0xff] %vm108_vm0, %v2898_v44  ;;  %2915 = vst.msk [vmem:[%s4986_s24 + $0x8] sm:$0xff] %vm108_vm0, %v2899_v45  ;;  %v2869_v16 = vmul.f32 %v2781_v38, %v4417_v31  ;;  %v2868_v49 = vmul.f32 %v2774_v59, %v4405_v14 }
 0xbee   :  { %v2901_v24 = vadd.f32 %v2885_v50, %v2869_v16  ;;  %v2900_v3 = vadd.f32 %v2884_v46, %v2868_v49 }
 0xbef   :  { %v2795_v12 = vpop.permute.xlu0 %2794  ;;  %v2788_v51 = vpop.permute.xlu1 %2787 }
 0xbf0   :  { %2917 = vst.msk [vmem:[%s4986_s24 + $0x18] sm:$0xff] %vm108_vm0, %v2901_v24  ;;  %2916 = vst.msk [vmem:[%s4986_s24 + $0x10] sm:$0xff] %vm108_vm0, %v2900_v3  ;;  %v2871_v14 = vmul.f32 %v2795_v12, %v4374_v53  ;;  %v2870_v31 = vmul.f32 %v2788_v51, %v4433_v57 }
 0xbf2   :  { %v2903_v34 = vadd.f32 %v2887_v30, %v2871_v14  ;;  %v2902_v56 = vadd.f32 %v2886_v37, %v2870_v31 }
 0xbf3   :  { %v2809_v8 = vpop.permute.xlu0 %2808  ;;  %v2802_v52 = vpop.permute.xlu1 %2801 }
 0xbf4   :  { %2919 = vst.msk [vmem:[%s4986_s24 + $0x28] sm:$0xff] %vm108_vm0, %v2903_v34  ;;  %2918 = vst.msk [vmem:[%s4986_s24 + $0x20] sm:$0xff] %vm108_vm0, %v2902_v56  ;;  %v2873_v53 = vmul.f32 %v2809_v8, %v4381_v2  ;;  %v2872_v57 = vmul.f32 %v2802_v52, %v4371_v42 }
 0xbf6   :  { %v2905_v10 = vadd.f32 %v2889_v21, %v2873_v53  ;;  %v2904_v28 = vadd.f32 %v2888_v26, %v2872_v57 }
 0xbf7   :  { %v2823_v5 = vpop.permute.xlu0 %2822  ;;  %v2816_v17 = vpop.permute.xlu1 %2815 }
 0xbf8   :  { %2921 = vst.msk [vmem:[%s4986_s24 + $0x38] sm:$0xff] %vm108_vm0, %v2905_v10  ;;  %2920 = vst.msk [vmem:[%s4986_s24 + $0x30] sm:$0xff] %vm108_vm0, %v2904_v28  ;;  %v2875_v42 = vmul.f32 %v2823_v5, %v4408_v60  ;;  %v2874_v2 = vmul.f32 %v2816_v17, %v4396_v61 }
 0xbfa   :  { %v2907_v39 = vadd.f32 %v2891_v20, %v2875_v42  ;;  %v2906_v4 = vadd.f32 %v2890_v23, %v2874_v2 }
 0xbfb   :  { %v2837_v41 = vpop.permute.xlu0 %2836  ;;  %v2830_v58 = vpop.permute.xlu1 %2829 }
 0xbfc   :  { %2923 = vst.msk [vmem:[%s4986_s24 + $0x48] sm:$0xff] %vm108_vm0, %v2907_v39  ;;  %2922 = vst.msk [vmem:[%s4986_s24 + $0x40] sm:$0xff] %vm108_vm0, %v2906_v4  ;;  %v2877_v61 = vmul.f32 %v2837_v41, %v4436_v1  ;;  %v2876_v60 = vmul.f32 %v2830_v58, %v4420_v25 }
 0xbfe   :  { %v2909_v62 = vadd.f32 %v2893_v48, %v2877_v61  ;;  %v2908_v55 = vadd.f32 %v2892_v43, %v2876_v60 }
 0xbff   :  { %v2851_v36 = vpop.permute.xlu0 %2850  ;;  %v2844_v6 = vpop.permute.xlu1 %2843 }
 0xc00   :  { %2925 = vst.msk [vmem:[%s4986_s24 + $0x58] sm:$0xff] %vm108_vm0, %v2909_v62  ;;  %2924 = vst.msk [vmem:[%s4986_s24 + $0x50] sm:$0xff] %vm108_vm0, %v2908_v55  ;;  %v2879_v25 = vmul.f32 %v2851_v36, %v4445_v47  ;;  %v2878_v1 = vmul.f32 %v2844_v6, %v4456_v9  ;;  %v5030_v47 = vld [vmem:[#allocation16_spill] sm:$0xff] }
 0xc02   :  { %v2911_v0 = vadd.f32 %v2895_v15, %v2879_v25  ;;  %v2910_v40 = vadd.f32 %v2894_v13, %v2878_v1 }
 0xc03   :  { %v2865_v54 = vpop.permute.xlu0 %2864  ;;  %v2858_v27 = vpop.permute.xlu1 %2857 }
 0xc04   :  { %2927 = vst.msk [vmem:[%s4986_s24 + $0x68] sm:$0xff] %vm108_vm0, %v2911_v0  ;;  %2926 = vst.msk [vmem:[%s4986_s24 + $0x60] sm:$0xff] %vm108_vm0, %v2910_v40  ;;  %v2881_v9 = vmul.f32 %v2865_v54, %v5030_v47  ;;  %v2880_v11 = vmul.f32 %v2858_v27, %v5031_v18 }
 0xc06   :  { %v2913_v22 = vadd.f32 %v2897_v32, %v2881_v9  ;;  %v2912_v29 = vadd.f32 %v2896_v33, %v2880_v11 }
 0xc08   :  { %2929 = vst.msk [vmem:[%s4986_s24 + $0x78] sm:$0xff] %vm108_vm0, %v2913_v22  ;;  %2928 = vst.msk [vmem:[%s4986_s24 + $0x70] sm:$0xff] %vm108_vm0, %v2912_v29 }
 0xc09   :  { %2934 = vsyncpa [#allocation13], 1 }

</bundles_post_ra>
